<compile_context>
chip_gen: v6e
topology: v6e:2x2x1
jax: 0.10.0
libtpu: 0.0.40
codegen_flags: <defaults>
</compile_context>

<pallas_src>
import jax
import jax.numpy as jnp
from jax.experimental import pallas as pl
from jax.experimental.pallas import tpu as pltpu

FEAT_DIM = 512
CLASS_NUMS = 2
H1, H2, H3 = 1024, 1024, 512
OUT_PAD = 128              # lane-dense padded output width (sliced to CLASS_NUMS)
BN_EPS = 1e-5

SINGLE_TILE_MAX = 512      # <= this batch -> single-tile manual-DMA kernel
TB_LARGE = 512             # batch tile for the pipelined grid path (>= 2 tiles)
VMEM_LIMIT = 32 * 1024 * 1024   # safe on v7x (64 MiB physical); v5e/v6e have 128 MiB


def _round_up(n, m):
    return ((n + m - 1) // m) * m


def _default_weight_format():
    """int8 weights on v5e/v6e (weight-DMA bound, int-capable MXU); bf16 elsewhere."""
    try:
        kind = jax.devices()[0].device_kind.lower()
    except Exception:
        return "bf16"
    if ("v5 lite" in kind) or ("v5e" in kind) or ("v6 lite" in kind) or ("v6e" in kind):
        return "int8"
    return "bf16"


# ---------------------------------------------------------------------------
# Kernel bodies
# ---------------------------------------------------------------------------
def _layer(h, w, s_ref, b_ref, relu):
    """h(bf16) @ w -> f32 acc, * per-column f32 scale, + f32 bias, optional ReLU."""
    if w.dtype != jnp.bfloat16:
        w = w.astype(jnp.bfloat16)          # int8 -> bf16 (DMA stayed int8-sized)
    z = jnp.dot(h, w, preferred_element_type=jnp.float32)
    z = z * s_ref[...] + b_ref[...]
    if relu:
        z = jnp.maximum(z, 0.0)
    return z.astype(jnp.bfloat16)


def _mlp_grid_kernel(x_ref,
                     w1_ref, s1_ref, b1_ref,
                     w2_ref, s2_ref, b2_ref,
                     w3_ref, s3_ref, b3_ref,
                     w4_ref, s4_ref, b4_ref,
                     out_ref):
    h = x_ref[...]                           # bf16 (TB, FEAT_DIM)
    h = _layer(h, w1_ref[...], s1_ref, b1_ref, True)
    h = _layer(h, w2_ref[...], s2_ref, b2_ref, True)
    h = _layer(h, w3_ref[...], s3_ref, b3_ref, True)
    out_ref[...] = _layer(h, w4_ref[...], s4_ref, b4_ref, False)


def _mlp_single_tile_kernel(x_ref,
                            w1_hbm, s1_ref, b1_ref,
                            w2_hbm, s2_ref, b2_ref,
                            w3_hbm, s3_ref, b3_ref,
                            w4_hbm, s4_ref, b4_ref,
                            out_ref,
                            w1_v, w2_v, w3_v, w4_v, sems):
    # Issue all four weight DMAs up front; wait on W_i right before layer i so
    # the W2..W4 transfer overlaps layer 1..3 compute.
    copies = [
        pltpu.make_async_copy(w1_hbm, w1_v, sems.at[0]),
        pltpu.make_async_copy(w2_hbm, w2_v, sems.at[1]),
        pltpu.make_async_copy(w3_hbm, w3_v, sems.at[2]),
        pltpu.make_async_copy(w4_hbm, w4_v, sems.at[3]),
    ]
    for cp in copies:
        cp.start()

    h = x_ref[...]                           # bf16 (Bp, FEAT_DIM)
    copies[0].wait()
    h = _layer(h, w1_v[...], s1_ref, b1_ref, True)
    copies[1].wait()
    h = _layer(h, w2_v[...], s2_ref, b2_ref, True)
    copies[2].wait()
    h = _layer(h, w3_v[...], s3_ref, b3_ref, True)
    copies[3].wait()
    out_ref[...] = _layer(h, w4_v[...], s4_ref, b4_ref, False)


# ---------------------------------------------------------------------------
# Wrapper
# ---------------------------------------------------------------------------
def one_layer_classifier(x, kernel_params):
    """x: (B, FEAT_DIM) float -> (B, CLASS_NUMS) f32 logits (eval-mode BN)."""
    B = x.shape[0]
    # bf16 activations halve per-tile activation DMA.  Ideally the producer
    # already emits bf16; the cast here is an extra XLA op (roughly neutral).
    x = x.astype(jnp.bfloat16)

    weights = kernel_params[0::3]
    scales = kernel_params[1::3]
    biases = kernel_params[2::3]

    if B <= SINGLE_TILE_MAX:
        # Single tile; rows rounded to 16 so bf16 vregs are fully packed.
        Bp = _round_up(max(B, 1), 16)
        if Bp != B:
            x = jnp.pad(x, ((0, Bp - B), (0, 0)))

        in_specs = [pl.BlockSpec((Bp, FEAT_DIM), lambda i: (0, 0))]
        for w, s, b in zip(weights, scales, biases):
            in_specs += [
                pl.BlockSpec(memory_space=pl.ANY),        # weight stays in HBM
                pl.BlockSpec(s.shape, lambda i: (0, 0)),
                pl.BlockSpec(b.shape, lambda i: (0, 0)),
            ]
        out_spec = pl.BlockSpec((Bp, OUT_PAD), lambda i: (0, 0))
        scratch = [pltpu.VMEM(w.shape, w.dtype) for w in weights]
        scratch += [pltpu.SemaphoreType.DMA((4,))]

        out = pl.pallas_call(
            _mlp_single_tile_kernel,
            out_shape=jax.ShapeDtypeStruct((Bp, OUT_PAD), jnp.bfloat16),
            grid=(1,),
            in_specs=in_specs,
            out_specs=out_spec,
            scratch_shapes=scratch,
            compiler_params=pltpu.CompilerParams(
                dimension_semantics=("arbitrary",),
                vmem_limit_bytes=VMEM_LIMIT,
            ),
        )(x, *kernel_params)
    else:
        TB = TB_LARGE                                     # B > 512 -> >= 2 tiles
        Bp = _round_up(B, TB)
        if Bp != B:
            x = jnp.pad(x, ((0, Bp - B), (0, 0)))

        in_specs = [pl.BlockSpec((TB, FEAT_DIM), lambda i: (i, 0))]
        for w, s, b in zip(weights, scales, biases):
            in_specs += [
                pl.BlockSpec(w.shape, lambda i: (0, 0)),  # VMEM-resident weight
                pl.BlockSpec(s.shape, lambda i: (0, 0)),
                pl.BlockSpec(b.shape, lambda i: (0, 0)),
            ]
        out_spec = pl.BlockSpec((TB, OUT_PAD), lambda i: (i, 0))

        out = pl.pallas_call(
            _mlp_grid_kernel,
            out_shape=jax.ShapeDtypeStruct((Bp, OUT_PAD), jnp.bfloat16),
            grid=(Bp // TB,),
            in_specs=in_specs,
            out_specs=out_spec,
            compiler_params=pltpu.CompilerParams(
                dimension_semantics=("parallel",),        # v7x: split tiles over 2 TCs
                vmem_limit_bytes=VMEM_LIMIT,
            ),
        )(x, *kernel_params)

    return out[:B, :CLASS_NUMS].astype(jnp.float32)


# ---------------------------------------------------------------------------
# Parameter construction (PyTorch-module-equivalent f32 params)
# ---------------------------------------------------------------------------
def init_params(key):
    """Synthetic f32 parameters matching the PyTorch module shapes.

    Linear weights are stored transposed to (in, out) so the kernel computes
    x @ W.  Bias / BN vectors are (1, N) rows.
    Returns [w1,b1,g1,be1,m1,v1, w2,..., w3,..., w4,b4]  (20 arrays).
    """
    dims = [(FEAT_DIM, H1), (H1, H2), (H2, H3), (H3, CLASS_NUMS)]
    params = []
    keys = jax.random.split(key, 32)
    ki = 0
    for li, (din, dout) in enumerate(dims):
        w = (jax.random.normal(keys[ki], (din, dout), jnp.float32)
             * (1.0 / jnp.sqrt(jnp.float32(din))))
        ki += 1
        b = jax.random.normal(keys[ki], (1, dout), jnp.float32) * 0.01
        ki += 1
        params += [w, b]
        if li < 3:  # BN only after the first three Linear layers
            gamma = 1.0 + 0.1 * jax.random.normal(keys[ki], (1, dout), jnp.float32)
            ki += 1
            beta = 0.1 * jax.random.normal(keys[ki], (1, dout), jnp.float32)
            ki += 1
            rmean = 0.05 * jax.random.normal(keys[ki], (1, dout), jnp.float32)
            ki += 1
            rvar = 0.5 + jax.random.uniform(keys[ki], (1, dout), jnp.float32)
            ki += 1
            params += [gamma, beta, rmean, rvar]
    return params


def prepare_kernel_params(params, weight_format="auto"):
    """Fold eval-mode BN into per-column f32 scale/bias, pad the last layer to
    128 lanes, and store weights as int8 (per-channel quant) or bf16.

    Returns a flat list [w1, s1, b1, w2, s2, b2, w3, s3, b3, w4, s4, b4]."""
    if weight_format == "auto":
        weight_format = _default_weight_format()

    (w1, b1, g1, be1, m1, v1,
     w2, b2, g2, be2, m2, v2,
     w3, b3, g3, be3, m3, v3,
     w4, b4) = params

    def quantize(w):
        if weight_format == "int8":
            q = jnp.maximum(jnp.max(jnp.abs(w), axis=0, keepdims=True), 1e-8) / 127.0
            wq = jnp.clip(jnp.round(w / q), -127.0, 127.0).astype(jnp.int8)
            return wq, q.astype(jnp.float32)
        return w.astype(jnp.bfloat16), jnp.ones((1, w.shape[1]), jnp.float32)

    def bn_fold(b, g, be, m, v):
        bn_scale = g / jnp.sqrt(v + BN_EPS)                      # (1, dout), f32
        bias = (b - m) * bn_scale + be
        return bn_scale.astype(jnp.float32), bias.astype(jnp.float32)

    out = []
    for w, b, bn in ((w1, b1, (g1, be1, m1, v1)),
                     (w2, b2, (g2, be2, m2, v2)),
                     (w3, b3, (g3, be3, m3, v3))):
        wq, qs = quantize(w)
        bn_scale, bias = bn_fold(b, *bn)
        out += [wq, (qs * bn_scale).astype(jnp.float32), bias]

    # Final layer (no BN), padded to OUT_PAD lanes for lane-dense stores.
    w4p = jnp.zeros((H3, OUT_PAD), jnp.float32).at[:, :CLASS_NUMS].set(w4)
    b4p = jnp.zeros((1, OUT_PAD), jnp.float32).at[:, :CLASS_NUMS].set(b4)
    w4q, q4 = quantize(w4p)
    out += [w4q, q4, b4p.astype(jnp.float32)]
    return out


# ---------------------------------------------------------------------------
# References
# ---------------------------------------------------------------------------
def reference_forward(x, params):
    """Original f32 module semantics: (Linear -> BN(eval) -> ReLU) x3 -> Linear."""
    (w1, b1, g1, be1, m1, v1,
     w2, b2, g2, be2, m2, v2,
     w3, b3, g3, be3, m3, v3,
     w4, b4) = params

    def lin_bn_relu(h, w, b, g, be, m, v):
        z = h @ w + b
        z = (z - m) * (g / jnp.sqrt(v + BN_EPS)) + be
        return jnp.maximum(z, 0.0)

    h = lin_bn_relu(x, w1, b1, g1, be1, m1, v1)
    h = lin_bn_relu(h, w2, b2, g2, be2, m2, v2)
    h = lin_bn_relu(h, w3, b3, g3, be3, m3, v3)
    return h @ w4 + b4


def reference_forward_matched(x, kernel_params):
    """Precision-matched reference: identical dtypes/ops to the kernel."""
    weights = kernel_params[0::3]
    scales = kernel_params[1::3]
    biases = kernel_params[2::3]
    h = x.astype(jnp.bfloat16)
    for idx, (w, s, b) in enumerate(zip(weights, scales, biases)):
        wb = w.astype(jnp.bfloat16)
        z = jnp.dot(h, wb, preferred_element_type=jnp.float32) * s + b
        if idx < 3:
            z = jnp.maximum(z, 0.0)
        h = z.astype(jnp.bfloat16)
    return h[:, :CLASS_NUMS].astype(jnp.float32)


if __name__ == "__main__":
    key = jax.random.PRNGKey(0)
    k_x, k_p, k_x2 = jax.random.split(key, 3)

    params = init_params(k_p)
    kernel_params = prepare_kernel_params(params)   # int8 on v5e/v6e, bf16 otherwise

    # ---- Small batch: single-tile kernel with per-layer weight-DMA overlap ----
    B = 8
    x = jax.random.normal(k_x, (B, FEAT_DIM), jnp.float32)
    out = jax.block_until_ready(one_layer_classifier(x, kernel_params))
    assert out.shape == (B, CLASS_NUMS)

    ref_matched = reference_forward_matched(x, kernel_params)
    assert jnp.allclose(out, ref_matched, atol=5e-2, rtol=5e-2), \
        "mismatch vs precision-matched reference"

    ref_f32 = reference_forward(x, params)
    assert jnp.allclose(out, ref_f32, atol=2.5e-1, rtol=2.5e-1), \
        "mismatch vs f32 (Linear+BN+ReLU) module reference"

    # ---- Larger batch: TB=512 pipelined 'parallel' grid (>= 2 tiles) ----
    B2 = 600
    x2 = jax.random.normal(k_x2, (B2, FEAT_DIM), jnp.float32)
    out2 = jax.block_until_ready(one_layer_classifier(x2, kernel_params))
    assert out2.shape == (B2, CLASS_NUMS)
    ref2 = reference_forward_matched(x2, kernel_params)
    assert jnp.allclose(out2, ref2, atol=5e-2, rtol=5e-2), \
        "grid-path mismatch vs precision-matched reference"

    print("KERNEL_OK")
</pallas_src>

<mosaic_0001>
module attributes {stable_mosaic.version = 11 : i64} {
  func.func @_mlp_single_tile_kernel(%arg0: i32, %arg1: memref<16x512xbf16, #tpu.memory_space<vmem>>, %arg2: memref<512x1024xbf16, #tpu.memory_space<any>>, %arg3: memref<1x1024xf32, #tpu.memory_space<vmem>>, %arg4: memref<1x1024xf32, #tpu.memory_space<vmem>>, %arg5: memref<1024x1024xbf16, #tpu.memory_space<any>>, %arg6: memref<1x1024xf32, #tpu.memory_space<vmem>>, %arg7: memref<1x1024xf32, #tpu.memory_space<vmem>>, %arg8: memref<1024x512xbf16, #tpu.memory_space<any>>, %arg9: memref<1x512xf32, #tpu.memory_space<vmem>>, %arg10: memref<1x512xf32, #tpu.memory_space<vmem>>, %arg11: memref<512x128xbf16, #tpu.memory_space<any>>, %arg12: memref<1x128xf32, #tpu.memory_space<vmem>>, %arg13: memref<1x128xf32, #tpu.memory_space<vmem>>, %arg14: memref<16x128xbf16, #tpu.memory_space<vmem>>, %arg15: memref<512x1024xbf16, #tpu.memory_space<vmem>>, %arg16: memref<1024x1024xbf16, #tpu.memory_space<vmem>>, %arg17: memref<1024x512xbf16, #tpu.memory_space<vmem>>, %arg18: memref<512x128xbf16, #tpu.memory_space<vmem>>, %arg19: memref<4x!tpu.dma_semaphore, #tpu.memory_space<semaphore_mem>>) attributes {dimension_semantics = [#tpu.dimension_semantics<arbitrary>], iteration_bounds = array<i64: 1>, scalar_prefetch = 0 : i64, scratch_operands = 5 : i64, tpu.core_type = #tpu.core_type<tc>, window_params = [{pipeline_mode = #tpu.pipeline_mode<synchronous>, transform_indices = @transform_0, window_bounds = array<i64: 16, 512>}, {}, {pipeline_mode = #tpu.pipeline_mode<synchronous>, transform_indices = @transform_2, window_bounds = array<i64: 1, 1024>}, {pipeline_mode = #tpu.pipeline_mode<synchronous>, transform_indices = @transform_3, window_bounds = array<i64: 1, 1024>}, {}, {pipeline_mode = #tpu.pipeline_mode<synchronous>, transform_indices = @transform_5, window_bounds = array<i64: 1, 1024>}, {pipeline_mode = #tpu.pipeline_mode<synchronous>, transform_indices = @transform_6, window_bounds = array<i64: 1, 1024>}, {}, {pipeline_mode = #tpu.pipeline_mode<synchronous>, transform_indices = @transform_8, window_bounds = array<i64: 1, 512>}, {pipeline_mode = #tpu.pipeline_mode<synchronous>, transform_indices = @transform_9, window_bounds = array<i64: 1, 512>}, {}, {pipeline_mode = #tpu.pipeline_mode<synchronous>, transform_indices = @transform_11, window_bounds = array<i64: 1, 128>}, {pipeline_mode = #tpu.pipeline_mode<synchronous>, transform_indices = @transform_12, window_bounds = array<i64: 1, 128>}, {pipeline_mode = #tpu.pipeline_mode<synchronous>, transform_indices = @transform_13, window_bounds = array<i64: 16, 128>}]} {
    %c0_i32 = arith.constant 0 : i32
    %0 = tpu.memref_slice %arg19[%c0_i32] : memref<4x!tpu.dma_semaphore, #tpu.memory_space<semaphore_mem>> -> memref<1x!tpu.dma_semaphore, #tpu.memory_space<semaphore_mem>>
    %1 = tpu.memref_squeeze %0 : memref<1x!tpu.dma_semaphore, #tpu.memory_space<semaphore_mem>> -> memref<!tpu.dma_semaphore, #tpu.memory_space<semaphore_mem>>
    tpu.enqueue_dma source(%arg2 : memref<512x1024xbf16, #tpu.memory_space<any>>) target(%arg15 : memref<512x1024xbf16, #tpu.memory_space<vmem>>) target_semaphore(%1 : memref<!tpu.dma_semaphore, #tpu.memory_space<semaphore_mem>>)
    %c1_i32 = arith.constant 1 : i32
    %2 = tpu.memref_slice %arg19[%c1_i32] : memref<4x!tpu.dma_semaphore, #tpu.memory_space<semaphore_mem>> -> memref<1x!tpu.dma_semaphore, #tpu.memory_space<semaphore_mem>>
    %3 = tpu.memref_squeeze %2 : memref<1x!tpu.dma_semaphore, #tpu.memory_space<semaphore_mem>> -> memref<!tpu.dma_semaphore, #tpu.memory_space<semaphore_mem>>
    tpu.enqueue_dma source(%arg5 : memref<1024x1024xbf16, #tpu.memory_space<any>>) target(%arg16 : memref<1024x1024xbf16, #tpu.memory_space<vmem>>) target_semaphore(%3 : memref<!tpu.dma_semaphore, #tpu.memory_space<semaphore_mem>>)
    %c2_i32 = arith.constant 2 : i32
    %4 = tpu.memref_slice %arg19[%c2_i32] : memref<4x!tpu.dma_semaphore, #tpu.memory_space<semaphore_mem>> -> memref<1x!tpu.dma_semaphore, #tpu.memory_space<semaphore_mem>>
    %5 = tpu.memref_squeeze %4 : memref<1x!tpu.dma_semaphore, #tpu.memory_space<semaphore_mem>> -> memref<!tpu.dma_semaphore, #tpu.memory_space<semaphore_mem>>
    tpu.enqueue_dma source(%arg8 : memref<1024x512xbf16, #tpu.memory_space<any>>) target(%arg17 : memref<1024x512xbf16, #tpu.memory_space<vmem>>) target_semaphore(%5 : memref<!tpu.dma_semaphore, #tpu.memory_space<semaphore_mem>>)
    %c3_i32 = arith.constant 3 : i32
    %6 = tpu.memref_slice %arg19[%c3_i32] : memref<4x!tpu.dma_semaphore, #tpu.memory_space<semaphore_mem>> -> memref<1x!tpu.dma_semaphore, #tpu.memory_space<semaphore_mem>>
    %7 = tpu.memref_squeeze %6 : memref<1x!tpu.dma_semaphore, #tpu.memory_space<semaphore_mem>> -> memref<!tpu.dma_semaphore, #tpu.memory_space<semaphore_mem>>
    tpu.enqueue_dma source(%arg11 : memref<512x128xbf16, #tpu.memory_space<any>>) target(%arg18 : memref<512x128xbf16, #tpu.memory_space<vmem>>) target_semaphore(%7 : memref<!tpu.dma_semaphore, #tpu.memory_space<semaphore_mem>>)
    %c0 = arith.constant 0 : index
    %c0_0 = arith.constant 0 : index
    %8 = vector.load %arg1[%c0, %c0_0] : memref<16x512xbf16, #tpu.memory_space<vmem>>, vector<16x512xbf16>
    %c0_i32_1 = arith.constant 0 : i32
    %9 = tpu.memref_slice %arg19[%c0_i32_1] : memref<4x!tpu.dma_semaphore, #tpu.memory_space<semaphore_mem>> -> memref<1x!tpu.dma_semaphore, #tpu.memory_space<semaphore_mem>>
    %10 = tpu.memref_squeeze %9 : memref<1x!tpu.dma_semaphore, #tpu.memory_space<semaphore_mem>> -> memref<!tpu.dma_semaphore, #tpu.memory_space<semaphore_mem>>
    tpu.wait_dma2 semaphore(%10 : memref<!tpu.dma_semaphore, #tpu.memory_space<semaphore_mem>>) src(%arg2 : memref<512x1024xbf16, #tpu.memory_space<any>>) dst(%arg15 : memref<512x1024xbf16, #tpu.memory_space<vmem>>)
    %c0_2 = arith.constant 0 : index
    %c0_3 = arith.constant 0 : index
    %11 = vector.load %arg15[%c0_2, %c0_3] : memref<512x1024xbf16, #tpu.memory_space<vmem>>, vector<512x1024xbf16>
    %cst = arith.constant dense<0.000000e+00> : vector<16x1024xf32>
    %12 = tpu.matmul %8, %11, %cst {dimension_numbers = #tpu.dot_dimension_numbers<[1], [0], [0], [1], [0, 0, 1, 1], [], []>} : vector<16x512xbf16>, vector<512x1024xbf16>, vector<16x1024xf32> -> vector<16x1024xf32>
    %c0_4 = arith.constant 0 : index
    %c0_5 = arith.constant 0 : index
    %13 = vector.load %arg3[%c0_4, %c0_5] : memref<1x1024xf32, #tpu.memory_space<vmem>>, vector<1x1024xf32>
    %14 = vector.broadcast %13 : vector<1x1024xf32> to vector<16x1024xf32>
    %15 = arith.mulf %12, %14 : vector<16x1024xf32>
    %c0_6 = arith.constant 0 : index
    %c0_7 = arith.constant 0 : index
    %16 = vector.load %arg4[%c0_6, %c0_7] : memref<1x1024xf32, #tpu.memory_space<vmem>>, vector<1x1024xf32>
    %17 = vector.broadcast %16 : vector<1x1024xf32> to vector<16x1024xf32>
    %18 = arith.addf %15, %17 : vector<16x1024xf32>
    %cst_8 = arith.constant 0.000000e+00 : f32
    %19 = vector.broadcast %cst_8 : f32 to vector<16x1024xf32>
    %20 = arith.maximumf %18, %19 : vector<16x1024xf32>
    %21 = arith.truncf %20 : vector<16x1024xf32> to vector<16x1024xbf16>
    %c1_i32_9 = arith.constant 1 : i32
    %22 = tpu.memref_slice %arg19[%c1_i32_9] : memref<4x!tpu.dma_semaphore, #tpu.memory_space<semaphore_mem>> -> memref<1x!tpu.dma_semaphore, #tpu.memory_space<semaphore_mem>>
    %23 = tpu.memref_squeeze %22 : memref<1x!tpu.dma_semaphore, #tpu.memory_space<semaphore_mem>> -> memref<!tpu.dma_semaphore, #tpu.memory_space<semaphore_mem>>
    tpu.wait_dma2 semaphore(%23 : memref<!tpu.dma_semaphore, #tpu.memory_space<semaphore_mem>>) src(%arg5 : memref<1024x1024xbf16, #tpu.memory_space<any>>) dst(%arg16 : memref<1024x1024xbf16, #tpu.memory_space<vmem>>)
    %c0_10 = arith.constant 0 : index
    %c0_11 = arith.constant 0 : index
    %24 = vector.load %arg16[%c0_10, %c0_11] : memref<1024x1024xbf16, #tpu.memory_space<vmem>>, vector<1024x1024xbf16>
    %cst_12 = arith.constant dense<0.000000e+00> : vector<16x1024xf32>
    %25 = tpu.matmul %21, %24, %cst_12 {dimension_numbers = #tpu.dot_dimension_numbers<[1], [0], [0], [1], [0, 0, 1, 1], [], []>} : vector<16x1024xbf16>, vector<1024x1024xbf16>, vector<16x1024xf32> -> vector<16x1024xf32>
    %c0_13 = arith.constant 0 : index
    %c0_14 = arith.constant 0 : index
    %26 = vector.load %arg6[%c0_13, %c0_14] : memref<1x1024xf32, #tpu.memory_space<vmem>>, vector<1x1024xf32>
    %27 = vector.broadcast %26 : vector<1x1024xf32> to vector<16x1024xf32>
    %28 = arith.mulf %25, %27 : vector<16x1024xf32>
    %c0_15 = arith.constant 0 : index
    %c0_16 = arith.constant 0 : index
    %29 = vector.load %arg7[%c0_15, %c0_16] : memref<1x1024xf32, #tpu.memory_space<vmem>>, vector<1x1024xf32>
    %30 = vector.broadcast %29 : vector<1x1024xf32> to vector<16x1024xf32>
    %31 = arith.addf %28, %30 : vector<16x1024xf32>
    %cst_17 = arith.constant 0.000000e+00 : f32
    %32 = vector.broadcast %cst_17 : f32 to vector<16x1024xf32>
    %33 = arith.maximumf %31, %32 : vector<16x1024xf32>
    %34 = arith.truncf %33 : vector<16x1024xf32> to vector<16x1024xbf16>
    %c2_i32_18 = arith.constant 2 : i32
    %35 = tpu.memref_slice %arg19[%c2_i32_18] : memref<4x!tpu.dma_semaphore, #tpu.memory_space<semaphore_mem>> -> memref<1x!tpu.dma_semaphore, #tpu.memory_space<semaphore_mem>>
    %36 = tpu.memref_squeeze %35 : memref<1x!tpu.dma_semaphore, #tpu.memory_space<semaphore_mem>> -> memref<!tpu.dma_semaphore, #tpu.memory_space<semaphore_mem>>
    tpu.wait_dma2 semaphore(%36 : memref<!tpu.dma_semaphore, #tpu.memory_space<semaphore_mem>>) src(%arg8 : memref<1024x512xbf16, #tpu.memory_space<any>>) dst(%arg17 : memref<1024x512xbf16, #tpu.memory_space<vmem>>)
    %c0_19 = arith.constant 0 : index
    %c0_20 = arith.constant 0 : index
    %37 = vector.load %arg17[%c0_19, %c0_20] : memref<1024x512xbf16, #tpu.memory_space<vmem>>, vector<1024x512xbf16>
    %cst_21 = arith.constant dense<0.000000e+00> : vector<16x512xf32>
    %38 = tpu.matmul %34, %37, %cst_21 {dimension_numbers = #tpu.dot_dimension_numbers<[1], [0], [0], [1], [0, 0, 1, 1], [], []>} : vector<16x1024xbf16>, vector<1024x512xbf16>, vector<16x512xf32> -> vector<16x512xf32>
    %c0_22 = arith.constant 0 : index
    %c0_23 = arith.constant 0 : index
    %39 = vector.load %arg9[%c0_22, %c0_23] : memref<1x512xf32, #tpu.memory_space<vmem>>, vector<1x512xf32>
    %40 = vector.broadcast %39 : vector<1x512xf32> to vector<16x512xf32>
    %41 = arith.mulf %38, %40 : vector<16x512xf32>
    %c0_24 = arith.constant 0 : index
    %c0_25 = arith.constant 0 : index
    %42 = vector.load %arg10[%c0_24, %c0_25] : memref<1x512xf32, #tpu.memory_space<vmem>>, vector<1x512xf32>
    %43 = vector.broadcast %42 : vector<1x512xf32> to vector<16x512xf32>
    %44 = arith.addf %41, %43 : vector<16x512xf32>
    %cst_26 = arith.constant 0.000000e+00 : f32
    %45 = vector.broadcast %cst_26 : f32 to vector<16x512xf32>
    %46 = arith.maximumf %44, %45 : vector<16x512xf32>
    %47 = arith.truncf %46 : vector<16x512xf32> to vector<16x512xbf16>
    %c3_i32_27 = arith.constant 3 : i32
    %48 = tpu.memref_slice %arg19[%c3_i32_27] : memref<4x!tpu.dma_semaphore, #tpu.memory_space<semaphore_mem>> -> memref<1x!tpu.dma_semaphore, #tpu.memory_space<semaphore_mem>>
    %49 = tpu.memref_squeeze %48 : memref<1x!tpu.dma_semaphore, #tpu.memory_space<semaphore_mem>> -> memref<!tpu.dma_semaphore, #tpu.memory_space<semaphore_mem>>
    tpu.wait_dma2 semaphore(%49 : memref<!tpu.dma_semaphore, #tpu.memory_space<semaphore_mem>>) src(%arg11 : memref<512x128xbf16, #tpu.memory_space<any>>) dst(%arg18 : memref<512x128xbf16, #tpu.memory_space<vmem>>)
    %c0_28 = arith.constant 0 : index
    %c0_29 = arith.constant 0 : index
    %50 = vector.load %arg18[%c0_28, %c0_29] : memref<512x128xbf16, #tpu.memory_space<vmem>>, vector<512x128xbf16>
    %cst_30 = arith.constant dense<0.000000e+00> : vector<16x128xf32>
    %51 = tpu.matmul %47, %50, %cst_30 {dimension_numbers = #tpu.dot_dimension_numbers<[1], [0], [0], [1], [0, 0, 1, 1], [], []>} : vector<16x512xbf16>, vector<512x128xbf16>, vector<16x128xf32> -> vector<16x128xf32>
    %c0_31 = arith.constant 0 : index
    %c0_32 = arith.constant 0 : index
    %52 = vector.load %arg12[%c0_31, %c0_32] : memref<1x128xf32, #tpu.memory_space<vmem>>, vector<1x128xf32>
    %53 = vector.broadcast %52 : vector<1x128xf32> to vector<16x128xf32>
    %54 = arith.mulf %51, %53 : vector<16x128xf32>
    %c0_33 = arith.constant 0 : index
    %c0_34 = arith.constant 0 : index
    %55 = vector.load %arg13[%c0_33, %c0_34] : memref<1x128xf32, #tpu.memory_space<vmem>>, vector<1x128xf32>
    %56 = vector.broadcast %55 : vector<1x128xf32> to vector<16x128xf32>
    %57 = arith.addf %54, %56 : vector<16x128xf32>
    %58 = arith.truncf %57 : vector<16x128xf32> to vector<16x128xbf16>
    %c0_35 = arith.constant 0 : index
    %c0_36 = arith.constant 0 : index
    %59 = vector.load %arg14[%c0_35, %c0_36] : memref<16x128xbf16, #tpu.memory_space<vmem>>, vector<16x128xbf16>
    tpu.vector_store %arg14[%c0_35, %c0_36], %58 {strides = array<i32>} : memref<16x128xbf16, #tpu.memory_space<vmem>>, vector<16x128xbf16>,
    return
  }
  func.func @transform_0(%arg0: i32) -> (i32, i32) {
    %c0_i32 = arith.constant 0 : i32
    %c0_i32_0 = arith.constant 0 : i32
    %c0_i32_1 = arith.constant 0 : i32
    return %c0_i32, %c0_i32_0 : i32, i32
  }
  func.func @transform_2(%arg0: i32) -> (i32, i32) {
    %c0_i32 = arith.constant 0 : i32
    %c0_i32_0 = arith.constant 0 : i32
    %c0_i32_1 = arith.constant 0 : i32
    return %c0_i32, %c0_i32_0 : i32, i32
  }
  func.func @transform_3(%arg0: i32) -> (i32, i32) {
    %c0_i32 = arith.constant 0 : i32
    %c0_i32_0 = arith.constant 0 : i32
    %c0_i32_1 = arith.constant 0 : i32
    return %c0_i32, %c0_i32_0 : i32, i32
  }
  func.func @transform_5(%arg0: i32) -> (i32, i32) {
    %c0_i32 = arith.constant 0 : i32
    %c0_i32_0 = arith.constant 0 : i32
    %c0_i32_1 = arith.constant 0 : i32
    return %c0_i32, %c0_i32_0 : i32, i32
  }
  func.func @transform_6(%arg0: i32) -> (i32, i32) {
    %c0_i32 = arith.constant 0 : i32
    %c0_i32_0 = arith.constant 0 : i32
    %c0_i32_1 = arith.constant 0 : i32
    return %c0_i32, %c0_i32_0 : i32, i32
  }
  func.func @transform_8(%arg0: i32) -> (i32, i32) {
    %c0_i32 = arith.constant 0 : i32
    %c0_i32_0 = arith.constant 0 : i32
    %c0_i32_1 = arith.constant 0 : i32
    return %c0_i32, %c0_i32_0 : i32, i32
  }
  func.func @transform_9(%arg0: i32) -> (i32, i32) {
    %c0_i32 = arith.constant 0 : i32
    %c0_i32_0 = arith.constant 0 : i32
    %c0_i32_1 = arith.constant 0 : i32
    return %c0_i32, %c0_i32_0 : i32, i32
  }
  func.func @transform_11(%arg0: i32) -> (i32, i32) {
    %c0_i32 = arith.constant 0 : i32
    %c0_i32_0 = arith.constant 0 : i32
    %c0_i32_1 = arith.constant 0 : i32
    return %c0_i32, %c0_i32_0 : i32, i32
  }
  func.func @transform_12(%arg0: i32) -> (i32, i32) {
    %c0_i32 = arith.constant 0 : i32
    %c0_i32_0 = arith.constant 0 : i32
    %c0_i32_1 = arith.constant 0 : i32
    return %c0_i32, %c0_i32_0 : i32, i32
  }
  func.func @transform_13(%arg0: i32) -> (i32, i32) {
    %c0_i32 = arith.constant 0 : i32
    %c0_i32_0 = arith.constant 0 : i32
    %c0_i32_1 = arith.constant 0 : i32
    return %c0_i32, %c0_i32_0 : i32, i32
  }
}

</mosaic_0001>

<bundles_post_ra>
// kernel: tpu_custom_call.1
= control target key start
LH: loop header
LB: loop body
LE: loop exit
PB: predicated region body
PF: predicated region fallthrough
CT: control target
= control target key end

     0   :  { %18 = vsyncpa [#allocation8], 0  ;;  %s10732_s0 = inlined_call_operand.hbm [shape: bf16[16,512], index: 0, kind: input, shape index: {}]   ;;  %s10733_s1 = inlined_call_operand.hbm [shape: bf16[512,1024], index: 1, kind: input, shape index: {}]   ;;  %s10734_s2 = inlined_call_operand.hbm [shape: f32[1,1024], index: 2, kind: input, shape index: {}]   ;;  %s10735_s3 = inlined_call_operand.hbm [shape: f32[1,1024], index: 3, kind: input, shape index: {}]   ;;  %s10736_s4 = inlined_call_operand.hbm [shape: bf16[1024,1024], index: 4, kind: input, shape index: {}]   ;;  %s10737_s5 = inlined_call_operand.hbm [shape: f32[1,1024], index: 5, kind: input, shape index: {}]   ;;  %s10738_s6 = inlined_call_operand.hbm [shape: f32[1,1024], index: 6, kind: input, shape index: {}]   ;;  %s10739_s7 = inlined_call_operand.hbm [shape: bf16[1024,512], index: 7, kind: input, shape index: {}]   ;;  %s10740_s8 = inlined_call_operand.hbm [shape: f32[1,512], index: 8, kind: input, shape index: {}]   ;;  %s10741_s9 = inlined_call_operand.hbm [shape: f32[1,512], index: 9, kind: input, shape index: {}]   ;;  %s10742_s10 = inlined_call_operand.hbm [shape: bf16[512,128], index: 10, kind: input, shape index: {}]   ;;  %s10743_s11 = inlined_call_operand.hbm [shape: f32[1,128], index: 11, kind: input, shape index: {}]   ;;  %s10744_s12 = inlined_call_operand.hbm [shape: f32[1,128], index: 12, kind: input, shape index: {}]   ;;  %s10745_s13 = inlined_call_operand.hbm [shape: bf16[16,128], index: 13, kind: output, shape index: {}]  }
   0x1   :  { %19 = vsyncpa [#allocation11], 0 }
   0x2   :  { %20 = vsyncpa [#allocation14], 0 }
   0x3   :  { %21 = vsyncpa [#allocation17], 0 }
   0x4   :  { %22 = vsyncpa [#allocation20], 0 }
   0x5   :  { %23 = vsyncpa [#allocation9], 0  ;;  %s10370_s25 = smov [#allocation10]   ;;  %s10371_s27 = smov [#allocation13]  }
   0x6   :  { %s42_s26 = sshll.u32 %s10370_s25, 4  ;;  %s62_s28 = sshll.u32 %s10371_s27, 4  ;;  %s43_s26 = int_to_ptr.vmem [resolvable:$true] %s42_s26  ;;  %s63_s28 = int_to_ptr.vmem [resolvable:$true] %s62_s28 }
   0x7   :  { %s10078_s29 = scalar_lea.vmem %s43_s26, 128  ;;  %p10083_p1 = scmp.lt.s32.totalorder %s43_s26, %s43_s26 }
   0x8   :  { %p10079_p0 = scmp.ne.s32.totalorder %s43_s26, %s10078_s29  ;;  %p10084_p2 = scmp.lt.s32.totalorder %s10078_s29, %s10078_s29 }
   0xa   :  { %p10085_p3 = por %p10084_p2, %p10083_p1 }
   0xc   :  { %p10086_p4 = pnand %p10085_p3, %p10079_p0 }
   0xe   :  { %10089 = shalt.err (!%p10086_p4)
}
   0xf   :  { %45 = dma.hbm_to_vmem [thread:$0]  %s10734_s2, 128, %s43_s26, [#allocation11]  }
  0x10   :  { %s10098_s15 = scalar_lea.vmem %s63_s28, 128  ;;  %p10103_p6 = scmp.lt.s32.totalorder %s63_s28, %s63_s28 }
  0x11   :  { %p10099_p5 = scmp.ne.s32.totalorder %s63_s28, %s10098_s15  ;;  %p10104_p7 = scmp.lt.s32.totalorder %s10098_s15, %s10098_s15 }
  0x13   :  { %p10105_p8 = por %p10104_p7, %p10103_p6 }
  0x15   :  { %p10106_p9 = pnand %p10105_p8, %p10099_p5 }
  0x17   :  { %10109 = shalt.err (!%p10106_p9)
}
  0x18   :  { %65 = dma.hbm_to_vmem [thread:$0]  %s10737_s5, 128, %s63_s28, [#allocation14]  }
  0x19   :  { %s10372_s18 = smov [#allocation16]   ;;  %s10373_s20 = smov [#allocation19]  }
  0x1a   :  { %s82_s19 = sshll.u32 %s10372_s18, 4  ;;  %s102_s21 = sshll.u32 %s10373_s20, 4  ;;  %s83_s19 = int_to_ptr.vmem [resolvable:$true] %s82_s19  ;;  %s103_s21 = int_to_ptr.vmem [resolvable:$true] %s102_s21 }
  0x1b   :  { %s10118_s22 = scalar_lea.vmem %s83_s19, 64  ;;  %p10123_p11 = scmp.lt.s32.totalorder %s83_s19, %s83_s19 }
  0x1c   :  { %p10119_p10 = scmp.ne.s32.totalorder %s83_s19, %s10118_s22  ;;  %p10124_p12 = scmp.lt.s32.totalorder %s10118_s22, %s10118_s22 }
  0x1e   :  { %p10125_p13 = por %p10124_p12, %p10123_p11 }
  0x20   :  { %p10126_p0 = pnand %p10125_p13, %p10119_p10 }
  0x22   :  { %10129 = shalt.err (!%p10126_p0)
}
  0x23   :  { %85 = dma.hbm_to_vmem [thread:$0]  %s10740_s8, 64, %s83_s19, [#allocation17]  }
  0x24   :  { %s10138_s24 = scalar_lea.vmem %s103_s21, 16  ;;  %s10142_s5 = scalar_lea.vmem %s103_s21, 32 }
  0x25   :  { %p10139_p1 = scmp.ne.s32.totalorder %s103_s21, %s10138_s24  ;;  %p10143_p2 = scmp.lt.s32.totalorder %s103_s21, %s103_s21 }
  0x26   :  { %p10144_p3 = scmp.lt.s32.totalorder %s10142_s5, %s10138_s24 }
  0x28   :  { %p10145_p4 = por %p10144_p3, %p10143_p2 }
  0x2a   :  { %p10146_p5 = pnand %p10145_p4, %p10139_p1 }
  0x2c   :  { %10149 = shalt.err (!%p10146_p5)
}
  0x2d   :  { %105 = dma.hbm_to_vmem [thread:$0]  %s10743_s11, 16, %s103_s21, [#allocation20]  }
  0x2e   :  { %s10374_s27 = smov [#allocation7]  }
  0x2f   :  { %s29_s28 = sshll.u32 %s10374_s27, 4  ;;  %s30_s28 = int_to_ptr.vmem [resolvable:$true] %s29_s28 }
  0x30   :  { %s10158_s29 = scalar_lea.vmem %s30_s28, 512  ;;  %p10163_p7 = scmp.lt.s32.totalorder %s30_s28, %s30_s28 }
  0x31   :  { %p10159_p6 = scmp.ne.s32.totalorder %s30_s28, %s10158_s29  ;;  %p10164_p8 = scmp.lt.s32.totalorder %s10158_s29, %s10158_s29 }
  0x33   :  { %p10165_p9 = por %p10164_p8, %p10163_p7 }
  0x35   :  { %p10166_p10 = pnand %p10165_p9, %p10159_p6 }
  0x37   :  { %10169 = shalt.err (!%p10166_p10)
}
  0x38   :  { %s10375_s8 = smov 256   ;;  %s10376_s30 = smov 16  }
  0x39   :  { %35 = dma.hbm_to_vmem [thread:$0]  %s10732_s0, 512, %s30_s28, [#allocation8], %s10375_s8, %s10375_s8, %s10376_s30  }
  0x3a   :  { %s10377_s16 = smov [#allocation12]   ;;  %s10378_s11 = smov [#allocation15]  }
  0x3b   :  { %s52_s17 = sshll.u32 %s10377_s16, 4  ;;  %s72_s18 = sshll.u32 %s10378_s11, 4  ;;  %s53_s17 = int_to_ptr.vmem [resolvable:$true] %s52_s17  ;;  %s73_s18 = int_to_ptr.vmem [resolvable:$true] %s72_s18 }
  0x3c   :  { %s10178_s19 = scalar_lea.vmem %s53_s17, 128  ;;  %p10183_p12 = scmp.lt.s32.totalorder %s53_s17, %s53_s17 }
  0x3d   :  { %p10179_p11 = scmp.ne.s32.totalorder %s53_s17, %s10178_s19  ;;  %p10184_p13 = scmp.lt.s32.totalorder %s10178_s19, %s10178_s19 }
  0x3f   :  { %p10185_p0 = por %p10184_p13, %p10183_p12 }
  0x41   :  { %p10186_p1 = pnand %p10185_p0, %p10179_p11 }
  0x43   :  { %10189 = shalt.err (!%p10186_p1)
}
  0x44   :  { %55 = dma.hbm_to_vmem [thread:$0]  %s10735_s3, 128, %s53_s17, [#allocation11]  }
  0x45   :  { %s10198_s22 = scalar_lea.vmem %s73_s18, 128  ;;  %p10203_p3 = scmp.lt.s32.totalorder %s73_s18, %s73_s18 }
  0x46   :  { %p10199_p2 = scmp.ne.s32.totalorder %s73_s18, %s10198_s22  ;;  %p10204_p4 = scmp.lt.s32.totalorder %s10198_s22, %s10198_s22 }
  0x48   :  { %p10205_p5 = por %p10204_p4, %p10203_p3 }
  0x4a   :  { %p10206_p6 = pnand %p10205_p5, %p10199_p2 }
  0x4c   :  { %10209 = shalt.err (!%p10206_p6)
}
  0x4d   :  { %75 = dma.hbm_to_vmem [thread:$0]  %s10738_s6, 128, %s73_s18, [#allocation14]  }
  0x4e   :  { %s10379_s23 = smov [#allocation18]   ;;  %s10380_s5 = smov [#allocation21]  }
  0x4f   :  { %s92_s24 = sshll.u32 %s10379_s23, 4  ;;  %s112_s25 = sshll.u32 %s10380_s5, 4  ;;  %s93_s24 = int_to_ptr.vmem [resolvable:$true] %s92_s24  ;;  %s113_s25 = int_to_ptr.vmem [resolvable:$true] %s112_s25 }
  0x50   :  { %s10218_s26 = scalar_lea.vmem %s93_s24, 64  ;;  %p10223_p8 = scmp.lt.s32.totalorder %s93_s24, %s93_s24 }
  0x51   :  { %p10219_p7 = scmp.ne.s32.totalorder %s93_s24, %s10218_s26  ;;  %p10224_p9 = scmp.lt.s32.totalorder %s10218_s26, %s10218_s26 }
  0x53   :  { %p10225_p10 = por %p10224_p9, %p10223_p8 }
  0x55   :  { %p10226_p11 = pnand %p10225_p10, %p10219_p7 }
  0x57   :  { %10229 = shalt.err (!%p10226_p11)
}
  0x58   :  { %95 = dma.hbm_to_vmem [thread:$0]  %s10741_s9, 64, %s93_s24, [#allocation17]  }
  0x59   :  { %s10238_s28 = scalar_lea.vmem %s113_s25, 16  ;;  %s10242_s6 = scalar_lea.vmem %s113_s25, 32 }
  0x5a   :  { %p10239_p12 = scmp.ne.s32.totalorder %s113_s25, %s10238_s28  ;;  %p10243_p13 = scmp.lt.s32.totalorder %s113_s25, %s113_s25 }
  0x5b   :  { %p10244_p0 = scmp.lt.s32.totalorder %s10242_s6, %s10238_s28 }
  0x5d   :  { %p10245_p1 = por %p10244_p0, %p10243_p13 }
  0x5f   :  { %p10246_p2 = pnand %p10245_p1, %p10239_p12 }
  0x61   :  { %10249 = shalt.err (!%p10246_p2)
}
  0x62   :  { %115 = dma.hbm_to_vmem [thread:$0]  %s10744_s12, 16, %s113_s25, [#allocation20]  }
  0x63   :  { %10350 = dma.done.wait [#allocation8], 512  }
  0x64   :  { %10351 = vsyncadd [#allocation8], 4294966784 }
  0x65   :  { %10352 = dma.done.wait [#allocation11], 256  }
  0x66   :  { %10353 = vsyncadd [#allocation11], 4294967040 }
  0x67   :  { %10354 = dma.done.wait [#allocation14], 256  }
  0x68   :  { %10355 = vsyncadd [#allocation14], 4294967040 }
  0x69   :  { %10356 = dma.done.wait [#allocation17], 128  }
  0x6a   :  { %10357 = vsyncadd [#allocation17], 4294967168 }
  0x6b   :  { %10358 = dma.done.wait [#allocation20], 32  }
  0x6c   :  { %10359 = vsyncadd [#allocation20], 4294967264  ;;  %s10381_s9 = smov [#allocation2]   ;;  %s10382_s14 = smov [#allocation3]  }
  0x6d   :  { %s151_s30 = sshll.u32 %s10381_s9, 4  ;;  %s163_s15 = sshll.u32 %s10382_s14, 4  ;;  %s152_s30 = int_to_ptr.vmem [resolvable:$true] %s151_s30  ;;  %s164_s15 = int_to_ptr.vmem [resolvable:$true] %s163_s15 }
  0x6e   :  { %s10258_s16 = scalar_lea.vmem %s152_s30, 32768  ;;  %p10263_p4 = scmp.lt.s32.totalorder %s152_s30, %s152_s30 }
  0x6f   :  { %p10259_p3 = scmp.ne.s32.totalorder %s152_s30, %s10258_s16  ;;  %p10264_p5 = scmp.lt.s32.totalorder %s10258_s16, %s10258_s16 }
  0x71   :  { %p10265_p6 = por %p10264_p5, %p10263_p4 }
  0x73   :  { %p10266_p7 = pnand %p10265_p6, %p10259_p3 }
  0x75   :  { %10269 = shalt.err (!%p10266_p7)  }
  0x76   :  { %154 = dma.hbm_to_vmem [thread:$0]  %s10733_s1, 32768, %s152_s30, [#allocation6] }
  0x77   :  { %s10278_s11 = scalar_lea.vmem %s164_s15, 65536  ;;  %p10283_p9 = scmp.lt.s32.totalorder %s164_s15, %s164_s15 }
  0x78   :  { %p10279_p8 = scmp.ne.s32.totalorder %s164_s15, %s10278_s11  ;;  %p10284_p10 = scmp.lt.s32.totalorder %s10278_s11, %s10278_s11 }
  0x7a   :  { %p10285_p11 = por %p10284_p10, %p10283_p9 }
  0x7c   :  { %p10286_p12 = pnand %p10285_p11, %p10279_p8 }
  0x7e   :  { %10289 = shalt.err (!%p10286_p12)  }
  0x7f   :  { %166 = dma.hbm_to_vmem [thread:$0]  %s10736_s4, 65536, %s164_s15, [#allocation6 + $0x1]  ;;  %v10491_v0 = vld [vmem:[#allocation7] sm:$0xff]  ;;  %v10493_v1 = vld [vmem:[#allocation7 + $0x8] sm:$0xff]  ;;  %v10495_v2 = vld [vmem:[#allocation7 + $0x10] sm:$0xff] }
  0x80   :  { %s10383_s20 = smov [#allocation4]   ;;  %s10384_s22 = smov [#allocation5]   ;;  %v10497_v3 = vld [vmem:[#allocation7 + $0x18] sm:$0xff] }
  0x81   :  { %s175_s21 = sshll.u32 %s10383_s20, 4  ;;  %s187_s0 = sshll.u32 %s10384_s22, 4  ;;  %s176_s21 = int_to_ptr.vmem [resolvable:$true] %s175_s21  ;;  %s188_s0 = int_to_ptr.vmem [resolvable:$true] %s187_s0 }
  0x82   :  { %s10298_s1 = scalar_lea.vmem %s176_s21, 32768  ;;  %p10303_p0 = scmp.lt.s32.totalorder %s176_s21, %s176_s21 }
  0x83   :  { %p10299_p13 = scmp.ne.s32.totalorder %s176_s21, %s10298_s1  ;;  %p10304_p1 = scmp.lt.s32.totalorder %s10298_s1, %s10298_s1 }
  0x85   :  { %p10305_p2 = por %p10304_p1, %p10303_p0 }
  0x87   :  { %p10306_p3 = pnand %p10305_p2, %p10299_p13 }
  0x89   :  { %10309 = shalt.err (!%p10306_p3)  }
  0x8a   :  { %178 = dma.hbm_to_vmem [thread:$0]  %s10739_s7, 32768, %s176_s21, [#allocation6 + $0x2] }
  0x8b   :  { %s10318_s23 = scalar_lea.vmem %s188_s0, 4096  ;;  %p10323_p5 = scmp.lt.s32.totalorder %s188_s0, %s188_s0 }
  0x8c   :  { %p10319_p4 = scmp.ne.s32.totalorder %s188_s0, %s10318_s23  ;;  %p10324_p6 = scmp.lt.s32.totalorder %s10318_s23, %s10318_s23 }
  0x8e   :  { %p10325_p7 = por %p10324_p6, %p10323_p5 }
  0x90   :  { %p10326_p8 = pnand %p10325_p7, %p10319_p4 }
  0x92   :  { %10329 = shalt.err (!%p10326_p8)  }
  0x93   :  { %190 = dma.hbm_to_vmem [thread:$0]  %s10742_s10, 4096, %s188_s0, [#allocation6 + $0x3] }
  0x94   :  { %10360 = dma.done.wait [#allocation6], 32768 }
  0x95   :  { %10361 = vsyncadd [#allocation6], 4294934528  ;;  %v10507_v4 = vcombine.high %v10491_v0, %v10495_v2  ;;  %v10511_v5 = vcombine.high %v10493_v1, %v10497_v3  ;;  %v255_v6 = vld [vmem:[#allocation2 + $0x1c0] sm:$0xff] }
  0x96   :  { %v259_v7 = vld [vmem:[#allocation2 + $0x1e0] sm:$0xff] }
  0x97   :  { %1787 = vmatprep.mubr.bf16.mxu0 %v10507_v4  ;;  %1830 = vmatprep.mubr.bf16.mxu1 %v10511_v5  ;;  %v383_v8 = vld [vmem:[#allocation2 + $0x5c0] sm:$0xff]  ;;  %v8576_v9 = vcombine.high %v255_v6, %v259_v7  ;;  %v8575_v11 = vcombine.low %v255_v6, %v259_v7 }
  0x98   :  { %v387_v10 = vld [vmem:[#allocation2 + $0x5e0] sm:$0xff] }
  0x99   :  { %v247_v12 = vld [vmem:[#allocation2 + $0x180] sm:$0xff]  ;;  %v8704_v14 = vcombine.high %v383_v8, %v387_v10  ;;  %v8703_v15 = vcombine.low %v383_v8, %v387_v10  ;;  %1755 = vmatprep.subr.bf16.mxu0 %v8576_v9 }
  0x9a   :  { %v251_v13 = vld [vmem:[#allocation2 + $0x1a0] sm:$0xff]  ;;  %1756 = vmatpush1.bf16.msra.mxu0 %v8575_v11 }
  0x9b   :  { %v8568_v16 = vcombine.high %v247_v12, %v251_v13  ;;  %v375_v17 = vld [vmem:[#allocation2 + $0x580] sm:$0xff]  ;;  %1798 = vmatprep.subr.bf16.mxu1 %v8704_v14  ;;  %v8567_v24 = vcombine.low %v247_v12, %v251_v13 }
  0x9c   :  { %v379_v18 = vld [vmem:[#allocation2 + $0x5a0] sm:$0xff]  ;;  %1799 = vmatpush1.bf16.msra.mxu1 %v8703_v15 }
  0x9d   :  { %v239_v19 = vld [vmem:[#allocation2 + $0x140] sm:$0xff]  ;;  %v8696_v20 = vcombine.high %v375_v17, %v379_v18  ;;  %1757 = vmatprep.subr.bf16.mxu0 %v8568_v16  ;;  %v8695_v25 = vcombine.low %v375_v17, %v379_v18 }
  0x9e   :  { %v243_v21 = vld [vmem:[#allocation2 + $0x160] sm:$0xff]  ;;  %1758 = vmatpush1.bf16.msra.mxu0 %v8567_v24 }
  0x9f   :  { %v367_v22 = vld [vmem:[#allocation2 + $0x540] sm:$0xff]  ;;  %v8560_v26 = vcombine.high %v239_v19, %v243_v21  ;;  %1800 = vmatprep.subr.bf16.mxu1 %v8696_v20  ;;  %v8559_v32 = vcombine.low %v239_v19, %v243_v21 }
  0xa0   :  { %v371_v23 = vld [vmem:[#allocation2 + $0x560] sm:$0xff]  ;;  %1801 = vmatpush1.bf16.msra.mxu1 %v8695_v25 }
  0xa1   :  { %v8688_v27 = vcombine.high %v367_v22, %v371_v23  ;;  %v231_v28 = vld [vmem:[#allocation2 + $0x100] sm:$0xff]  ;;  %1759 = vmatprep.subr.bf16.mxu0 %v8560_v26  ;;  %v8687_v33 = vcombine.low %v367_v22, %v371_v23 }
  0xa2   :  { %v235_v29 = vld [vmem:[#allocation2 + $0x120] sm:$0xff]  ;;  %1760 = vmatpush1.bf16.msra.mxu0 %v8559_v32 }
  0xa3   :  { %v359_v30 = vld [vmem:[#allocation2 + $0x500] sm:$0xff]  ;;  %v8552_v34 = vcombine.high %v231_v28, %v235_v29  ;;  %1802 = vmatprep.subr.bf16.mxu1 %v8688_v27  ;;  %v8551_v40 = vcombine.low %v231_v28, %v235_v29 }
  0xa4   :  { %v363_v31 = vld [vmem:[#allocation2 + $0x520] sm:$0xff]  ;;  %1803 = vmatpush1.bf16.msra.mxu1 %v8687_v33 }
  0xa5   :  { %v8680_v35 = vcombine.high %v359_v30, %v363_v31  ;;  %v223_v36 = vld [vmem:[#allocation2 + $0xc0] sm:$0xff]  ;;  %1761 = vmatprep.subr.bf16.mxu0 %v8552_v34  ;;  %v8679_v41 = vcombine.low %v359_v30, %v363_v31 }
  0xa6   :  { %v227_v37 = vld [vmem:[#allocation2 + $0xe0] sm:$0xff]  ;;  %1762 = vmatpush1.bf16.msra.mxu0 %v8551_v40 }
  0xa7   :  { %v351_v38 = vld [vmem:[#allocation2 + $0x4c0] sm:$0xff]  ;;  %v8544_v42 = vcombine.high %v223_v36, %v227_v37  ;;  %1804 = vmatprep.subr.bf16.mxu1 %v8680_v35  ;;  %v8543_v48 = vcombine.low %v223_v36, %v227_v37 }
  0xa8   :  { %v355_v39 = vld [vmem:[#allocation2 + $0x4e0] sm:$0xff]  ;;  %1805 = vmatpush1.bf16.msra.mxu1 %v8679_v41 }
  0xa9   :  { %v8672_v43 = vcombine.high %v351_v38, %v355_v39  ;;  %v215_v44 = vld [vmem:[#allocation2 + $0x80] sm:$0xff]  ;;  %1763 = vmatprep.subr.bf16.mxu0 %v8544_v42  ;;  %v8671_v49 = vcombine.low %v351_v38, %v355_v39 }
  0xaa   :  { %v219_v45 = vld [vmem:[#allocation2 + $0xa0] sm:$0xff]  ;;  %1764 = vmatpush1.bf16.msra.mxu0 %v8543_v48 }
  0xab   :  { %v343_v46 = vld [vmem:[#allocation2 + $0x480] sm:$0xff]  ;;  %v8536_v50 = vcombine.high %v215_v44, %v219_v45  ;;  %1806 = vmatprep.subr.bf16.mxu1 %v8672_v43  ;;  %v8535_v56 = vcombine.low %v215_v44, %v219_v45 }
  0xac   :  { %v347_v47 = vld [vmem:[#allocation2 + $0x4a0] sm:$0xff]  ;;  %1807 = vmatpush1.bf16.msra.mxu1 %v8671_v49 }
  0xad   :  { %v8664_v51 = vcombine.high %v343_v46, %v347_v47  ;;  %v207_v52 = vld [vmem:[#allocation2 + $0x40] sm:$0xff]  ;;  %1765 = vmatprep.subr.bf16.mxu0 %v8536_v50  ;;  %v8663_v57 = vcombine.low %v343_v46, %v347_v47 }
  0xae   :  { %v211_v53 = vld [vmem:[#allocation2 + $0x60] sm:$0xff]  ;;  %1766 = vmatpush1.bf16.msra.mxu0 %v8535_v56 }
  0xaf   :  { %v335_v54 = vld [vmem:[#allocation2 + $0x440] sm:$0xff]  ;;  %v8528_v58 = vcombine.high %v207_v52, %v211_v53  ;;  %1808 = vmatprep.subr.bf16.mxu1 %v8664_v51  ;;  %v8527_v6 = vcombine.low %v207_v52, %v211_v53 }
  0xb0   :  { %v339_v55 = vld [vmem:[#allocation2 + $0x460] sm:$0xff]  ;;  %1809 = vmatpush1.bf16.msra.mxu1 %v8663_v57 }
  0xb1   :  { %v8656_v59 = vcombine.high %v335_v54, %v339_v55  ;;  %v199_v60 = vld [vmem:[#allocation2] sm:$0xff]  ;;  %1767 = vmatprep.subr.bf16.mxu0 %v8528_v58  ;;  %v8655_v7 = vcombine.low %v335_v54, %v339_v55 }
  0xb2   :  { %v203_v61 = vld [vmem:[#allocation2 + $0x20] sm:$0xff]  ;;  %1768 = vmatpush1.bf16.msra.mxu0 %v8527_v6 }
  0xb3   :  { %v327_v62 = vld [vmem:[#allocation2 + $0x400] sm:$0xff]  ;;  %v8520_v8 = vcombine.high %v199_v60, %v203_v61  ;;  %1810 = vmatprep.subr.bf16.mxu1 %v8656_v59  ;;  %v8519_v14 = vcombine.low %v199_v60, %v203_v61 }
  0xb4   :  { %v331_v63 = vld [vmem:[#allocation2 + $0x420] sm:$0xff]  ;;  %1811 = vmatpush1.bf16.msra.mxu1 %v8655_v7 }
  0xb5   :  { %v8648_v9 = vcombine.high %v327_v62, %v331_v63  ;;  %v319_v10 = vld [vmem:[#allocation2 + $0x3c0] sm:$0xff]  ;;  %1769 = vmatprep.subr.bf16.mxu0 %v8520_v8  ;;  %v8647_v15 = vcombine.low %v327_v62, %v331_v63 }
  0xb6   :  { %v323_v11 = vld [vmem:[#allocation2 + $0x3e0] sm:$0xff]  ;;  %1770 = vmatpush1.bf16.msra.mxu0 %v8519_v14 }
  0xb7   :  { %v447_v12 = vld [vmem:[#allocation2 + $0x7c0] sm:$0xff]  ;;  %v8640_v16 = vcombine.high %v319_v10, %v323_v11  ;;  %1812 = vmatprep.subr.bf16.mxu1 %v8648_v9  ;;  %v8639_v22 = vcombine.low %v319_v10, %v323_v11 }
  0xb8   :  { %v451_v13 = vld [vmem:[#allocation2 + $0x7e0] sm:$0xff]  ;;  %1813 = vmatpush1.bf16.msra.mxu1 %v8647_v15 }
  0xb9   :  { %v8768_v17 = vcombine.high %v447_v12, %v451_v13  ;;  %v311_v18 = vld [vmem:[#allocation2 + $0x380] sm:$0xff]  ;;  %1771 = vmatprep.subr.bf16.mxu0 %v8640_v16  ;;  %v8767_v23 = vcombine.low %v447_v12, %v451_v13  ;;  %v256_v16 = vld [vmem:[#allocation2 + $0x1c8] sm:$0xff] }
  0xba   :  { %v315_v19 = vld [vmem:[#allocation2 + $0x3a0] sm:$0xff]  ;;  %1772 = vmatpush2.bf16.msra.mxu0 %v8639_v22 }
  0xbb   :  { %v439_v20 = vld [vmem:[#allocation2 + $0x780] sm:$0xff]  ;;  %v8632_v24 = vcombine.high %v311_v18, %v315_v19  ;;  %1814 = vmatprep.subr.bf16.mxu1 %v8768_v17  ;;  %v8631_v30 = vcombine.low %v311_v18, %v315_v19  ;;  %v260_v17 = vld [vmem:[#allocation2 + $0x1e8] sm:$0xff] }
  0xbc   :  { %v443_v21 = vld [vmem:[#allocation2 + $0x7a0] sm:$0xff]  ;;  %1815 = vmatpush2.bf16.msra.mxu1 %v8767_v23  ;;  %v384_v18 = vld [vmem:[#allocation2 + $0x5c8] sm:$0xff]  ;;  %v8578_v22 = vcombine.high %v256_v16, %v260_v17 }
  0xbd   :  { %v8760_v25 = vcombine.high %v439_v20, %v443_v21  ;;  %v303_v26 = vld [vmem:[#allocation2 + $0x340] sm:$0xff]  ;;  %1773 = vmatprep.subr.bf16.mxu0 %v8632_v24  ;;  %v8759_v31 = vcombine.low %v439_v20, %v443_v21  ;;  %v388_v19 = vld [vmem:[#allocation2 + $0x5e8] sm:$0xff] }
  0xbe   :  { %v307_v27 = vld [vmem:[#allocation2 + $0x360] sm:$0xff]  ;;  %1774 = vmatpush2.bf16.msra.mxu0 %v8631_v30  ;;  %v8706_v23 = vcombine.high %v384_v18, %v388_v19  ;;  %v248_v24 = vld [vmem:[#allocation2 + $0x188] sm:$0xff]  ;;  %v8577_v30 = vcombine.low %v256_v16, %v260_v17 }
  0xbf   :  { %v431_v28 = vld [vmem:[#allocation2 + $0x740] sm:$0xff]  ;;  %v8624_v32 = vcombine.high %v303_v26, %v307_v27  ;;  %1816 = vmatprep.subr.bf16.mxu1 %v8760_v25  ;;  %v8623_v38 = vcombine.low %v303_v26, %v307_v27  ;;  %v252_v25 = vld [vmem:[#allocation2 + $0x1a8] sm:$0xff]  ;;  %v10517_v26 = vcombine.low %v10491_v0, %v10495_v2 }
  0xc0   :  { %v435_v29 = vld [vmem:[#allocation2 + $0x760] sm:$0xff]  ;;  %1817 = vmatpush2.bf16.msra.mxu1 %v8759_v31  ;;  %v376_v27 = vld [vmem:[#allocation2 + $0x588] sm:$0xff]  ;;  %v8705_v31 = vcombine.low %v384_v18, %v388_v19 }
  0xc1   :  { %v8752_v33 = vcombine.high %v431_v28, %v435_v29  ;;  %v295_v34 = vld [vmem:[#allocation2 + $0x300] sm:$0xff]  ;;  %1775 = vmatprep.subr.bf16.mxu0 %v8624_v32  ;;  %v8751_v39 = vcombine.low %v431_v28, %v435_v29  ;;  %v380_v28 = vld [vmem:[#allocation2 + $0x5a8] sm:$0xff]  ;;  %v10521_v29 = vcombine.low %v10493_v1, %v10497_v3  ;;  %v8570_v32 = vcombine.high %v248_v24, %v252_v25 }
  0xc2   :  { %v299_v35 = vld [vmem:[#allocation2 + $0x320] sm:$0xff]  ;;  %1776 = vmatpush2.bf16.msra.mxu0 %v8623_v38  ;;  %v368_v0 = vld [vmem:[#allocation2 + $0x548] sm:$0xff]  ;;  %v8697_v1 = vcombine.low %v376_v27, %v380_v28 }
  0xc3   :  { %v423_v36 = vld [vmem:[#allocation2 + $0x700] sm:$0xff]  ;;  %v8616_v40 = vcombine.high %v295_v34, %v299_v35  ;;  %1818 = vmatprep.subr.bf16.mxu1 %v8752_v33  ;;  %v8615_v46 = vcombine.low %v295_v34, %v299_v35  ;;  %v8698_v33 = vcombine.high %v376_v27, %v380_v28  ;;  %v240_v34 = vld [vmem:[#allocation2 + $0x148] sm:$0xff] }
  0xc4   :  { %v427_v37 = vld [vmem:[#allocation2 + $0x720] sm:$0xff]  ;;  %1819 = vmatpush2.bf16.msra.mxu1 %v8751_v39  ;;  %v244_v35 = vld [vmem:[#allocation2 + $0x168] sm:$0xff] }
  0xc5   :  { %v8744_v41 = vcombine.high %v423_v36, %v427_v37  ;;  %v287_v42 = vld [vmem:[#allocation2 + $0x2c0] sm:$0xff]  ;;  %1777 = vmatprep.subr.bf16.mxu0 %v8616_v40  ;;  %v8743_v47 = vcombine.low %v423_v36, %v427_v37  ;;  %v372_v2 = vld [vmem:[#allocation2 + $0x568] sm:$0xff]  ;;  %v8569_v36 = vcombine.low %v248_v24, %v252_v25  ;;  %v8562_v3 = vcombine.high %v240_v34, %v244_v35 }
  0xc6   :  { %v291_v43 = vld [vmem:[#allocation2 + $0x2e0] sm:$0xff]  ;;  %1778 = vmatpush2.bf16.msra.mxu0 %v8615_v46  ;;  %v8690_v37 = vcombine.high %v368_v0, %v372_v2  ;;  %v232_v38 = vld [vmem:[#allocation2 + $0x108] sm:$0xff] }
  0xc7   :  { %v415_v44 = vld [vmem:[#allocation2 + $0x6c0] sm:$0xff]  ;;  %v8608_v48 = vcombine.high %v287_v42, %v291_v43  ;;  %1820 = vmatprep.subr.bf16.mxu1 %v8744_v41  ;;  %v8607_v54 = vcombine.low %v287_v42, %v291_v43  ;;  %v236_v39 = vld [vmem:[#allocation2 + $0x128] sm:$0xff]  ;;  %v8561_v42 = vcombine.low %v240_v34, %v244_v35  ;;  %v8689_v43 = vcombine.low %v368_v0, %v372_v2 }
  0xc8   :  { %v419_v45 = vld [vmem:[#allocation2 + $0x6e0] sm:$0xff]  ;;  %1821 = vmatpush2.bf16.msra.mxu1 %v8743_v47  ;;  %v360_v40 = vld [vmem:[#allocation2 + $0x508] sm:$0xff] }
  0xc9   :  { %v8736_v49 = vcombine.high %v415_v44, %v419_v45  ;;  %v279_v50 = vld [vmem:[#allocation2 + $0x280] sm:$0xff]  ;;  %1779 = vmatprep.subr.bf16.mxu0 %v8608_v48  ;;  %v8735_v55 = vcombine.low %v415_v44, %v419_v45  ;;  %v364_v41 = vld [vmem:[#allocation2 + $0x528] sm:$0xff]  ;;  %v8554_v44 = vcombine.high %v232_v38, %v236_v39 }
  0xca   :  { %v283_v51 = vld [vmem:[#allocation2 + $0x2a0] sm:$0xff]  ;;  %1780 = vmatpush2.bf16.msra.mxu0 %v8607_v54  ;;  %v8682_v45 = vcombine.high %v360_v40, %v364_v41  ;;  %v224_v46 = vld [vmem:[#allocation2 + $0xc8] sm:$0xff] }
  0xcb   :  { %v407_v52 = vld [vmem:[#allocation2 + $0x680] sm:$0xff]  ;;  %v8600_v56 = vcombine.high %v279_v50, %v283_v51  ;;  %1822 = vmatprep.subr.bf16.mxu1 %v8736_v49  ;;  %v8599_v62 = vcombine.low %v279_v50, %v283_v51  ;;  %v228_v47 = vld [vmem:[#allocation2 + $0xe8] sm:$0xff]  ;;  %v8553_v50 = vcombine.low %v232_v38, %v236_v39  ;;  %v8681_v51 = vcombine.low %v360_v40, %v364_v41 }
  0xcc   :  { %v411_v53 = vld [vmem:[#allocation2 + $0x6a0] sm:$0xff]  ;;  %1823 = vmatpush2.bf16.msra.mxu1 %v8735_v55  ;;  %v352_v48 = vld [vmem:[#allocation2 + $0x4c8] sm:$0xff] }
  0xcd   :  { %v8728_v57 = vcombine.high %v407_v52, %v411_v53  ;;  %v271_v58 = vld [vmem:[#allocation2 + $0x240] sm:$0xff]  ;;  %1781 = vmatprep.subr.bf16.mxu0 %v8600_v56  ;;  %v8727_v63 = vcombine.low %v407_v52, %v411_v53  ;;  %v356_v49 = vld [vmem:[#allocation2 + $0x4e8] sm:$0xff]  ;;  %v8546_v52 = vcombine.high %v224_v46, %v228_v47 }
  0xce   :  { %v275_v59 = vld [vmem:[#allocation2 + $0x260] sm:$0xff]  ;;  %1782 = vmatpush2.bf16.msra.mxu0 %v8599_v62  ;;  %v8674_v53 = vcombine.high %v352_v48, %v356_v49  ;;  %v216_v54 = vld [vmem:[#allocation2 + $0x88] sm:$0xff] }
  0xcf   :  { %v399_v60 = vld [vmem:[#allocation2 + $0x640] sm:$0xff]  ;;  %v8592_v6 = vcombine.high %v271_v58, %v275_v59  ;;  %1824 = vmatprep.subr.bf16.mxu1 %v8728_v57  ;;  %v8591_v12 = vcombine.low %v271_v58, %v275_v59  ;;  %v220_v55 = vld [vmem:[#allocation2 + $0xa8] sm:$0xff]  ;;  %v8545_v58 = vcombine.low %v224_v46, %v228_v47  ;;  %v8673_v59 = vcombine.low %v352_v48, %v356_v49 }
  0xd0   :  { %v403_v61 = vld [vmem:[#allocation2 + $0x660] sm:$0xff]  ;;  %1825 = vmatpush2.bf16.msra.mxu1 %v8727_v63  ;;  %v344_v56 = vld [vmem:[#allocation2 + $0x488] sm:$0xff] }
  0xd1   :  { %v8720_v7 = vcombine.high %v399_v60, %v403_v61  ;;  %v263_v8 = vld [vmem:[#allocation2 + $0x200] sm:$0xff]  ;;  %1783 = vmatprep.subr.bf16.mxu0 %v8592_v6  ;;  %v8719_v13 = vcombine.low %v399_v60, %v403_v61  ;;  %v348_v57 = vld [vmem:[#allocation2 + $0x4a8] sm:$0xff]  ;;  %v8538_v60 = vcombine.high %v216_v54, %v220_v55 }
  0xd2   :  { %v267_v9 = vld [vmem:[#allocation2 + $0x220] sm:$0xff]  ;;  %1784 = vmatpush2.bf16.msra.mxu0 %v8591_v12  ;;  %v8666_v61 = vcombine.high %v344_v56, %v348_v57  ;;  %v208_v62 = vld [vmem:[#allocation2 + $0x48] sm:$0xff] }
  0xd3   :  { %v391_v10 = vld [vmem:[#allocation2 + $0x600] sm:$0xff]  ;;  %v8584_v14 = vcombine.high %v263_v8, %v267_v9  ;;  %1826 = vmatprep.subr.bf16.mxu1 %v8720_v7  ;;  %v8583_v20 = vcombine.low %v263_v8, %v267_v9  ;;  %v212_v63 = vld [vmem:[#allocation2 + $0x68] sm:$0xff]  ;;  %v8537_v8 = vcombine.low %v216_v54, %v220_v55  ;;  %v8665_v9 = vcombine.low %v344_v56, %v348_v57 }
  0xd4   :  { %v395_v11 = vld [vmem:[#allocation2 + $0x620] sm:$0xff]  ;;  %1827 = vmatpush2.bf16.msra.mxu1 %v8719_v13  ;;  %v336_v6 = vld [vmem:[#allocation2 + $0x448] sm:$0xff]  ;;  %v8529_v16 = vcombine.low %v208_v62, %v212_v63 }
  0xd5   :  { %v8712_v15 = vcombine.high %v391_v10, %v395_v11  ;;  %1785 = vmatprep.subr.bf16.mxu0 %v8584_v14  ;;  %v8711_v21 = vcombine.low %v391_v10, %v395_v11  ;;  %v340_v7 = vld [vmem:[#allocation2 + $0x468] sm:$0xff]  ;;  %v8530_v10 = vcombine.high %v208_v62, %v212_v63 }
  0xd6   :  { %1786 = vmatpush2.bf16.msra.mxu0 %v8583_v20  ;;  %v8658_v11 = vcombine.high %v336_v6, %v340_v7  ;;  %v200_v12 = vld [vmem:[#allocation2 + $0x8] sm:$0xff]  ;;  %v8657_v17 = vcombine.low %v336_v6, %v340_v7 }
  0xd7   :  { %1828 = vmatprep.subr.bf16.mxu1 %v8712_v15  ;;  %1841 = vmatprep.subr.bf16.mxu0 %v8578_v22  ;;  %v204_v13 = vld [vmem:[#allocation2 + $0x28] sm:$0xff] }
  0xd8   :  { %1829 = vmatpush2.bf16.msra.mxu1 %v8711_v21  ;;  %v328_v14 = vld [vmem:[#allocation2 + $0x408] sm:$0xff]  ;;  %v8522_v18 = vcombine.high %v200_v12, %v204_v13  ;;  %v8521_v24 = vcombine.low %v200_v12, %v204_v13 }
  0xd9   :  { %1884 = vmatprep.subr.bf16.mxu1 %v8706_v23  ;;  %1788 = vmatmul.mubr.bf16.vlgmr.msra.gmra.mxu0 %v10517_v26  ;;  %v332_v15 = vld [vmem:[#allocation2 + $0x428] sm:$0xff] }
  0xda   :  { %1842 = vmatpush1.bf16.msra.mxu0 %v8577_v30  ;;  %1873 = vmatprep.mubr.bf16.mxu0 %v10507_v4  ;;  %v8650_v19 = vcombine.high %v328_v14, %v332_v15  ;;  %v320_v20 = vld [vmem:[#allocation2 + $0x3c8] sm:$0xff]  ;;  %v8649_v25 = vcombine.low %v328_v14, %v332_v15 }
  0xdb   :  { %1831 = vmatmul.mubr.bf16.vlgmr.msra.gmra.mxu1 %v10521_v29  ;;  %1843 = vmatprep.subr.bf16.mxu0 %v8570_v32  ;;  %v324_v21 = vld [vmem:[#allocation2 + $0x3e8] sm:$0xff] }
  0xdc   :  { %1885 = vmatpush1.bf16.msra.mxu1 %v8705_v31  ;;  %1916 = vmatprep.mubr.bf16.mxu1 %v10511_v5  ;;  %v448_v22 = vld [vmem:[#allocation2 + $0x7c8] sm:$0xff]  ;;  %v8642_v27 = vcombine.high %v320_v20, %v324_v21  ;;  %v8641_v34 = vcombine.low %v320_v20, %v324_v21 }
  0xdd   :  { %1886 = vmatprep.subr.bf16.mxu1 %v8698_v33  ;;  %v452_v23 = vld [vmem:[#allocation2 + $0x7e8] sm:$0xff] }
  0xde   :  { %1844 = vmatpush1.bf16.msra.mxu0 %v8569_v36  ;;  %v8770_v28 = vcombine.high %v448_v22, %v452_v23  ;;  %v312_v30 = vld [vmem:[#allocation2 + $0x388] sm:$0xff]  ;;  %v8769_v35 = vcombine.low %v448_v22, %v452_v23 }
  0xdf   :  { %1845 = vmatprep.subr.bf16.mxu0 %v8562_v3  ;;  %v316_v31 = vld [vmem:[#allocation2 + $0x3a8] sm:$0xff] }
  0xe0   :  { %1887 = vmatpush1.bf16.msra.mxu1 %v8697_v1  ;;  %v440_v32 = vld [vmem:[#allocation2 + $0x788] sm:$0xff]  ;;  %v8634_v0 = vcombine.high %v312_v30, %v316_v31  ;;  %v8633_v38 = vcombine.low %v312_v30, %v316_v31 }
  0xe1   :  { %1888 = vmatprep.subr.bf16.mxu1 %v8690_v37  ;;  %v444_v33 = vld [vmem:[#allocation2 + $0x7a8] sm:$0xff] }
  0xe2   :  { %1846 = vmatpush1.bf16.msra.mxu0 %v8561_v42  ;;  %v8762_v2 = vcombine.high %v440_v32, %v444_v33  ;;  %v304_v36 = vld [vmem:[#allocation2 + $0x348] sm:$0xff]  ;;  %v8761_v39 = vcombine.low %v440_v32, %v444_v33 }
  0xe3   :  { %1847 = vmatprep.subr.bf16.mxu0 %v8554_v44  ;;  %v308_v1 = vld [vmem:[#allocation2 + $0x368] sm:$0xff] }
  0xe4   :  { %1889 = vmatpush1.bf16.msra.mxu1 %v8689_v43  ;;  %v432_v3 = vld [vmem:[#allocation2 + $0x748] sm:$0xff]  ;;  %v8626_v40 = vcombine.high %v304_v36, %v308_v1  ;;  %v8625_v46 = vcombine.low %v304_v36, %v308_v1 }
  0xe5   :  { %1890 = vmatprep.subr.bf16.mxu1 %v8682_v45  ;;  %v436_v37 = vld [vmem:[#allocation2 + $0x768] sm:$0xff] }
  0xe6   :  { %1848 = vmatpush1.bf16.msra.mxu0 %v8553_v50  ;;  %v8754_v41 = vcombine.high %v432_v3, %v436_v37  ;;  %v296_v42 = vld [vmem:[#allocation2 + $0x308] sm:$0xff]  ;;  %v8753_v47 = vcombine.low %v432_v3, %v436_v37 }
  0xe7   :  { %1849 = vmatprep.subr.bf16.mxu0 %v8546_v52  ;;  %v300_v43 = vld [vmem:[#allocation2 + $0x328] sm:$0xff] }
  0xe8   :  { %1891 = vmatpush1.bf16.msra.mxu1 %v8681_v51  ;;  %v424_v44 = vld [vmem:[#allocation2 + $0x708] sm:$0xff]  ;;  %v8618_v48 = vcombine.high %v296_v42, %v300_v43  ;;  %v8617_v54 = vcombine.low %v296_v42, %v300_v43 }
  0xe9   :  { %1892 = vmatprep.subr.bf16.mxu1 %v8674_v53  ;;  %v428_v45 = vld [vmem:[#allocation2 + $0x728] sm:$0xff] }
  0xea   :  { %1850 = vmatpush1.bf16.msra.mxu0 %v8545_v58  ;;  %v8746_v49 = vcombine.high %v424_v44, %v428_v45  ;;  %v288_v50 = vld [vmem:[#allocation2 + $0x2c8] sm:$0xff]  ;;  %v8745_v55 = vcombine.low %v424_v44, %v428_v45 }
  0xeb   :  { %1851 = vmatprep.subr.bf16.mxu0 %v8538_v60  ;;  %v292_v51 = vld [vmem:[#allocation2 + $0x2e8] sm:$0xff] }
  0xec   :  { %1893 = vmatpush1.bf16.msra.mxu1 %v8673_v59  ;;  %v416_v52 = vld [vmem:[#allocation2 + $0x6c8] sm:$0xff]  ;;  %v8610_v56 = vcombine.high %v288_v50, %v292_v51  ;;  %v8609_v62 = vcombine.low %v288_v50, %v292_v51 }
  0xed   :  { %1894 = vmatprep.subr.bf16.mxu1 %v8666_v61  ;;  %v420_v53 = vld [vmem:[#allocation2 + $0x6e8] sm:$0xff] }
  0xee   :  { %1852 = vmatpush1.bf16.msra.mxu0 %v8537_v8  ;;  %v8738_v57 = vcombine.high %v416_v52, %v420_v53  ;;  %v280_v58 = vld [vmem:[#allocation2 + $0x288] sm:$0xff]  ;;  %v8737_v63 = vcombine.low %v416_v52, %v420_v53 }
  0xef   :  { %1853 = vmatprep.subr.bf16.mxu0 %v8530_v10  ;;  %v284_v59 = vld [vmem:[#allocation2 + $0x2a8] sm:$0xff] }
  0xf0   :  { %1895 = vmatpush1.bf16.msra.mxu1 %v8665_v9  ;;  %v408_v60 = vld [vmem:[#allocation2 + $0x688] sm:$0xff]  ;;  %v8602_v6 = vcombine.high %v280_v58, %v284_v59  ;;  %v8601_v12 = vcombine.low %v280_v58, %v284_v59 }
  0xf1   :  { %1896 = vmatprep.subr.bf16.mxu1 %v8658_v11  ;;  %v412_v61 = vld [vmem:[#allocation2 + $0x6a8] sm:$0xff] }
  0xf2   :  { %1854 = vmatpush1.bf16.msra.mxu0 %v8529_v16  ;;  %v8730_v7 = vcombine.high %v408_v60, %v412_v61  ;;  %v272_v8 = vld [vmem:[#allocation2 + $0x248] sm:$0xff]  ;;  %v8729_v13 = vcombine.low %v408_v60, %v412_v61 }
  0xf3   :  { %1855 = vmatprep.subr.bf16.mxu0 %v8522_v18  ;;  %v276_v9 = vld [vmem:[#allocation2 + $0x268] sm:$0xff] }
  0xf4   :  { %1897 = vmatpush1.bf16.msra.mxu1 %v8657_v17  ;;  %v400_v10 = vld [vmem:[#allocation2 + $0x648] sm:$0xff]  ;;  %v8594_v14 = vcombine.high %v272_v8, %v276_v9  ;;  %v8593_v20 = vcombine.low %v272_v8, %v276_v9 }
  0xf5   :  { %1898 = vmatprep.subr.bf16.mxu1 %v8650_v19  ;;  %v404_v11 = vld [vmem:[#allocation2 + $0x668] sm:$0xff] }
  0xf6   :  { %1856 = vmatpush1.bf16.msra.mxu0 %v8521_v24  ;;  %v8722_v15 = vcombine.high %v400_v10, %v404_v11  ;;  %v264_v16 = vld [vmem:[#allocation2 + $0x208] sm:$0xff]  ;;  %v8721_v21 = vcombine.low %v400_v10, %v404_v11  ;;  %v257_v24 = vld [vmem:[#allocation2 + $0x1d0] sm:$0xff] }
  0xf7   :  { %1857 = vmatprep.subr.bf16.mxu0 %v8642_v27  ;;  %v268_v17 = vld [vmem:[#allocation2 + $0x228] sm:$0xff]  ;;  %v385_v27 = vld [vmem:[#allocation2 + $0x5d0] sm:$0xff] }
  0xf8   :  { %1899 = vmatpush1.bf16.msra.mxu1 %v8649_v25  ;;  %v392_v18 = vld [vmem:[#allocation2 + $0x608] sm:$0xff]  ;;  %v8586_v22 = vcombine.high %v264_v16, %v268_v17  ;;  %v261_v25 = vld [vmem:[#allocation2 + $0x1f0] sm:$0xff]  ;;  %v8585_v30 = vcombine.low %v264_v16, %v268_v17 }
  0xf9   :  { %1900 = vmatprep.subr.bf16.mxu1 %v8770_v28  ;;  %v396_v19 = vld [vmem:[#allocation2 + $0x628] sm:$0xff]  ;;  %v389_v28 = vld [vmem:[#allocation2 + $0x5f0] sm:$0xff]  ;;  %v8580_v32 = vcombine.high %v257_v24, %v261_v25  ;;  %v8579_v36 = vcombine.low %v257_v24, %v261_v25 }
  0xfa   :  { %1858 = vmatpush2.bf16.msra.mxu0 %v8641_v34  ;;  %v8714_v23 = vcombine.high %v392_v18, %v396_v19  ;;  %v8713_v31 = vcombine.low %v392_v18, %v396_v19  ;;  %v8708_v33 = vcombine.high %v385_v27, %v389_v28  ;;  %v249_v34 = vld [vmem:[#allocation2 + $0x190] sm:$0xff]  ;;  %v8707_v1 = vcombine.low %v385_v27, %v389_v28 }
  0xfb   :  { %1859 = vmatprep.subr.bf16.mxu0 %v8634_v0  ;;  %v377_v0 = vld [vmem:[#allocation2 + $0x590] sm:$0xff] }
  0xfc   :  { %1901 = vmatpush2.bf16.msra.mxu1 %v8769_v35  ;;  %v253_v35 = vld [vmem:[#allocation2 + $0x1b0] sm:$0xff] }
  0xfd   :  { %1902 = vmatprep.subr.bf16.mxu1 %v8762_v2  ;;  %v381_v2 = vld [vmem:[#allocation2 + $0x5b0] sm:$0xff]  ;;  %v8572_v3 = vcombine.high %v249_v34, %v253_v35  ;;  %v8571_v42 = vcombine.low %v249_v34, %v253_v35 }
  0xfe   :  { %1860 = vmatpush2.bf16.msra.mxu0 %v8633_v38  ;;  %v8700_v37 = vcombine.high %v377_v0, %v381_v2  ;;  %v241_v38 = vld [vmem:[#allocation2 + $0x150] sm:$0xff]  ;;  %v8699_v43 = vcombine.low %v377_v0, %v381_v2 }
  0xff   :  { %1861 = vmatprep.subr.bf16.mxu0 %v8626_v40  ;;  %v369_v40 = vld [vmem:[#allocation2 + $0x550] sm:$0xff] }
 0x100   :  { %1903 = vmatpush2.bf16.msra.mxu1 %v8761_v39  ;;  %v245_v39 = vld [vmem:[#allocation2 + $0x170] sm:$0xff] }
 0x101   :  { %1904 = vmatprep.subr.bf16.mxu1 %v8754_v41  ;;  %v373_v41 = vld [vmem:[#allocation2 + $0x570] sm:$0xff]  ;;  %v8564_v44 = vcombine.high %v241_v38, %v245_v39  ;;  %v8563_v50 = vcombine.low %v241_v38, %v245_v39 }
 0x102   :  { %1862 = vmatpush2.bf16.msra.mxu0 %v8625_v46  ;;  %v8692_v45 = vcombine.high %v369_v40, %v373_v41  ;;  %v233_v46 = vld [vmem:[#allocation2 + $0x110] sm:$0xff]  ;;  %v8691_v51 = vcombine.low %v369_v40, %v373_v41 }
 0x103   :  { %1863 = vmatprep.subr.bf16.mxu0 %v8618_v48  ;;  %v361_v48 = vld [vmem:[#allocation2 + $0x510] sm:$0xff] }
 0x104   :  { %1905 = vmatpush2.bf16.msra.mxu1 %v8753_v47  ;;  %v237_v47 = vld [vmem:[#allocation2 + $0x130] sm:$0xff] }
 0x105   :  { %1906 = vmatprep.subr.bf16.mxu1 %v8746_v49  ;;  %v365_v49 = vld [vmem:[#allocation2 + $0x530] sm:$0xff]  ;;  %v8556_v52 = vcombine.high %v233_v46, %v237_v47  ;;  %v8555_v58 = vcombine.low %v233_v46, %v237_v47 }
 0x106   :  { %1864 = vmatpush2.bf16.msra.mxu0 %v8617_v54  ;;  %v8684_v53 = vcombine.high %v361_v48, %v365_v49  ;;  %v225_v54 = vld [vmem:[#allocation2 + $0xd0] sm:$0xff]  ;;  %v8683_v59 = vcombine.low %v361_v48, %v365_v49 }
 0x107   :  { %1865 = vmatprep.subr.bf16.mxu0 %v8610_v56  ;;  %v353_v56 = vld [vmem:[#allocation2 + $0x4d0] sm:$0xff] }
 0x108   :  { %1907 = vmatpush2.bf16.msra.mxu1 %v8745_v55  ;;  %v229_v55 = vld [vmem:[#allocation2 + $0xf0] sm:$0xff] }
 0x109   :  { %1908 = vmatprep.subr.bf16.mxu1 %v8738_v57  ;;  %v357_v57 = vld [vmem:[#allocation2 + $0x4f0] sm:$0xff]  ;;  %v8548_v60 = vcombine.high %v225_v54, %v229_v55  ;;  %v8547_v8 = vcombine.low %v225_v54, %v229_v55 }
 0x10a   :  { %1866 = vmatpush2.bf16.msra.mxu0 %v8609_v62  ;;  %v8676_v61 = vcombine.high %v353_v56, %v357_v57  ;;  %v217_v62 = vld [vmem:[#allocation2 + $0x90] sm:$0xff]  ;;  %v8675_v9 = vcombine.low %v353_v56, %v357_v57 }
 0x10b   :  { %1867 = vmatprep.subr.bf16.mxu0 %v8602_v6  ;;  %v345_v6 = vld [vmem:[#allocation2 + $0x490] sm:$0xff] }
 0x10c   :  { %1909 = vmatpush2.bf16.msra.mxu1 %v8737_v63  ;;  %v221_v63 = vld [vmem:[#allocation2 + $0xb0] sm:$0xff] }
 0x10d   :  { %1910 = vmatprep.subr.bf16.mxu1 %v8730_v7  ;;  %v349_v7 = vld [vmem:[#allocation2 + $0x4b0] sm:$0xff]  ;;  %v8540_v10 = vcombine.high %v217_v62, %v221_v63  ;;  %v8539_v16 = vcombine.low %v217_v62, %v221_v63 }
 0x10e   :  { %1868 = vmatpush2.bf16.msra.mxu0 %v8601_v12  ;;  %v8668_v11 = vcombine.high %v345_v6, %v349_v7  ;;  %v209_v12 = vld [vmem:[#allocation2 + $0x50] sm:$0xff]  ;;  %v8667_v17 = vcombine.low %v345_v6, %v349_v7 }
 0x10f   :  { %1869 = vmatprep.subr.bf16.mxu0 %v8594_v14  ;;  %v337_v14 = vld [vmem:[#allocation2 + $0x450] sm:$0xff] }
 0x110   :  { %1911 = vmatpush2.bf16.msra.mxu1 %v8729_v13  ;;  %v213_v13 = vld [vmem:[#allocation2 + $0x70] sm:$0xff] }
 0x111   :  { %1912 = vmatprep.subr.bf16.mxu1 %v8722_v15  ;;  %v341_v15 = vld [vmem:[#allocation2 + $0x470] sm:$0xff]  ;;  %v8532_v18 = vcombine.high %v209_v12, %v213_v13  ;;  %v8531_v24 = vcombine.low %v209_v12, %v213_v13 }
 0x112   :  { %1870 = vmatpush2.bf16.msra.mxu0 %v8593_v20  ;;  %v8660_v19 = vcombine.high %v337_v14, %v341_v15  ;;  %v201_v20 = vld [vmem:[#allocation2 + $0x10] sm:$0xff]  ;;  %v8659_v25 = vcombine.low %v337_v14, %v341_v15 }
 0x113   :  { %1871 = vmatprep.subr.bf16.mxu0 %v8586_v22  ;;  %v329_v22 = vld [vmem:[#allocation2 + $0x410] sm:$0xff] }
 0x114   :  { %1913 = vmatpush2.bf16.msra.mxu1 %v8721_v21  ;;  %v205_v21 = vld [vmem:[#allocation2 + $0x30] sm:$0xff] }
 0x115   :  { %1914 = vmatprep.subr.bf16.mxu1 %v8714_v23  ;;  %v333_v23 = vld [vmem:[#allocation2 + $0x430] sm:$0xff]  ;;  %v8524_v27 = vcombine.high %v201_v20, %v205_v21  ;;  %v8523_v34 = vcombine.low %v201_v20, %v205_v21 }
 0x116   :  { %1872 = vmatpush2.bf16.msra.mxu0 %v8585_v30  ;;  %v8652_v28 = vcombine.high %v329_v22, %v333_v23  ;;  %v321_v30 = vld [vmem:[#allocation2 + $0x3d0] sm:$0xff]  ;;  %v8651_v35 = vcombine.low %v329_v22, %v333_v23 }
 0x117   :  { %1927 = vmatprep.subr.bf16.mxu0 %v8580_v32  ;;  %v449_v32 = vld [vmem:[#allocation2 + $0x7d0] sm:$0xff] }
 0x118   :  { %1915 = vmatpush2.bf16.msra.mxu1 %v8713_v31  ;;  %v325_v31 = vld [vmem:[#allocation2 + $0x3f0] sm:$0xff] }
 0x119   :  { %1970 = vmatprep.subr.bf16.mxu1 %v8708_v33  ;;  %1874 = vmatmul.mubr.bf16.vlgmr.msra.gmra.mxu0 %v10517_v26  ;;  %v453_v33 = vld [vmem:[#allocation2 + $0x7f0] sm:$0xff]  ;;  %v8644_v0 = vcombine.high %v321_v30, %v325_v31  ;;  %v8643_v38 = vcombine.low %v321_v30, %v325_v31 }
 0x11a   :  { %1928 = vmatpush1.bf16.msra.mxu0 %v8579_v36  ;;  %1959 = vmatprep.mubr.bf16.mxu0 %v10507_v4  ;;  %v8772_v2 = vcombine.high %v449_v32, %v453_v33  ;;  %v313_v36 = vld [vmem:[#allocation2 + $0x390] sm:$0xff]  ;;  %v8771_v39 = vcombine.low %v449_v32, %v453_v33 }
 0x11b   :  { %1917 = vmatmul.mubr.bf16.vlgmr.msra.gmra.mxu1 %v10521_v29  ;;  %1929 = vmatprep.subr.bf16.mxu0 %v8572_v3  ;;  %v441_v3 = vld [vmem:[#allocation2 + $0x790] sm:$0xff] }
 0x11c   :  { %1971 = vmatpush1.bf16.msra.mxu1 %v8707_v1  ;;  %2002 = vmatprep.mubr.bf16.mxu1 %v10511_v5  ;;  %v317_v1 = vld [vmem:[#allocation2 + $0x3b0] sm:$0xff] }
 0x11d   :  { %1972 = vmatprep.subr.bf16.mxu1 %v8700_v37  ;;  %v445_v37 = vld [vmem:[#allocation2 + $0x7b0] sm:$0xff]  ;;  %v8636_v40 = vcombine.high %v313_v36, %v317_v1  ;;  %v8635_v46 = vcombine.low %v313_v36, %v317_v1 }
 0x11e   :  { %1930 = vmatpush1.bf16.msra.mxu0 %v8571_v42  ;;  %v8764_v41 = vcombine.high %v441_v3, %v445_v37  ;;  %v305_v42 = vld [vmem:[#allocation2 + $0x350] sm:$0xff]  ;;  %v8763_v47 = vcombine.low %v441_v3, %v445_v37 }
 0x11f   :  { %1931 = vmatprep.subr.bf16.mxu0 %v8564_v44  ;;  %v433_v44 = vld [vmem:[#allocation2 + $0x750] sm:$0xff] }
 0x120   :  { %1973 = vmatpush1.bf16.msra.mxu1 %v8699_v43  ;;  %v309_v43 = vld [vmem:[#allocation2 + $0x370] sm:$0xff] }
 0x121   :  { %1974 = vmatprep.subr.bf16.mxu1 %v8692_v45  ;;  %v437_v45 = vld [vmem:[#allocation2 + $0x770] sm:$0xff]  ;;  %v8628_v48 = vcombine.high %v305_v42, %v309_v43  ;;  %v8627_v54 = vcombine.low %v305_v42, %v309_v43 }
 0x122   :  { %1932 = vmatpush1.bf16.msra.mxu0 %v8563_v50  ;;  %v8756_v49 = vcombine.high %v433_v44, %v437_v45  ;;  %v297_v50 = vld [vmem:[#allocation2 + $0x310] sm:$0xff]  ;;  %v8755_v55 = vcombine.low %v433_v44, %v437_v45 }
 0x123   :  { %1933 = vmatprep.subr.bf16.mxu0 %v8556_v52  ;;  %v425_v52 = vld [vmem:[#allocation2 + $0x710] sm:$0xff] }
 0x124   :  { %1975 = vmatpush1.bf16.msra.mxu1 %v8691_v51  ;;  %v301_v51 = vld [vmem:[#allocation2 + $0x330] sm:$0xff] }
 0x125   :  { %1976 = vmatprep.subr.bf16.mxu1 %v8684_v53  ;;  %v429_v53 = vld [vmem:[#allocation2 + $0x730] sm:$0xff]  ;;  %v8620_v56 = vcombine.high %v297_v50, %v301_v51  ;;  %v8619_v62 = vcombine.low %v297_v50, %v301_v51 }
 0x126   :  { %1934 = vmatpush1.bf16.msra.mxu0 %v8555_v58  ;;  %v8748_v57 = vcombine.high %v425_v52, %v429_v53  ;;  %v289_v58 = vld [vmem:[#allocation2 + $0x2d0] sm:$0xff]  ;;  %v8747_v63 = vcombine.low %v425_v52, %v429_v53 }
 0x127   :  { %1935 = vmatprep.subr.bf16.mxu0 %v8548_v60  ;;  %v417_v60 = vld [vmem:[#allocation2 + $0x6d0] sm:$0xff] }
 0x128   :  { %1977 = vmatpush1.bf16.msra.mxu1 %v8683_v59  ;;  %v293_v59 = vld [vmem:[#allocation2 + $0x2f0] sm:$0xff] }
 0x129   :  { %1978 = vmatprep.subr.bf16.mxu1 %v8676_v61  ;;  %v421_v61 = vld [vmem:[#allocation2 + $0x6f0] sm:$0xff]  ;;  %v8612_v6 = vcombine.high %v289_v58, %v293_v59  ;;  %v8611_v12 = vcombine.low %v289_v58, %v293_v59 }
 0x12a   :  { %1936 = vmatpush1.bf16.msra.mxu0 %v8547_v8  ;;  %v8740_v7 = vcombine.high %v417_v60, %v421_v61  ;;  %v281_v8 = vld [vmem:[#allocation2 + $0x290] sm:$0xff]  ;;  %v8739_v13 = vcombine.low %v417_v60, %v421_v61 }
 0x12b   :  { %1937 = vmatprep.subr.bf16.mxu0 %v8540_v10  ;;  %v409_v10 = vld [vmem:[#allocation2 + $0x690] sm:$0xff] }
 0x12c   :  { %1979 = vmatpush1.bf16.msra.mxu1 %v8675_v9  ;;  %v285_v9 = vld [vmem:[#allocation2 + $0x2b0] sm:$0xff] }
 0x12d   :  { %1980 = vmatprep.subr.bf16.mxu1 %v8668_v11  ;;  %v413_v11 = vld [vmem:[#allocation2 + $0x6b0] sm:$0xff]  ;;  %v8604_v14 = vcombine.high %v281_v8, %v285_v9  ;;  %v8603_v20 = vcombine.low %v281_v8, %v285_v9 }
 0x12e   :  { %1938 = vmatpush1.bf16.msra.mxu0 %v8539_v16  ;;  %v8732_v15 = vcombine.high %v409_v10, %v413_v11  ;;  %v273_v16 = vld [vmem:[#allocation2 + $0x250] sm:$0xff]  ;;  %v8731_v21 = vcombine.low %v409_v10, %v413_v11  ;;  %v218_v10 = vld [vmem:[#allocation2 + $0x98] sm:$0xff] }
 0x12f   :  { %1939 = vmatprep.subr.bf16.mxu0 %v8532_v18  ;;  %v401_v18 = vld [vmem:[#allocation2 + $0x650] sm:$0xff]  ;;  %v222_v11 = vld [vmem:[#allocation2 + $0xb8] sm:$0xff] }
 0x130   :  { %1981 = vmatpush1.bf16.msra.mxu1 %v8667_v17  ;;  %v277_v17 = vld [vmem:[#allocation2 + $0x270] sm:$0xff] }
 0x131   :  { %1982 = vmatprep.subr.bf16.mxu1 %v8660_v19  ;;  %v405_v19 = vld [vmem:[#allocation2 + $0x670] sm:$0xff]  ;;  %v8596_v22 = vcombine.high %v273_v16, %v277_v17  ;;  %v8595_v30 = vcombine.low %v273_v16, %v277_v17  ;;  %v8542_v16 = vcombine.high %v218_v10, %v222_v11 }
 0x132   :  { %1940 = vmatpush1.bf16.msra.mxu0 %v8531_v24  ;;  %v8724_v23 = vcombine.high %v401_v18, %v405_v19  ;;  %v265_v24 = vld [vmem:[#allocation2 + $0x210] sm:$0xff]  ;;  %v8723_v31 = vcombine.low %v401_v18, %v405_v19  ;;  %v210_v18 = vld [vmem:[#allocation2 + $0x58] sm:$0xff] }
 0x133   :  { %1941 = vmatprep.subr.bf16.mxu0 %v8524_v27  ;;  %v393_v27 = vld [vmem:[#allocation2 + $0x610] sm:$0xff]  ;;  %v214_v19 = vld [vmem:[#allocation2 + $0x78] sm:$0xff] }
 0x134   :  { %1983 = vmatpush1.bf16.msra.mxu1 %v8659_v25  ;;  %v269_v25 = vld [vmem:[#allocation2 + $0x230] sm:$0xff] }
 0x135   :  { %1984 = vmatprep.subr.bf16.mxu1 %v8652_v28  ;;  %v397_v28 = vld [vmem:[#allocation2 + $0x630] sm:$0xff]  ;;  %v8588_v32 = vcombine.high %v265_v24, %v269_v25  ;;  %v8587_v36 = vcombine.low %v265_v24, %v269_v25  ;;  %v8534_v24 = vcombine.high %v210_v18, %v214_v19 }
 0x136   :  { %1942 = vmatpush1.bf16.msra.mxu0 %v8523_v34  ;;  %v8716_v33 = vcombine.high %v393_v27, %v397_v28  ;;  %v258_v34 = vld [vmem:[#allocation2 + $0x1d8] sm:$0xff]  ;;  %v8715_v1 = vcombine.low %v393_v27, %v397_v28 }
 0x137   :  { %1943 = vmatprep.subr.bf16.mxu0 %v8644_v0  ;;  %v386_v0 = vld [vmem:[#allocation2 + $0x5d8] sm:$0xff] }
 0x138   :  { %1985 = vmatpush1.bf16.msra.mxu1 %v8651_v35  ;;  %v262_v35 = vld [vmem:[#allocation2 + $0x1f8] sm:$0xff] }
 0x139   :  { %1986 = vmatprep.subr.bf16.mxu1 %v8772_v2  ;;  %v390_v2 = vld [vmem:[#allocation2 + $0x5f8] sm:$0xff]  ;;  %v8582_v3 = vcombine.high %v258_v34, %v262_v35  ;;  %v8581_v42 = vcombine.low %v258_v34, %v262_v35 }
 0x13a   :  { %1944 = vmatpush2.bf16.msra.mxu0 %v8643_v38  ;;  %v8710_v37 = vcombine.high %v386_v0, %v390_v2  ;;  %v250_v38 = vld [vmem:[#allocation2 + $0x198] sm:$0xff]  ;;  %v8709_v43 = vcombine.low %v386_v0, %v390_v2 }
 0x13b   :  { %1945 = vmatprep.subr.bf16.mxu0 %v8636_v40  ;;  %v378_v40 = vld [vmem:[#allocation2 + $0x598] sm:$0xff] }
 0x13c   :  { %1987 = vmatpush2.bf16.msra.mxu1 %v8771_v39  ;;  %v254_v39 = vld [vmem:[#allocation2 + $0x1b8] sm:$0xff] }
 0x13d   :  { %1988 = vmatprep.subr.bf16.mxu1 %v8764_v41  ;;  %v382_v41 = vld [vmem:[#allocation2 + $0x5b8] sm:$0xff]  ;;  %v8574_v44 = vcombine.high %v250_v38, %v254_v39  ;;  %v8573_v50 = vcombine.low %v250_v38, %v254_v39 }
 0x13e   :  { %1946 = vmatpush2.bf16.msra.mxu0 %v8635_v46  ;;  %v8702_v45 = vcombine.high %v378_v40, %v382_v41  ;;  %v242_v46 = vld [vmem:[#allocation2 + $0x158] sm:$0xff]  ;;  %v8701_v51 = vcombine.low %v378_v40, %v382_v41 }
 0x13f   :  { %1947 = vmatprep.subr.bf16.mxu0 %v8628_v48  ;;  %v370_v48 = vld [vmem:[#allocation2 + $0x558] sm:$0xff] }
 0x140   :  { %1989 = vmatpush2.bf16.msra.mxu1 %v8763_v47  ;;  %v246_v47 = vld [vmem:[#allocation2 + $0x178] sm:$0xff] }
 0x141   :  { %1990 = vmatprep.subr.bf16.mxu1 %v8756_v49  ;;  %v374_v49 = vld [vmem:[#allocation2 + $0x578] sm:$0xff]  ;;  %v8566_v52 = vcombine.high %v242_v46, %v246_v47  ;;  %v8565_v58 = vcombine.low %v242_v46, %v246_v47 }
 0x142   :  { %1948 = vmatpush2.bf16.msra.mxu0 %v8627_v54  ;;  %v8694_v53 = vcombine.high %v370_v48, %v374_v49  ;;  %v234_v54 = vld [vmem:[#allocation2 + $0x118] sm:$0xff]  ;;  %v8693_v59 = vcombine.low %v370_v48, %v374_v49 }
 0x143   :  { %1949 = vmatprep.subr.bf16.mxu0 %v8620_v56  ;;  %v362_v56 = vld [vmem:[#allocation2 + $0x518] sm:$0xff] }
 0x144   :  { %1991 = vmatpush2.bf16.msra.mxu1 %v8755_v55  ;;  %v238_v55 = vld [vmem:[#allocation2 + $0x138] sm:$0xff] }
 0x145   :  { %1992 = vmatprep.subr.bf16.mxu1 %v8748_v57  ;;  %v366_v57 = vld [vmem:[#allocation2 + $0x538] sm:$0xff]  ;;  %v8558_v60 = vcombine.high %v234_v54, %v238_v55  ;;  %v8557_v8 = vcombine.low %v234_v54, %v238_v55 }
 0x146   :  { %1950 = vmatpush2.bf16.msra.mxu0 %v8619_v62  ;;  %v8686_v61 = vcombine.high %v362_v56, %v366_v57  ;;  %v226_v62 = vld [vmem:[#allocation2 + $0xd8] sm:$0xff] }
 0x147   :  { %1951 = vmatprep.subr.bf16.mxu0 %v8612_v6  ;;  %v354_v6 = vld [vmem:[#allocation2 + $0x4d8] sm:$0xff] }
 0x148   :  { %1993 = vmatpush2.bf16.msra.mxu1 %v8747_v63  ;;  %v230_v63 = vld [vmem:[#allocation2 + $0xf8] sm:$0xff] }
 0x149   :  { %1994 = vmatprep.subr.bf16.mxu1 %v8740_v7  ;;  %v358_v7 = vld [vmem:[#allocation2 + $0x4f8] sm:$0xff]  ;;  %v8550_v9 = vcombine.high %v226_v62, %v230_v63 }
 0x14a   :  { %1952 = vmatpush2.bf16.msra.mxu0 %v8611_v12  ;;  %v346_v12 = vld [vmem:[#allocation2 + $0x498] sm:$0xff] }
 0x14b   :  { %1953 = vmatprep.subr.bf16.mxu0 %v8604_v14  ;;  %v8549_v14 = vcombine.low %v226_v62, %v230_v63  ;;  %v202_v27 = vld [vmem:[#allocation2 + $0x18] sm:$0xff] }
 0x14c   :  { %1995 = vmatpush2.bf16.msra.mxu1 %v8739_v13  ;;  %v350_v13 = vld [vmem:[#allocation2 + $0x4b8] sm:$0xff] }
 0x14d   :  { %1996 = vmatprep.subr.bf16.mxu1 %v8732_v15  ;;  %v8677_v15 = vcombine.low %v354_v6, %v358_v7  ;;  %v8670_v17 = vcombine.high %v346_v12, %v350_v13  ;;  %v206_v28 = vld [vmem:[#allocation2 + $0x38] sm:$0xff] }
 0x14e   :  { %1954 = vmatpush2.bf16.msra.mxu0 %v8603_v20  ;;  %v338_v20 = vld [vmem:[#allocation2 + $0x458] sm:$0xff]  ;;  %v8526_v34 = vcombine.high %v202_v27, %v206_v28 }
 0x14f   :  { %1955 = vmatprep.subr.bf16.mxu0 %v8596_v22  ;;  %v8541_v22 = vcombine.low %v218_v10, %v222_v11  ;;  %v322_v0 = vld [vmem:[#allocation2 + $0x3d8] sm:$0xff] }
 0x150   :  { %1997 = vmatpush2.bf16.msra.mxu1 %v8731_v21  ;;  %v342_v21 = vld [vmem:[#allocation2 + $0x478] sm:$0xff] }
 0x151   :  { %1998 = vmatprep.subr.bf16.mxu1 %v8724_v23  ;;  %v8669_v23 = vcombine.low %v346_v12, %v350_v13  ;;  %v8662_v25 = vcombine.high %v338_v20, %v342_v21  ;;  %v326_v2 = vld [vmem:[#allocation2 + $0x3f8] sm:$0xff] }
 0x152   :  { %1956 = vmatpush2.bf16.msra.mxu0 %v8595_v30  ;;  %v330_v30 = vld [vmem:[#allocation2 + $0x418] sm:$0xff]  ;;  %v8646_v38 = vcombine.high %v322_v0, %v326_v2 }
 0x153   :  { %1957 = vmatprep.subr.bf16.mxu0 %v8588_v32  ;;  %v8533_v32 = vcombine.low %v210_v18, %v214_v19  ;;  %v314_v40 = vld [vmem:[#allocation2 + $0x398] sm:$0xff] }
 0x154   :  { %1999 = vmatpush2.bf16.msra.mxu1 %v8723_v31  ;;  %v334_v31 = vld [vmem:[#allocation2 + $0x438] sm:$0xff] }
 0x155   :  { %2000 = vmatprep.subr.bf16.mxu1 %v8716_v33  ;;  %v8661_v33 = vcombine.low %v338_v20, %v342_v21  ;;  %v8654_v35 = vcombine.high %v330_v30, %v334_v31  ;;  %v318_v41 = vld [vmem:[#allocation2 + $0x3b8] sm:$0xff] }
 0x156   :  { %1958 = vmatpush2.bf16.msra.mxu0 %v8587_v36  ;;  %v450_v36 = vld [vmem:[#allocation2 + $0x7d8] sm:$0xff]  ;;  %v8638_v46 = vcombine.high %v314_v40, %v318_v41 }
 0x157   :  { %2013 = vmatprep.subr.bf16.mxu0 %v8582_v3  ;;  %v8525_v3 = vcombine.low %v202_v27, %v206_v28  ;;  %v306_v48 = vld [vmem:[#allocation2 + $0x358] sm:$0xff] }
 0x158   :  { %2001 = vmatpush2.bf16.msra.mxu1 %v8715_v1  ;;  %v454_v1 = vld [vmem:[#allocation2 + $0x7f8] sm:$0xff] }
 0x159   :  { %2056 = vmatprep.subr.bf16.mxu1 %v8710_v37  ;;  %1960 = vmatmul.mubr.bf16.vlgmr.msra.gmra.mxu0 %v10517_v26  ;;  %v8653_v37 = vcombine.low %v330_v30, %v334_v31  ;;  %v8774_v39 = vcombine.high %v450_v36, %v454_v1  ;;  %v310_v49 = vld [vmem:[#allocation2 + $0x378] sm:$0xff] }
 0x15a   :  { %2014 = vmatpush1.bf16.msra.mxu0 %v8581_v42  ;;  %2045 = vmatprep.mubr.bf16.mxu0 %v10507_v4  ;;  %v8685_v4 = vcombine.low %v362_v56, %v366_v57  ;;  %v442_v42 = vld [vmem:[#allocation2 + $0x798] sm:$0xff]  ;;  %v8630_v54 = vcombine.high %v306_v48, %v310_v49 }
 0x15b   :  { %2003 = vmatmul.mubr.bf16.vlgmr.msra.gmra.mxu1 %v10521_v29  ;;  %2015 = vmatprep.subr.bf16.mxu0 %v8574_v44  ;;  %v8645_v44 = vcombine.low %v322_v0, %v326_v2  ;;  %v298_v56 = vld [vmem:[#allocation2 + $0x318] sm:$0xff] }
 0x15c   :  { %2057 = vmatpush1.bf16.msra.mxu1 %v8709_v43  ;;  %2088 = vmatprep.mubr.bf16.mxu1 %v10511_v5  ;;  %v8678_v5 = vcombine.high %v354_v6, %v358_v7  ;;  %v446_v43 = vld [vmem:[#allocation2 + $0x7b8] sm:$0xff] }
 0x15d   :  { %2058 = vmatprep.subr.bf16.mxu1 %v8702_v45  ;;  %v8773_v45 = vcombine.low %v450_v36, %v454_v1  ;;  %v8766_v47 = vcombine.high %v442_v42, %v446_v43  ;;  %v302_v57 = vld [vmem:[#allocation2 + $0x338] sm:$0xff] }
 0x15e   :  { %2016 = vmatpush1.bf16.msra.mxu0 %v8573_v50  ;;  %v434_v50 = vld [vmem:[#allocation2 + $0x758] sm:$0xff]  ;;  %v8622_v62 = vcombine.high %v298_v56, %v302_v57 }
 0x15f   :  { %2017 = vmatprep.subr.bf16.mxu0 %v8566_v52  ;;  %v8637_v52 = vcombine.low %v314_v40, %v318_v41  ;;  %v290_v6 = vld [vmem:[#allocation2 + $0x2d8] sm:$0xff] }
 0x160   :  { %2059 = vmatpush1.bf16.msra.mxu1 %v8701_v51  ;;  %v438_v51 = vld [vmem:[#allocation2 + $0x778] sm:$0xff] }
 0x161   :  { %2060 = vmatprep.subr.bf16.mxu1 %v8694_v53  ;;  %v8765_v53 = vcombine.low %v442_v42, %v446_v43  ;;  %v8758_v55 = vcombine.high %v434_v50, %v438_v51  ;;  %v294_v7 = vld [vmem:[#allocation2 + $0x2f8] sm:$0xff] }
 0x162   :  { %2018 = vmatpush1.bf16.msra.mxu0 %v8565_v58  ;;  %v426_v58 = vld [vmem:[#allocation2 + $0x718] sm:$0xff]  ;;  %v8614_v10 = vcombine.high %v290_v6, %v294_v7 }
 0x163   :  { %2019 = vmatprep.subr.bf16.mxu0 %v8558_v60  ;;  %v8629_v60 = vcombine.low %v306_v48, %v310_v49  ;;  %v282_v12 = vld [vmem:[#allocation2 + $0x298] sm:$0xff] }
 0x164   :  { %2061 = vmatpush1.bf16.msra.mxu1 %v8693_v59  ;;  %v430_v59 = vld [vmem:[#allocation2 + $0x738] sm:$0xff] }
 0x165   :  { %2062 = vmatprep.subr.bf16.mxu1 %v8686_v61  ;;  %v8757_v61 = vcombine.low %v434_v50, %v438_v51  ;;  %v8750_v63 = vcombine.high %v426_v58, %v430_v59  ;;  %v286_v13 = vld [vmem:[#allocation2 + $0x2b8] sm:$0xff] }
 0x166   :  { %2020 = vmatpush1.bf16.msra.mxu0 %v8557_v8  ;;  %v418_v8 = vld [vmem:[#allocation2 + $0x6d8] sm:$0xff]  ;;  %v8606_v18 = vcombine.high %v282_v12, %v286_v13 }
 0x167   :  { %2021 = vmatprep.subr.bf16.mxu0 %v8550_v9  ;;  %v8621_v9 = vcombine.low %v298_v56, %v302_v57  ;;  %v274_v20 = vld [vmem:[#allocation2 + $0x258] sm:$0xff] }
 0x168   :  { %2063 = vmatpush1.bf16.msra.mxu1 %v8685_v4  ;;  %v422_v4 = vld [vmem:[#allocation2 + $0x6f8] sm:$0xff] }
 0x169   :  { %2064 = vmatprep.subr.bf16.mxu1 %v8678_v5  ;;  %v8749_v5 = vcombine.low %v426_v58, %v430_v59  ;;  %v8742_v11 = vcombine.high %v418_v8, %v422_v4  ;;  %v278_v21 = vld [vmem:[#allocation2 + $0x278] sm:$0xff] }
 0x16a   :  { %2022 = vmatpush1.bf16.msra.mxu0 %v8549_v14  ;;  %v410_v14 = vld [vmem:[#allocation2 + $0x698] sm:$0xff]  ;;  %v8598_v27 = vcombine.high %v274_v20, %v278_v21 }
 0x16b   :  { %2023 = vmatprep.subr.bf16.mxu0 %v8542_v16  ;;  %v8613_v16 = vcombine.low %v290_v6, %v294_v7  ;;  %v266_v30 = vld [vmem:[#allocation2 + $0x218] sm:$0xff] }
 0x16c   :  { %2065 = vmatpush1.bf16.msra.mxu1 %v8677_v15  ;;  %v414_v15 = vld [vmem:[#allocation2 + $0x6b8] sm:$0xff] }
 0x16d   :  { %2066 = vmatprep.subr.bf16.mxu1 %v8670_v17  ;;  %v8741_v17 = vcombine.low %v418_v8, %v422_v4  ;;  %v8734_v19 = vcombine.high %v410_v14, %v414_v15  ;;  %v270_v31 = vld [vmem:[#allocation2 + $0x238] sm:$0xff] }
 0x16e   :  { %2024 = vmatpush1.bf16.msra.mxu0 %v8541_v22  ;;  %v402_v22 = vld [vmem:[#allocation2 + $0x658] sm:$0xff]  ;;  %v8590_v2 = vcombine.high %v266_v30, %v270_v31 }
 0x16f   :  { %2025 = vmatprep.subr.bf16.mxu0 %v8534_v24  ;;  %v8605_v24 = vcombine.low %v282_v12, %v286_v13 }
 0x170   :  { %2067 = vmatpush1.bf16.msra.mxu1 %v8669_v23  ;;  %v406_v23 = vld [vmem:[#allocation2 + $0x678] sm:$0xff] }
 0x171   :  { %2068 = vmatprep.subr.bf16.mxu1 %v8662_v25  ;;  %v8733_v25 = vcombine.low %v410_v14, %v414_v15  ;;  %v8726_v28 = vcombine.high %v402_v22, %v406_v23  ;;  %v8725_v0 = vcombine.low %v402_v22, %v406_v23 }
 0x172   :  { %2026 = vmatpush1.bf16.msra.mxu0 %v8533_v32  ;;  %v394_v32 = vld [vmem:[#allocation2 + $0x618] sm:$0xff] }
 0x173   :  { %2027 = vmatprep.subr.bf16.mxu0 %v8526_v34  ;;  %v2101_v34 = vlaneseq }
 0x174   :  { %2069 = vmatpush1.bf16.msra.mxu1 %v8661_v33  ;;  %v398_v33 = vld [vmem:[#allocation2 + $0x638] sm:$0xff] }
 0x175   :  { %2070 = vmatprep.subr.bf16.mxu1 %v8654_v35  ;;  %v8597_v35 = vcombine.low %v274_v20, %v278_v21  ;;  %v8718_v36 = vcombine.high %v394_v32, %v398_v33  ;;  %v10535_v1 = vshrl.u32 %v2101_v34, 7 }
 0x176   :  { %2028 = vmatpush1.bf16.msra.mxu0 %v8525_v3  ;;  %v8589_v3 = vcombine.low %v266_v30, %v270_v31 }
 0x177   :  { %2029 = vmatprep.subr.bf16.mxu0 %v8646_v38  ;;  %v10538_v38 = vsub.s32 0, %v10535_v1  ;;  %v10543_v40 = vsub.s32 1, %v10535_v1 }
 0x178   :  { %2071 = vmatpush1.bf16.msra.mxu1 %v8653_v37  ;;  %v8717_v37 = vcombine.low %v394_v32, %v398_v33 }
 0x179   :  { %2072 = vmatprep.subr.bf16.mxu1 %v8774_v39  ;;  %v10540_v39 = vld [vmem:[#allocation10] sm:$0xff] }
 0x17a   :  { %2030 = vmatpush2.bf16.msra.mxu0 %v8645_v44  ;;  %v2104_v42 = vrot.slane %v10540_v39, %v10538_v38  ;;  %v10548_v44 = vld [vmem:[#allocation12] sm:$0xff] }
 0x17b   :  { %2031 = vmatprep.subr.bf16.mxu0 %v8638_v46  ;;  %v2162_v50 = vrot.slane %v10548_v44, %v10538_v38 }
 0x17c   :  { %2073 = vmatpush2.bf16.msra.mxu1 %v8773_v45 }
 0x17d   :  { %2074 = vmatprep.subr.bf16.mxu1 %v8766_v47  ;;  %v2108_v47 = vrot.slane %v10540_v39, %v10543_v40 }
 0x17e   :  { %2032 = vmatpush2.bf16.msra.mxu0 %v8637_v52 }
 0x17f   :  { %2033 = vmatprep.subr.bf16.mxu0 %v8630_v54 }
 0x180   :  { %2075 = vmatpush2.bf16.msra.mxu1 %v8765_v53 }
 0x181   :  { %2076 = vmatprep.subr.bf16.mxu1 %v8758_v55 }
 0x182   :  { %2034 = vmatpush2.bf16.msra.mxu0 %v8629_v60 }
 0x183   :  { %2035 = vmatprep.subr.bf16.mxu0 %v8622_v62 }
 0x184   :  { %2077 = vmatpush2.bf16.msra.mxu1 %v8757_v61 }
 0x185   :  { %2078 = vmatprep.subr.bf16.mxu1 %v8750_v63 }
 0x186   :  { %2036 = vmatpush2.bf16.msra.mxu0 %v8621_v9 }
 0x187   :  { %2037 = vmatprep.subr.bf16.mxu0 %v8614_v10  ;;  %v10562_v10 = vsub.s32 2, %v10535_v1 }
 0x188   :  { %2079 = vmatpush2.bf16.msra.mxu1 %v8749_v5 }
 0x189   :  { %2080 = vmatprep.subr.bf16.mxu1 %v8742_v11  ;;  %v10565_v11 = vsub.s32 3, %v10535_v1  ;;  %v2112_v13 = vrot.slane %v10540_v39, %v10562_v10  ;;  %v2170_v20 = vrot.slane %v10548_v44, %v10562_v10 }
 0x18a   :  { %2038 = vmatpush2.bf16.msra.mxu0 %v8613_v16 }
 0x18b   :  { %2039 = vmatprep.subr.bf16.mxu0 %v8606_v18 }
 0x18c   :  { %2081 = vmatpush2.bf16.msra.mxu1 %v8741_v17  ;;  %v2116_v17 = vrot.slane %v10540_v39, %v10565_v11 }
 0x18d   :  { %2082 = vmatprep.subr.bf16.mxu1 %v8734_v19 }
 0x18e   :  { %2040 = vmatpush2.bf16.msra.mxu0 %v8605_v24 }
 0x18f   :  { %2041 = vmatprep.subr.bf16.mxu0 %v8598_v27 }
 0x190   :  { %2083 = vmatpush2.bf16.msra.mxu1 %v8733_v25  ;;  %v2174_v25 = vrot.slane %v10548_v44, %v10565_v11 }
 0x191   :  { %2084 = vmatprep.subr.bf16.mxu1 %v8726_v28 }
 0x192   :  { %2042 = vmatpush2.bf16.msra.mxu0 %v8597_v35 }
 0x193   :  { %2043 = vmatprep.subr.bf16.mxu0 %v8590_v2 }
 0x194   :  { %2085 = vmatpush2.bf16.msra.mxu1 %v8725_v0 }
 0x195   :  { %2086 = vmatprep.subr.bf16.mxu1 %v8718_v36 }
 0x196   :  { %2044 = vmatpush2.bf16.msra.mxu0 %v8589_v3 }
 0x198   :  { %2087 = vmatpush2.bf16.msra.mxu1 %v8717_v37 }
 0x199   :  { %v1789_v41 = vpop.f32.mrf.mxu0  ;;  %2046 = vmatmul.mubr.bf16.vlgmr.msra.gmra.mxu0 %v10517_v26  ;;  %v2166_v26 = vrot.slane %v10548_v44, %v10543_v40 }
 0x19b   :  { %v1832_v43 = vpop.f32.mrf.mxu1  ;;  %2089 = vmatmul.mubr.bf16.vlgmr.msra.gmra.mxu1 %v10521_v29  ;;  %v1791_v46 = vpop.f32.mrf.mxu0 }
 0x19c   :  { %v1833_v45 = vadd.f32 %v1832_v43, %v1789_v41 }
 0x19d   :  { %v1834_v48 = vpop.f32.mrf.mxu1  ;;  %v1793_v52 = vpop.f32.mrf.mxu0 }
 0x19e   :  { %v2141_v49 = vmul.f32 %v2104_v42, %v1833_v45  ;;  %v1835_v51 = vadd.f32 %v1834_v48, %v1791_v46  ;;  %v10580_v45 = vsub.s32 4, %v10535_v1  ;;  %v10583_v46 = vsub.s32 5, %v10535_v1 }
 0x19f   :  { %v1836_v53 = vpop.f32.mrf.mxu1  ;;  %v1795_v56 = vpop.f32.mrf.mxu0 }
 0x1a0   :  { %v2142_v54 = vmul.f32 %v2108_v47, %v1835_v51  ;;  %v1837_v55 = vadd.f32 %v1836_v53, %v1793_v52  ;;  %v2199_v57 = vadd.f32 %v2162_v50, %v2141_v49  ;;  %v2120_v48 = vrot.slane %v10540_v39, %v10580_v45 }
 0x1a1   :  { %v1838_v29 = vpop.f32.mrf.mxu1  ;;  %v2124_v52 = vrot.slane %v10540_v39, %v10583_v46 }
 0x1a2   :  { %v2149_v58 = vmul.f32 %v2104_v42, %v1837_v55  ;;  %v1839_v59 = vadd.f32 %v1838_v29, %v1795_v56  ;;  %v2200_v60 = vadd.f32 %v2166_v26, %v2142_v54  ;;  %v2215_v63 = vmax.f32 %v2199_v57, 0.0 }
 0x1a4   :  { %v2207_v61 = vadd.f32 %v2162_v50, %v2149_v58  ;;  %v2150_v62 = vmul.f32 %v2108_v47, %v1839_v59  ;;  %v2216_v8 = vmax.f32 %v2200_v60, 0.0  ;;  %v2182_v58 = vrot.slane %v10548_v44, %v10583_v46 }
 0x1a6   :  { %v2223_v6 = vmax.f32 %v2207_v61, 0.0  ;;  %v2208_v7 = vadd.f32 %v2166_v26, %v2150_v62  ;;  %v2178_v26 = vrot.slane %v10548_v44, %v10580_v45 }
 0x1a8   :  { %v10557_v4 = vpack.c.bf16 %v2223_v6, %v2215_v63  ;;  %v2224_v9 = vmax.f32 %v2208_v7, 0.0 }
 0x1aa   :  { %v10559_v5 = vpack.c.bf16 %v2224_v9, %v2216_v8 }
 0x1d9   :  { %v1875_v12 = vpop.f32.mrf.mxu0 }
 0x1db   :  { %v1918_v14 = vpop.f32.mrf.mxu1  ;;  %v1877_v16 = vpop.f32.mrf.mxu0 }
 0x1dc   :  { %v1919_v15 = vadd.f32 %v1918_v14, %v1875_v12 }
 0x1dd   :  { %v1920_v18 = vpop.f32.mrf.mxu1  ;;  %v1879_v22 = vpop.f32.mrf.mxu0 }
 0x1de   :  { %v2143_v19 = vmul.f32 %v2112_v13, %v1919_v15  ;;  %v1921_v21 = vadd.f32 %v1920_v18, %v1877_v16 }
 0x1df   :  { %v1922_v23 = vpop.f32.mrf.mxu1  ;;  %v1881_v28 = vpop.f32.mrf.mxu0 }
 0x1e0   :  { %v2144_v24 = vmul.f32 %v2116_v17, %v1921_v21  ;;  %v1923_v27 = vadd.f32 %v1922_v23, %v1879_v22  ;;  %v2201_v31 = vadd.f32 %v2170_v20, %v2143_v19  ;;  %v10598_v19 = vsub.s32 6, %v10535_v1 }
 0x1e1   :  { %v1924_v30 = vpop.f32.mrf.mxu1 }
 0x1e2   :  { %v2151_v32 = vmul.f32 %v2112_v13, %v1923_v27  ;;  %v1925_v33 = vadd.f32 %v1924_v30, %v1881_v28  ;;  %v2202_v34 = vadd.f32 %v2174_v25, %v2144_v24  ;;  %v2217_v2 = vmax.f32 %v2201_v31, 0.0 }
 0x1e3   :  { %v2128_v22 = vrot.slane %v10540_v39, %v10598_v19  ;;  %v2186_v31 = vrot.slane %v10548_v44, %v10598_v19 }
 0x1e4   :  { %v2209_v35 = vadd.f32 %v2170_v20, %v2151_v32  ;;  %v2152_v0 = vmul.f32 %v2116_v17, %v1925_v33  ;;  %v2218_v37 = vmax.f32 %v2202_v34, 0.0  ;;  %v10601_v20 = vsub.s32 7, %v10535_v1 }
 0x1e6   :  { %v2225_v36 = vmax.f32 %v2209_v35, 0.0  ;;  %v2210_v3 = vadd.f32 %v2174_v25, %v2152_v0  ;;  %v2132_v27 = vrot.slane %v10540_v39, %v10601_v20  ;;  %v2190_v35 = vrot.slane %v10548_v44, %v10601_v20 }
 0x1e8   :  { %v10575_v41 = vpack.c.bf16 %v2225_v36, %v2217_v2  ;;  %v2226_v42 = vmax.f32 %v2210_v3, 0.0 }
 0x1ea   :  { %v10577_v43 = vpack.c.bf16 %v2226_v42, %v2218_v37 }
 0x219   :  { %v1961_v47 = vpop.f32.mrf.mxu0 }
 0x21b   :  { %v2004_v49 = vpop.f32.mrf.mxu1  ;;  %v1963_v51 = vpop.f32.mrf.mxu0 }
 0x21c   :  { %v2005_v50 = vadd.f32 %v2004_v49, %v1961_v47 }
 0x21d   :  { %v2006_v53 = vpop.f32.mrf.mxu1  ;;  %v1965_v56 = vpop.f32.mrf.mxu0 }
 0x21e   :  { %v2145_v54 = vmul.f32 %v2120_v48, %v2005_v50  ;;  %v2007_v55 = vadd.f32 %v2006_v53, %v1963_v51 }
 0x21f   :  { %v2008_v29 = vpop.f32.mrf.mxu1  ;;  %v1967_v60 = vpop.f32.mrf.mxu0 }
 0x220   :  { %v2146_v57 = vmul.f32 %v2124_v52, %v2007_v55  ;;  %v2009_v59 = vadd.f32 %v2008_v29, %v1965_v56  ;;  %v2203_v62 = vadd.f32 %v2178_v26, %v2145_v54 }
 0x221   :  { %v2010_v61 = vpop.f32.mrf.mxu1 }
 0x222   :  { %v2153_v63 = vmul.f32 %v2120_v48, %v2009_v59  ;;  %v2011_v6 = vadd.f32 %v2010_v61, %v1967_v60  ;;  %v2204_v7 = vadd.f32 %v2182_v58, %v2146_v57  ;;  %v2219_v12 = vmax.f32 %v2203_v62, 0.0 }
 0x224   :  { %v2211_v8 = vadd.f32 %v2178_v26, %v2153_v63  ;;  %v2154_v9 = vmul.f32 %v2124_v52, %v2011_v6  ;;  %v2220_v15 = vmax.f32 %v2204_v7, 0.0 }
 0x226   :  { %v2227_v13 = vmax.f32 %v2211_v8, 0.0  ;;  %v2212_v14 = vadd.f32 %v2182_v58, %v2154_v9 }
 0x228   :  { %v10593_v16 = vpack.c.bf16 %v2227_v13, %v2219_v12  ;;  %v2228_v17 = vmax.f32 %v2212_v14, 0.0 }
 0x22a   :  { %v10595_v18 = vpack.c.bf16 %v2228_v17, %v2220_v15 }
 0x259   :  { %v2047_v21 = vpop.f32.mrf.mxu0 }
 0x25b   :  { %v2090_v23 = vpop.f32.mrf.mxu1  ;;  %v2049_v25 = vpop.f32.mrf.mxu0 }
 0x25c   :  { %v2091_v24 = vadd.f32 %v2090_v23, %v2047_v21 }
 0x25d   :  { %v2092_v28 = vpop.f32.mrf.mxu1  ;;  %v2051_v33 = vpop.f32.mrf.mxu0 }
 0x25e   :  { %v2147_v30 = vmul.f32 %v2128_v22, %v2091_v24  ;;  %v2093_v32 = vadd.f32 %v2092_v28, %v2049_v25 }
 0x25f   :  { %v2094_v34 = vpop.f32.mrf.mxu1  ;;  %v2053_v2 = vpop.f32.mrf.mxu0 }
 0x260   :  { %v2148_v1 = vmul.f32 %v2132_v27, %v2093_v32  ;;  %v2095_v0 = vadd.f32 %v2094_v34, %v2051_v33  ;;  %v2205_v3 = vadd.f32 %v2186_v31, %v2147_v30 }
 0x261   :  { %v2096_v36 = vpop.f32.mrf.mxu1 }
 0x262   :  { %v2155_v37 = vmul.f32 %v2128_v22, %v2095_v0  ;;  %v2097_v42 = vadd.f32 %v2096_v36, %v2053_v2  ;;  %v2206_v47 = vadd.f32 %v2190_v35, %v2148_v1  ;;  %v2221_v49 = vmax.f32 %v2205_v3, 0.0 }
 0x264   :  { %v2213_v39 = vadd.f32 %v2186_v31, %v2155_v37  ;;  %v2156_v48 = vmul.f32 %v2132_v27, %v2097_v42  ;;  %v2222_v52 = vmax.f32 %v2206_v47, 0.0 }
 0x266   :  { %v2229_v50 = vmax.f32 %v2213_v39, 0.0  ;;  %v2214_v51 = vadd.f32 %v2190_v35, %v2156_v48 }
 0x268   :  { %v10611_v53 = vpack.c.bf16 %v2229_v50, %v2221_v49  ;;  %v2230_v54 = vmax.f32 %v2214_v51, 0.0 }
 0x26a   :  { %v10613_v26 = vpack.c.bf16 %v2230_v54, %v2222_v52 }
 0x26b   :  { %10362 = dma.done.wait [#allocation6 + $0x1], 65536 }
 0x26c   :  { %10363 = vsyncadd [#allocation6 + $0x1], 4294901760  ;;  %5347 = vmatprep.mubr.bf16.mxu0 %v10559_v5  ;;  %5390 = vmatprep.mubr.bf16.mxu1 %v10577_v43  ;;  %v2299_v44 = vld [vmem:[#allocation3 + $0x1c0] sm:$0xff] }
 0x26d   :  { %v2303_v55 = vld [vmem:[#allocation3 + $0x1e0] sm:$0xff] }
 0x26e   :  { %v2427_v56 = vld [vmem:[#allocation3 + $0x5c0] sm:$0xff]  ;;  %v8832_v29 = vcombine.high %v2299_v44, %v2303_v55  ;;  %v8831_v58 = vcombine.low %v2299_v44, %v2303_v55 }
 0x26f   :  { %v2431_v57 = vld [vmem:[#allocation3 + $0x5e0] sm:$0xff] }
 0x270   :  { %v2291_v59 = vld [vmem:[#allocation3 + $0x180] sm:$0xff]  ;;  %v8960_v61 = vcombine.high %v2427_v56, %v2431_v57  ;;  %v8959_v62 = vcombine.low %v2427_v56, %v2431_v57  ;;  %5315 = vmatprep.subr.bf16.mxu0 %v8832_v29 }
 0x271   :  { %v2295_v60 = vld [vmem:[#allocation3 + $0x1a0] sm:$0xff]  ;;  %5316 = vmatpush1.bf16.msra.mxu0 %v8831_v58 }
 0x272   :  { %v8824_v63 = vcombine.high %v2291_v59, %v2295_v60  ;;  %v2419_v6 = vld [vmem:[#allocation3 + $0x580] sm:$0xff]  ;;  %5358 = vmatprep.subr.bf16.mxu1 %v8960_v61  ;;  %v8823_v15 = vcombine.low %v2291_v59, %v2295_v60 }
 0x273   :  { %v2423_v7 = vld [vmem:[#allocation3 + $0x5a0] sm:$0xff]  ;;  %5359 = vmatpush1.bf16.msra.mxu1 %v8959_v62 }
 0x274   :  { %v2283_v8 = vld [vmem:[#allocation3 + $0x140] sm:$0xff]  ;;  %v8952_v9 = vcombine.high %v2419_v6, %v2423_v7  ;;  %5317 = vmatprep.subr.bf16.mxu0 %v8824_v63  ;;  %v8951_v17 = vcombine.low %v2419_v6, %v2423_v7 }
 0x275   :  { %v2287_v12 = vld [vmem:[#allocation3 + $0x160] sm:$0xff]  ;;  %5318 = vmatpush1.bf16.msra.mxu0 %v8823_v15 }
 0x276   :  { %v2411_v13 = vld [vmem:[#allocation3 + $0x540] sm:$0xff]  ;;  %v8816_v21 = vcombine.high %v2283_v8, %v2287_v12  ;;  %5360 = vmatprep.subr.bf16.mxu1 %v8952_v9  ;;  %v8815_v28 = vcombine.low %v2283_v8, %v2287_v12 }
 0x277   :  { %v2415_v14 = vld [vmem:[#allocation3 + $0x560] sm:$0xff]  ;;  %5361 = vmatpush1.bf16.msra.mxu1 %v8951_v17 }
 0x278   :  { %v8944_v22 = vcombine.high %v2411_v13, %v2415_v14  ;;  %v2275_v23 = vld [vmem:[#allocation3 + $0x100] sm:$0xff]  ;;  %5319 = vmatprep.subr.bf16.mxu0 %v8816_v21  ;;  %v8943_v30 = vcombine.low %v2411_v13, %v2415_v14 }
 0x279   :  { %v2279_v24 = vld [vmem:[#allocation3 + $0x120] sm:$0xff]  ;;  %5320 = vmatpush1.bf16.msra.mxu0 %v8815_v28 }
 0x27a   :  { %v2403_v25 = vld [vmem:[#allocation3 + $0x500] sm:$0xff]  ;;  %v8808_v31 = vcombine.high %v2275_v23, %v2279_v24  ;;  %5362 = vmatprep.subr.bf16.mxu1 %v8944_v22  ;;  %v8807_v0 = vcombine.low %v2275_v23, %v2279_v24 }
 0x27b   :  { %v2407_v27 = vld [vmem:[#allocation3 + $0x520] sm:$0xff]  ;;  %5363 = vmatpush1.bf16.msra.mxu1 %v8943_v30 }
 0x27c   :  { %v8936_v32 = vcombine.high %v2403_v25, %v2407_v27  ;;  %v2267_v33 = vld [vmem:[#allocation3 + $0xc0] sm:$0xff]  ;;  %5321 = vmatprep.subr.bf16.mxu0 %v8808_v31  ;;  %v8935_v2 = vcombine.low %v2403_v25, %v2407_v27 }
 0x27d   :  { %v2271_v34 = vld [vmem:[#allocation3 + $0xe0] sm:$0xff]  ;;  %5322 = vmatpush1.bf16.msra.mxu0 %v8807_v0 }
 0x27e   :  { %v2395_v1 = vld [vmem:[#allocation3 + $0x4c0] sm:$0xff]  ;;  %v8800_v36 = vcombine.high %v2267_v33, %v2271_v34  ;;  %5364 = vmatprep.subr.bf16.mxu1 %v8936_v32  ;;  %v8799_v48 = vcombine.low %v2267_v33, %v2271_v34 }
 0x27f   :  { %v2399_v35 = vld [vmem:[#allocation3 + $0x4e0] sm:$0xff]  ;;  %5365 = vmatpush1.bf16.msra.mxu1 %v8935_v2 }
 0x280   :  { %v8928_v3 = vcombine.high %v2395_v1, %v2399_v35  ;;  %v2259_v37 = vld [vmem:[#allocation3 + $0x80] sm:$0xff]  ;;  %5323 = vmatprep.subr.bf16.mxu0 %v8800_v36  ;;  %v8927_v49 = vcombine.low %v2395_v1, %v2399_v35 }
 0x281   :  { %v2263_v42 = vld [vmem:[#allocation3 + $0xa0] sm:$0xff]  ;;  %5324 = vmatpush1.bf16.msra.mxu0 %v8799_v48 }
 0x282   :  { %v2387_v47 = vld [vmem:[#allocation3 + $0x480] sm:$0xff]  ;;  %v8792_v50 = vcombine.high %v2259_v37, %v2263_v42  ;;  %5366 = vmatprep.subr.bf16.mxu1 %v8928_v3  ;;  %v8791_v56 = vcombine.low %v2259_v37, %v2263_v42 }
 0x283   :  { %v2391_v39 = vld [vmem:[#allocation3 + $0x4a0] sm:$0xff]  ;;  %5367 = vmatpush1.bf16.msra.mxu1 %v8927_v49 }
 0x284   :  { %v8920_v51 = vcombine.high %v2387_v47, %v2391_v39  ;;  %v2251_v52 = vld [vmem:[#allocation3 + $0x40] sm:$0xff]  ;;  %5325 = vmatprep.subr.bf16.mxu0 %v8792_v50  ;;  %v8919_v29 = vcombine.low %v2387_v47, %v2391_v39 }
 0x285   :  { %v2255_v54 = vld [vmem:[#allocation3 + $0x60] sm:$0xff]  ;;  %5326 = vmatpush1.bf16.msra.mxu0 %v8791_v56 }
 0x286   :  { %v2379_v44 = vld [vmem:[#allocation3 + $0x440] sm:$0xff]  ;;  %v8784_v57 = vcombine.high %v2251_v52, %v2255_v54  ;;  %5368 = vmatprep.subr.bf16.mxu1 %v8920_v51  ;;  %v8783_v63 = vcombine.low %v2251_v52, %v2255_v54 }
 0x287   :  { %v2383_v55 = vld [vmem:[#allocation3 + $0x460] sm:$0xff]  ;;  %5369 = vmatpush1.bf16.msra.mxu1 %v8919_v29 }
 0x288   :  { %v8912_v58 = vcombine.high %v2379_v44, %v2383_v55  ;;  %v2243_v59 = vld [vmem:[#allocation3] sm:$0xff]  ;;  %5327 = vmatprep.subr.bf16.mxu0 %v8784_v57  ;;  %v8911_v6 = vcombine.low %v2379_v44, %v2383_v55 }
 0x289   :  { %v2247_v60 = vld [vmem:[#allocation3 + $0x20] sm:$0xff]  ;;  %5328 = vmatpush1.bf16.msra.mxu0 %v8783_v63 }
 0x28a   :  { %v2371_v61 = vld [vmem:[#allocation3 + $0x400] sm:$0xff]  ;;  %v8776_v7 = vcombine.high %v2243_v59, %v2247_v60  ;;  %5370 = vmatprep.subr.bf16.mxu1 %v8912_v58  ;;  %v8775_v15 = vcombine.low %v2243_v59, %v2247_v60 }
 0x28b   :  { %v2375_v62 = vld [vmem:[#allocation3 + $0x420] sm:$0xff]  ;;  %5371 = vmatpush1.bf16.msra.mxu1 %v8911_v6 }
 0x28c   :  { %v8904_v8 = vcombine.high %v2371_v61, %v2375_v62  ;;  %v2363_v9 = vld [vmem:[#allocation3 + $0x3c0] sm:$0xff]  ;;  %5329 = vmatprep.subr.bf16.mxu0 %v8776_v7  ;;  %v8903_v17 = vcombine.low %v2371_v61, %v2375_v62 }
 0x28d   :  { %v2367_v12 = vld [vmem:[#allocation3 + $0x3e0] sm:$0xff]  ;;  %5330 = vmatpush1.bf16.msra.mxu0 %v8775_v15 }
 0x28e   :  { %v2491_v13 = vld [vmem:[#allocation3 + $0x7c0] sm:$0xff]  ;;  %v8896_v21 = vcombine.high %v2363_v9, %v2367_v12  ;;  %5372 = vmatprep.subr.bf16.mxu1 %v8904_v8  ;;  %v8895_v28 = vcombine.low %v2363_v9, %v2367_v12 }
 0x28f   :  { %v2495_v14 = vld [vmem:[#allocation3 + $0x7e0] sm:$0xff]  ;;  %5373 = vmatpush1.bf16.msra.mxu1 %v8903_v17 }
 0x290   :  { %v9024_v22 = vcombine.high %v2491_v13, %v2495_v14  ;;  %v2355_v23 = vld [vmem:[#allocation3 + $0x380] sm:$0xff]  ;;  %5331 = vmatprep.subr.bf16.mxu0 %v8896_v21  ;;  %v9023_v30 = vcombine.low %v2491_v13, %v2495_v14 }
 0x291   :  { %v2359_v24 = vld [vmem:[#allocation3 + $0x3a0] sm:$0xff]  ;;  %5332 = vmatpush2.bf16.msra.mxu0 %v8895_v28 }
 0x292   :  { %v2483_v25 = vld [vmem:[#allocation3 + $0x780] sm:$0xff]  ;;  %v8888_v31 = vcombine.high %v2355_v23, %v2359_v24  ;;  %5374 = vmatprep.subr.bf16.mxu1 %v9024_v22  ;;  %v8887_v0 = vcombine.low %v2355_v23, %v2359_v24 }
 0x293   :  { %v2487_v27 = vld [vmem:[#allocation3 + $0x7a0] sm:$0xff]  ;;  %5375 = vmatpush2.bf16.msra.mxu1 %v9023_v30 }
 0x294   :  { %v9016_v32 = vcombine.high %v2483_v25, %v2487_v27  ;;  %v2347_v33 = vld [vmem:[#allocation3 + $0x340] sm:$0xff]  ;;  %5333 = vmatprep.subr.bf16.mxu0 %v8888_v31  ;;  %v9015_v2 = vcombine.low %v2483_v25, %v2487_v27 }
 0x295   :  { %v2351_v34 = vld [vmem:[#allocation3 + $0x360] sm:$0xff]  ;;  %5334 = vmatpush2.bf16.msra.mxu0 %v8887_v0 }
 0x296   :  { %v2475_v1 = vld [vmem:[#allocation3 + $0x740] sm:$0xff]  ;;  %v8880_v36 = vcombine.high %v2347_v33, %v2351_v34  ;;  %5376 = vmatprep.subr.bf16.mxu1 %v9016_v32  ;;  %v8879_v48 = vcombine.low %v2347_v33, %v2351_v34 }
 0x297   :  { %v2479_v35 = vld [vmem:[#allocation3 + $0x760] sm:$0xff]  ;;  %5377 = vmatpush2.bf16.msra.mxu1 %v9015_v2 }
 0x298   :  { %v9008_v3 = vcombine.high %v2475_v1, %v2479_v35  ;;  %v2339_v37 = vld [vmem:[#allocation3 + $0x300] sm:$0xff]  ;;  %5335 = vmatprep.subr.bf16.mxu0 %v8880_v36  ;;  %v9007_v49 = vcombine.low %v2475_v1, %v2479_v35 }
 0x299   :  { %v2343_v42 = vld [vmem:[#allocation3 + $0x320] sm:$0xff]  ;;  %5336 = vmatpush2.bf16.msra.mxu0 %v8879_v48 }
 0x29a   :  { %v2467_v47 = vld [vmem:[#allocation3 + $0x700] sm:$0xff]  ;;  %v8872_v50 = vcombine.high %v2339_v37, %v2343_v42  ;;  %5378 = vmatprep.subr.bf16.mxu1 %v9008_v3  ;;  %v8871_v56 = vcombine.low %v2339_v37, %v2343_v42 }
 0x29b   :  { %v2471_v39 = vld [vmem:[#allocation3 + $0x720] sm:$0xff]  ;;  %5379 = vmatpush2.bf16.msra.mxu1 %v9007_v49 }
 0x29c   :  { %v9000_v51 = vcombine.high %v2467_v47, %v2471_v39  ;;  %v2331_v52 = vld [vmem:[#allocation3 + $0x2c0] sm:$0xff]  ;;  %5337 = vmatprep.subr.bf16.mxu0 %v8872_v50  ;;  %v8999_v29 = vcombine.low %v2467_v47, %v2471_v39 }
 0x29d   :  { %v2335_v54 = vld [vmem:[#allocation3 + $0x2e0] sm:$0xff]  ;;  %5338 = vmatpush2.bf16.msra.mxu0 %v8871_v56 }
 0x29e   :  { %v2459_v44 = vld [vmem:[#allocation3 + $0x6c0] sm:$0xff]  ;;  %v8864_v57 = vcombine.high %v2331_v52, %v2335_v54  ;;  %5380 = vmatprep.subr.bf16.mxu1 %v9000_v51  ;;  %v8863_v63 = vcombine.low %v2331_v52, %v2335_v54 }
 0x29f   :  { %v2463_v55 = vld [vmem:[#allocation3 + $0x6e0] sm:$0xff]  ;;  %5381 = vmatpush2.bf16.msra.mxu1 %v8999_v29 }
 0x2a0   :  { %v8992_v58 = vcombine.high %v2459_v44, %v2463_v55  ;;  %v2323_v59 = vld [vmem:[#allocation3 + $0x280] sm:$0xff]  ;;  %5339 = vmatprep.subr.bf16.mxu0 %v8864_v57  ;;  %v8991_v6 = vcombine.low %v2459_v44, %v2463_v55 }
 0x2a1   :  { %v2327_v60 = vld [vmem:[#allocation3 + $0x2a0] sm:$0xff]  ;;  %5340 = vmatpush2.bf16.msra.mxu0 %v8863_v63 }
 0x2a2   :  { %v2451_v61 = vld [vmem:[#allocation3 + $0x680] sm:$0xff]  ;;  %v8856_v7 = vcombine.high %v2323_v59, %v2327_v60  ;;  %5382 = vmatprep.subr.bf16.mxu1 %v8992_v58  ;;  %v8855_v15 = vcombine.low %v2323_v59, %v2327_v60 }
 0x2a3   :  { %v2455_v62 = vld [vmem:[#allocation3 + $0x6a0] sm:$0xff]  ;;  %5383 = vmatpush2.bf16.msra.mxu1 %v8991_v6 }
 0x2a4   :  { %v8984_v8 = vcombine.high %v2451_v61, %v2455_v62  ;;  %v2315_v9 = vld [vmem:[#allocation3 + $0x240] sm:$0xff]  ;;  %5341 = vmatprep.subr.bf16.mxu0 %v8856_v7  ;;  %v8983_v17 = vcombine.low %v2451_v61, %v2455_v62 }
 0x2a5   :  { %v2319_v12 = vld [vmem:[#allocation3 + $0x260] sm:$0xff]  ;;  %5342 = vmatpush2.bf16.msra.mxu0 %v8855_v15 }
 0x2a6   :  { %v2443_v13 = vld [vmem:[#allocation3 + $0x640] sm:$0xff]  ;;  %v8848_v21 = vcombine.high %v2315_v9, %v2319_v12  ;;  %5384 = vmatprep.subr.bf16.mxu1 %v8984_v8  ;;  %v8847_v28 = vcombine.low %v2315_v9, %v2319_v12 }
 0x2a7   :  { %v2447_v14 = vld [vmem:[#allocation3 + $0x660] sm:$0xff]  ;;  %5385 = vmatpush2.bf16.msra.mxu1 %v8983_v17 }
 0x2a8   :  { %v8976_v22 = vcombine.high %v2443_v13, %v2447_v14  ;;  %v2307_v23 = vld [vmem:[#allocation3 + $0x200] sm:$0xff]  ;;  %5343 = vmatprep.subr.bf16.mxu0 %v8848_v21  ;;  %v8975_v30 = vcombine.low %v2443_v13, %v2447_v14 }
 0x2a9   :  { %v2311_v24 = vld [vmem:[#allocation3 + $0x220] sm:$0xff]  ;;  %5344 = vmatpush2.bf16.msra.mxu0 %v8847_v28 }
 0x2aa   :  { %v2435_v25 = vld [vmem:[#allocation3 + $0x600] sm:$0xff]  ;;  %v8840_v31 = vcombine.high %v2307_v23, %v2311_v24  ;;  %5386 = vmatprep.subr.bf16.mxu1 %v8976_v22  ;;  %v8839_v0 = vcombine.low %v2307_v23, %v2311_v24 }
 0x2ab   :  { %v2439_v27 = vld [vmem:[#allocation3 + $0x620] sm:$0xff]  ;;  %5387 = vmatpush2.bf16.msra.mxu1 %v8975_v30 }
 0x2ac   :  { %v8968_v32 = vcombine.high %v2435_v25, %v2439_v27  ;;  %v2555_v33 = vld [vmem:[#allocation3 + $0x9c0] sm:$0xff]  ;;  %5345 = vmatprep.subr.bf16.mxu0 %v8840_v31  ;;  %v8967_v2 = vcombine.low %v2435_v25, %v2439_v27 }
 0x2ad   :  { %v2559_v34 = vld [vmem:[#allocation3 + $0x9e0] sm:$0xff]  ;;  %5346 = vmatpush2.bf16.msra.mxu0 %v8839_v0 }
 0x2ae   :  { %v2683_v1 = vld [vmem:[#allocation3 + $0xdc0] sm:$0xff]  ;;  %v9088_v36 = vcombine.high %v2555_v33, %v2559_v34  ;;  %5388 = vmatprep.subr.bf16.mxu1 %v8968_v32  ;;  %v9087_v48 = vcombine.low %v2555_v33, %v2559_v34 }
 0x2af   :  { %v2687_v35 = vld [vmem:[#allocation3 + $0xde0] sm:$0xff]  ;;  %5389 = vmatpush2.bf16.msra.mxu1 %v8967_v2 }
 0x2b0   :  { %v9216_v3 = vcombine.high %v2683_v1, %v2687_v35  ;;  %v2547_v37 = vld [vmem:[#allocation3 + $0x980] sm:$0xff]  ;;  %5401 = vmatprep.subr.bf16.mxu0 %v9088_v36  ;;  %v9215_v49 = vcombine.low %v2683_v1, %v2687_v35  ;;  %5348 = vmatmul.mubr.bf16.vlgmr.msra.gmra.mxu0 %v10557_v4 }
 0x2b1   :  { %v2551_v42 = vld [vmem:[#allocation3 + $0x9a0] sm:$0xff]  ;;  %5402 = vmatpush1.bf16.msra.mxu0 %v9087_v48  ;;  %5433 = vmatprep.mubr.bf16.mxu0 %v10595_v18 }
 0x2b2   :  { %v2675_v47 = vld [vmem:[#allocation3 + $0xd80] sm:$0xff]  ;;  %v9080_v50 = vcombine.high %v2547_v37, %v2551_v42  ;;  %5444 = vmatprep.subr.bf16.mxu1 %v9216_v3  ;;  %5391 = vmatmul.mubr.bf16.vlgmr.msra.gmra.mxu1 %v10575_v41  ;;  %v9079_v56 = vcombine.low %v2547_v37, %v2551_v42 }
 0x2b3   :  { %v2679_v39 = vld [vmem:[#allocation3 + $0xda0] sm:$0xff]  ;;  %5445 = vmatpush1.bf16.msra.mxu1 %v9215_v49  ;;  %5476 = vmatprep.mubr.bf16.mxu1 %v10613_v26 }
 0x2b4   :  { %v9208_v51 = vcombine.high %v2675_v47, %v2679_v39  ;;  %v2539_v52 = vld [vmem:[#allocation3 + $0x940] sm:$0xff]  ;;  %5403 = vmatprep.subr.bf16.mxu0 %v9080_v50  ;;  %v9207_v29 = vcombine.low %v2675_v47, %v2679_v39 }
 0x2b5   :  { %v2543_v54 = vld [vmem:[#allocation3 + $0x960] sm:$0xff]  ;;  %5404 = vmatpush1.bf16.msra.mxu0 %v9079_v56 }
 0x2b6   :  { %v2667_v44 = vld [vmem:[#allocation3 + $0xd40] sm:$0xff]  ;;  %v9072_v57 = vcombine.high %v2539_v52, %v2543_v54  ;;  %5446 = vmatprep.subr.bf16.mxu1 %v9208_v51  ;;  %v9071_v63 = vcombine.low %v2539_v52, %v2543_v54 }
 0x2b7   :  { %v2671_v55 = vld [vmem:[#allocation3 + $0xd60] sm:$0xff]  ;;  %5447 = vmatpush1.bf16.msra.mxu1 %v9207_v29 }
 0x2b8   :  { %v9200_v58 = vcombine.high %v2667_v44, %v2671_v55  ;;  %v2531_v59 = vld [vmem:[#allocation3 + $0x900] sm:$0xff]  ;;  %5405 = vmatprep.subr.bf16.mxu0 %v9072_v57  ;;  %v9199_v6 = vcombine.low %v2667_v44, %v2671_v55 }
 0x2b9   :  { %v2535_v60 = vld [vmem:[#allocation3 + $0x920] sm:$0xff]  ;;  %5406 = vmatpush1.bf16.msra.mxu0 %v9071_v63 }
 0x2ba   :  { %v2659_v61 = vld [vmem:[#allocation3 + $0xd00] sm:$0xff]  ;;  %v9064_v7 = vcombine.high %v2531_v59, %v2535_v60  ;;  %5448 = vmatprep.subr.bf16.mxu1 %v9200_v58  ;;  %v9063_v15 = vcombine.low %v2531_v59, %v2535_v60 }
 0x2bb   :  { %v2663_v62 = vld [vmem:[#allocation3 + $0xd20] sm:$0xff]  ;;  %5449 = vmatpush1.bf16.msra.mxu1 %v9199_v6 }
 0x2bc   :  { %v9192_v8 = vcombine.high %v2659_v61, %v2663_v62  ;;  %v2523_v9 = vld [vmem:[#allocation3 + $0x8c0] sm:$0xff]  ;;  %5407 = vmatprep.subr.bf16.mxu0 %v9064_v7  ;;  %v9191_v17 = vcombine.low %v2659_v61, %v2663_v62 }
 0x2bd   :  { %v2527_v12 = vld [vmem:[#allocation3 + $0x8e0] sm:$0xff]  ;;  %5408 = vmatpush1.bf16.msra.mxu0 %v9063_v15 }
 0x2be   :  { %v2651_v13 = vld [vmem:[#allocation3 + $0xcc0] sm:$0xff]  ;;  %v9056_v21 = vcombine.high %v2523_v9, %v2527_v12  ;;  %5450 = vmatprep.subr.bf16.mxu1 %v9192_v8  ;;  %v9055_v28 = vcombine.low %v2523_v9, %v2527_v12 }
 0x2bf   :  { %v2655_v14 = vld [vmem:[#allocation3 + $0xce0] sm:$0xff]  ;;  %5451 = vmatpush1.bf16.msra.mxu1 %v9191_v17 }
 0x2c0   :  { %v9184_v22 = vcombine.high %v2651_v13, %v2655_v14  ;;  %v2515_v23 = vld [vmem:[#allocation3 + $0x880] sm:$0xff]  ;;  %5409 = vmatprep.subr.bf16.mxu0 %v9056_v21  ;;  %v9183_v30 = vcombine.low %v2651_v13, %v2655_v14 }
 0x2c1   :  { %v2519_v24 = vld [vmem:[#allocation3 + $0x8a0] sm:$0xff]  ;;  %5410 = vmatpush1.bf16.msra.mxu0 %v9055_v28 }
 0x2c2   :  { %v2643_v25 = vld [vmem:[#allocation3 + $0xc80] sm:$0xff]  ;;  %v9048_v31 = vcombine.high %v2515_v23, %v2519_v24  ;;  %5452 = vmatprep.subr.bf16.mxu1 %v9184_v22  ;;  %v9047_v0 = vcombine.low %v2515_v23, %v2519_v24 }
 0x2c3   :  { %v2647_v27 = vld [vmem:[#allocation3 + $0xca0] sm:$0xff]  ;;  %5453 = vmatpush1.bf16.msra.mxu1 %v9183_v30 }
 0x2c4   :  { %v9176_v32 = vcombine.high %v2643_v25, %v2647_v27  ;;  %v2507_v33 = vld [vmem:[#allocation3 + $0x840] sm:$0xff]  ;;  %5411 = vmatprep.subr.bf16.mxu0 %v9048_v31  ;;  %v9175_v2 = vcombine.low %v2643_v25, %v2647_v27 }
 0x2c5   :  { %v2511_v34 = vld [vmem:[#allocation3 + $0x860] sm:$0xff]  ;;  %5412 = vmatpush1.bf16.msra.mxu0 %v9047_v0 }
 0x2c6   :  { %v2635_v1 = vld [vmem:[#allocation3 + $0xc40] sm:$0xff]  ;;  %v9040_v36 = vcombine.high %v2507_v33, %v2511_v34  ;;  %5454 = vmatprep.subr.bf16.mxu1 %v9176_v32  ;;  %v9039_v48 = vcombine.low %v2507_v33, %v2511_v34 }
 0x2c7   :  { %v2639_v35 = vld [vmem:[#allocation3 + $0xc60] sm:$0xff]  ;;  %5455 = vmatpush1.bf16.msra.mxu1 %v9175_v2 }
 0x2c8   :  { %v9168_v3 = vcombine.high %v2635_v1, %v2639_v35  ;;  %v2499_v37 = vld [vmem:[#allocation3 + $0x800] sm:$0xff]  ;;  %5413 = vmatprep.subr.bf16.mxu0 %v9040_v36  ;;  %v9167_v49 = vcombine.low %v2635_v1, %v2639_v35 }
 0x2c9   :  { %v2503_v42 = vld [vmem:[#allocation3 + $0x820] sm:$0xff]  ;;  %5414 = vmatpush1.bf16.msra.mxu0 %v9039_v48 }
 0x2ca   :  { %v2627_v47 = vld [vmem:[#allocation3 + $0xc00] sm:$0xff]  ;;  %v9032_v50 = vcombine.high %v2499_v37, %v2503_v42  ;;  %5456 = vmatprep.subr.bf16.mxu1 %v9168_v3  ;;  %v9031_v56 = vcombine.low %v2499_v37, %v2503_v42 }
 0x2cb   :  { %v2631_v39 = vld [vmem:[#allocation3 + $0xc20] sm:$0xff]  ;;  %5457 = vmatpush1.bf16.msra.mxu1 %v9167_v49 }
 0x2cc   :  { %v9160_v51 = vcombine.high %v2627_v47, %v2631_v39  ;;  %v2619_v52 = vld [vmem:[#allocation3 + $0xbc0] sm:$0xff]  ;;  %5415 = vmatprep.subr.bf16.mxu0 %v9032_v50  ;;  %v9159_v29 = vcombine.low %v2627_v47, %v2631_v39 }
 0x2cd   :  { %v2623_v54 = vld [vmem:[#allocation3 + $0xbe0] sm:$0xff]  ;;  %5416 = vmatpush1.bf16.msra.mxu0 %v9031_v56 }
 0x2ce   :  { %v2747_v44 = vld [vmem:[#allocation3 + $0xfc0] sm:$0xff]  ;;  %v9152_v57 = vcombine.high %v2619_v52, %v2623_v54  ;;  %5458 = vmatprep.subr.bf16.mxu1 %v9160_v51  ;;  %v9151_v63 = vcombine.low %v2619_v52, %v2623_v54 }
 0x2cf   :  { %v2751_v55 = vld [vmem:[#allocation3 + $0xfe0] sm:$0xff]  ;;  %5459 = vmatpush1.bf16.msra.mxu1 %v9159_v29 }
 0x2d0   :  { %v9280_v58 = vcombine.high %v2747_v44, %v2751_v55  ;;  %v2611_v59 = vld [vmem:[#allocation3 + $0xb80] sm:$0xff]  ;;  %5417 = vmatprep.subr.bf16.mxu0 %v9152_v57  ;;  %v9279_v6 = vcombine.low %v2747_v44, %v2751_v55 }
 0x2d1   :  { %v2615_v60 = vld [vmem:[#allocation3 + $0xba0] sm:$0xff]  ;;  %5418 = vmatpush2.bf16.msra.mxu0 %v9151_v63 }
 0x2d2   :  { %v2739_v61 = vld [vmem:[#allocation3 + $0xf80] sm:$0xff]  ;;  %v9144_v7 = vcombine.high %v2611_v59, %v2615_v60  ;;  %5460 = vmatprep.subr.bf16.mxu1 %v9280_v58  ;;  %v9143_v15 = vcombine.low %v2611_v59, %v2615_v60 }
 0x2d3   :  { %v2743_v62 = vld [vmem:[#allocation3 + $0xfa0] sm:$0xff]  ;;  %5461 = vmatpush2.bf16.msra.mxu1 %v9279_v6 }
 0x2d4   :  { %v9272_v8 = vcombine.high %v2739_v61, %v2743_v62  ;;  %v2603_v9 = vld [vmem:[#allocation3 + $0xb40] sm:$0xff]  ;;  %5419 = vmatprep.subr.bf16.mxu0 %v9144_v7  ;;  %v9271_v17 = vcombine.low %v2739_v61, %v2743_v62 }
 0x2d5   :  { %v2607_v12 = vld [vmem:[#allocation3 + $0xb60] sm:$0xff]  ;;  %5420 = vmatpush2.bf16.msra.mxu0 %v9143_v15 }
 0x2d6   :  { %v2731_v13 = vld [vmem:[#allocation3 + $0xf40] sm:$0xff]  ;;  %v9136_v21 = vcombine.high %v2603_v9, %v2607_v12  ;;  %5462 = vmatprep.subr.bf16.mxu1 %v9272_v8  ;;  %v9135_v28 = vcombine.low %v2603_v9, %v2607_v12  ;;  %v2300_v9 = vld [vmem:[#allocation3 + $0x1c8] sm:$0xff] }
 0x2d7   :  { %v2735_v14 = vld [vmem:[#allocation3 + $0xf60] sm:$0xff]  ;;  %5463 = vmatpush2.bf16.msra.mxu1 %v9271_v17  ;;  %v2304_v12 = vld [vmem:[#allocation3 + $0x1e8] sm:$0xff] }
 0x2d8   :  { %v9264_v22 = vcombine.high %v2731_v13, %v2735_v14  ;;  %v2595_v23 = vld [vmem:[#allocation3 + $0xb00] sm:$0xff]  ;;  %5421 = vmatprep.subr.bf16.mxu0 %v9136_v21  ;;  %v9263_v30 = vcombine.low %v2731_v13, %v2735_v14  ;;  %v2428_v13 = vld [vmem:[#allocation3 + $0x5c8] sm:$0xff]  ;;  %v8834_v21 = vcombine.high %v2300_v9, %v2304_v12 }
 0x2d9   :  { %v2599_v24 = vld [vmem:[#allocation3 + $0xb20] sm:$0xff]  ;;  %5422 = vmatpush2.bf16.msra.mxu0 %v9135_v28  ;;  %v2432_v14 = vld [vmem:[#allocation3 + $0x5e8] sm:$0xff]  ;;  %v8833_v28 = vcombine.low %v2300_v9, %v2304_v12 }
 0x2da   :  { %v2723_v25 = vld [vmem:[#allocation3 + $0xf00] sm:$0xff]  ;;  %v9128_v31 = vcombine.high %v2595_v23, %v2599_v24  ;;  %5464 = vmatprep.subr.bf16.mxu1 %v9264_v22  ;;  %v9127_v0 = vcombine.low %v2595_v23, %v2599_v24  ;;  %v8962_v22 = vcombine.high %v2428_v13, %v2432_v14  ;;  %v2292_v23 = vld [vmem:[#allocation3 + $0x188] sm:$0xff] }
 0x2db   :  { %v2727_v27 = vld [vmem:[#allocation3 + $0xf20] sm:$0xff]  ;;  %5465 = vmatpush2.bf16.msra.mxu1 %v9263_v30  ;;  %v2296_v24 = vld [vmem:[#allocation3 + $0x1a8] sm:$0xff]  ;;  %v8961_v30 = vcombine.low %v2428_v13, %v2432_v14 }
 0x2dc   :  { %v9256_v32 = vcombine.high %v2723_v25, %v2727_v27  ;;  %v2587_v33 = vld [vmem:[#allocation3 + $0xac0] sm:$0xff]  ;;  %5423 = vmatprep.subr.bf16.mxu0 %v9128_v31  ;;  %v9255_v2 = vcombine.low %v2723_v25, %v2727_v27  ;;  %v2420_v25 = vld [vmem:[#allocation3 + $0x588] sm:$0xff]  ;;  %v8826_v31 = vcombine.high %v2292_v23, %v2296_v24 }
 0x2dd   :  { %v2591_v34 = vld [vmem:[#allocation3 + $0xae0] sm:$0xff]  ;;  %5424 = vmatpush2.bf16.msra.mxu0 %v9127_v0  ;;  %v2424_v27 = vld [vmem:[#allocation3 + $0x5a8] sm:$0xff]  ;;  %v8825_v0 = vcombine.low %v2292_v23, %v2296_v24 }
 0x2de   :  { %v2715_v1 = vld [vmem:[#allocation3 + $0xec0] sm:$0xff]  ;;  %v9120_v36 = vcombine.high %v2587_v33, %v2591_v34  ;;  %5466 = vmatprep.subr.bf16.mxu1 %v9256_v32  ;;  %v9119_v48 = vcombine.low %v2587_v33, %v2591_v34  ;;  %v8954_v32 = vcombine.high %v2420_v25, %v2424_v27  ;;  %v2284_v33 = vld [vmem:[#allocation3 + $0x148] sm:$0xff] }
 0x2df   :  { %v2719_v35 = vld [vmem:[#allocation3 + $0xee0] sm:$0xff]  ;;  %5467 = vmatpush2.bf16.msra.mxu1 %v9255_v2  ;;  %v2288_v34 = vld [vmem:[#allocation3 + $0x168] sm:$0xff]  ;;  %v8953_v2 = vcombine.low %v2420_v25, %v2424_v27 }
 0x2e0   :  { %v9248_v3 = vcombine.high %v2715_v1, %v2719_v35  ;;  %v2579_v37 = vld [vmem:[#allocation3 + $0xa80] sm:$0xff]  ;;  %5425 = vmatprep.subr.bf16.mxu0 %v9120_v36  ;;  %v9247_v49 = vcombine.low %v2715_v1, %v2719_v35  ;;  %v2412_v1 = vld [vmem:[#allocation3 + $0x548] sm:$0xff]  ;;  %v8818_v36 = vcombine.high %v2284_v33, %v2288_v34 }
 0x2e1   :  { %v2583_v42 = vld [vmem:[#allocation3 + $0xaa0] sm:$0xff]  ;;  %5426 = vmatpush2.bf16.msra.mxu0 %v9119_v48  ;;  %v2416_v35 = vld [vmem:[#allocation3 + $0x568] sm:$0xff]  ;;  %v8817_v48 = vcombine.low %v2284_v33, %v2288_v34 }
 0x2e2   :  { %v2707_v47 = vld [vmem:[#allocation3 + $0xe80] sm:$0xff]  ;;  %v9112_v50 = vcombine.high %v2579_v37, %v2583_v42  ;;  %5468 = vmatprep.subr.bf16.mxu1 %v9248_v3  ;;  %v9111_v56 = vcombine.low %v2579_v37, %v2583_v42  ;;  %v8946_v3 = vcombine.high %v2412_v1, %v2416_v35  ;;  %v2276_v37 = vld [vmem:[#allocation3 + $0x108] sm:$0xff] }
 0x2e3   :  { %v2711_v39 = vld [vmem:[#allocation3 + $0xea0] sm:$0xff]  ;;  %5469 = vmatpush2.bf16.msra.mxu1 %v9247_v49  ;;  %v2280_v42 = vld [vmem:[#allocation3 + $0x128] sm:$0xff]  ;;  %v8945_v49 = vcombine.low %v2412_v1, %v2416_v35 }
 0x2e4   :  { %v9240_v51 = vcombine.high %v2707_v47, %v2711_v39  ;;  %v2571_v52 = vld [vmem:[#allocation3 + $0xa40] sm:$0xff]  ;;  %5427 = vmatprep.subr.bf16.mxu0 %v9112_v50  ;;  %v9239_v29 = vcombine.low %v2707_v47, %v2711_v39  ;;  %v2404_v47 = vld [vmem:[#allocation3 + $0x508] sm:$0xff]  ;;  %v8810_v50 = vcombine.high %v2276_v37, %v2280_v42 }
 0x2e5   :  { %v2575_v54 = vld [vmem:[#allocation3 + $0xa60] sm:$0xff]  ;;  %5428 = vmatpush2.bf16.msra.mxu0 %v9111_v56  ;;  %v2408_v39 = vld [vmem:[#allocation3 + $0x528] sm:$0xff]  ;;  %v8809_v56 = vcombine.low %v2276_v37, %v2280_v42 }
 0x2e6   :  { %v2699_v44 = vld [vmem:[#allocation3 + $0xe40] sm:$0xff]  ;;  %v9104_v57 = vcombine.high %v2571_v52, %v2575_v54  ;;  %5470 = vmatprep.subr.bf16.mxu1 %v9240_v51  ;;  %v9103_v63 = vcombine.low %v2571_v52, %v2575_v54  ;;  %v8938_v51 = vcombine.high %v2404_v47, %v2408_v39  ;;  %v2268_v52 = vld [vmem:[#allocation3 + $0xc8] sm:$0xff] }
 0x2e7   :  { %v2703_v55 = vld [vmem:[#allocation3 + $0xe60] sm:$0xff]  ;;  %5471 = vmatpush2.bf16.msra.mxu1 %v9239_v29  ;;  %v2272_v54 = vld [vmem:[#allocation3 + $0xe8] sm:$0xff]  ;;  %v8937_v29 = vcombine.low %v2404_v47, %v2408_v39 }
 0x2e8   :  { %v9232_v58 = vcombine.high %v2699_v44, %v2703_v55  ;;  %v2563_v59 = vld [vmem:[#allocation3 + $0xa00] sm:$0xff]  ;;  %5429 = vmatprep.subr.bf16.mxu0 %v9104_v57  ;;  %v9231_v6 = vcombine.low %v2699_v44, %v2703_v55  ;;  %v2396_v44 = vld [vmem:[#allocation3 + $0x4c8] sm:$0xff]  ;;  %v8802_v57 = vcombine.high %v2268_v52, %v2272_v54 }
 0x2e9   :  { %v2567_v60 = vld [vmem:[#allocation3 + $0xa20] sm:$0xff]  ;;  %5430 = vmatpush2.bf16.msra.mxu0 %v9103_v63  ;;  %v2400_v55 = vld [vmem:[#allocation3 + $0x4e8] sm:$0xff]  ;;  %v8801_v63 = vcombine.low %v2268_v52, %v2272_v54 }
 0x2ea   :  { %v2691_v61 = vld [vmem:[#allocation3 + $0xe00] sm:$0xff]  ;;  %v9096_v7 = vcombine.high %v2563_v59, %v2567_v60  ;;  %5472 = vmatprep.subr.bf16.mxu1 %v9232_v58  ;;  %v9095_v15 = vcombine.low %v2563_v59, %v2567_v60  ;;  %v8930_v58 = vcombine.high %v2396_v44, %v2400_v55  ;;  %v2260_v59 = vld [vmem:[#allocation3 + $0x88] sm:$0xff] }
 0x2eb   :  { %v2695_v62 = vld [vmem:[#allocation3 + $0xe20] sm:$0xff]  ;;  %5473 = vmatpush2.bf16.msra.mxu1 %v9231_v6  ;;  %v2264_v60 = vld [vmem:[#allocation3 + $0xa8] sm:$0xff]  ;;  %v8929_v6 = vcombine.low %v2396_v44, %v2400_v55 }
 0x2ec   :  { %v9224_v8 = vcombine.high %v2691_v61, %v2695_v62  ;;  %5431 = vmatprep.subr.bf16.mxu0 %v9096_v7  ;;  %v9223_v17 = vcombine.low %v2691_v61, %v2695_v62  ;;  %v2388_v61 = vld [vmem:[#allocation3 + $0x488] sm:$0xff]  ;;  %v8794_v7 = vcombine.high %v2260_v59, %v2264_v60 }
 0x2ed   :  { %5432 = vmatpush2.bf16.msra.mxu0 %v9095_v15  ;;  %v2392_v62 = vld [vmem:[#allocation3 + $0x4a8] sm:$0xff]  ;;  %v8793_v15 = vcombine.low %v2260_v59, %v2264_v60 }
 0x2ee   :  { %5474 = vmatprep.subr.bf16.mxu1 %v9224_v8  ;;  %5487 = vmatprep.subr.bf16.mxu0 %v8834_v21  ;;  %v8922_v8 = vcombine.high %v2388_v61, %v2392_v62  ;;  %v2252_v9 = vld [vmem:[#allocation3 + $0x48] sm:$0xff] }
 0x2ef   :  { %5475 = vmatpush2.bf16.msra.mxu1 %v9223_v17  ;;  %v2256_v12 = vld [vmem:[#allocation3 + $0x68] sm:$0xff]  ;;  %v8921_v17 = vcombine.low %v2388_v61, %v2392_v62 }
 0x2f0   :  { %5530 = vmatprep.subr.bf16.mxu1 %v8962_v22  ;;  %5434 = vmatmul.mubr.bf16.vlgmr.msra.gmra.mxu0 %v10593_v16  ;;  %v2380_v13 = vld [vmem:[#allocation3 + $0x448] sm:$0xff]  ;;  %v8786_v21 = vcombine.high %v2252_v9, %v2256_v12 }
 0x2f1   :  { %5488 = vmatpush1.bf16.msra.mxu0 %v8833_v28  ;;  %5519 = vmatprep.mubr.bf16.mxu0 %v10559_v5  ;;  %v2384_v14 = vld [vmem:[#allocation3 + $0x468] sm:$0xff]  ;;  %v8785_v28 = vcombine.low %v2252_v9, %v2256_v12 }
 0x2f2   :  { %5477 = vmatmul.mubr.bf16.vlgmr.msra.gmra.mxu1 %v10611_v53  ;;  %5489 = vmatprep.subr.bf16.mxu0 %v8826_v31  ;;  %v8914_v22 = vcombine.high %v2380_v13, %v2384_v14  ;;  %v2244_v23 = vld [vmem:[#allocation3 + $0x8] sm:$0xff] }
 0x2f3   :  { %5531 = vmatpush1.bf16.msra.mxu1 %v8961_v30  ;;  %5562 = vmatprep.mubr.bf16.mxu1 %v10577_v43  ;;  %v2248_v24 = vld [vmem:[#allocation3 + $0x28] sm:$0xff]  ;;  %v8913_v30 = vcombine.low %v2380_v13, %v2384_v14 }
 0x2f4   :  { %5532 = vmatprep.subr.bf16.mxu1 %v8954_v32  ;;  %v2372_v25 = vld [vmem:[#allocation3 + $0x408] sm:$0xff]  ;;  %v8778_v31 = vcombine.high %v2244_v23, %v2248_v24 }
 0x2f5   :  { %5490 = vmatpush1.bf16.msra.mxu0 %v8825_v0  ;;  %v2376_v27 = vld [vmem:[#allocation3 + $0x428] sm:$0xff]  ;;  %v8777_v0 = vcombine.low %v2244_v23, %v2248_v24 }
 0x2f6   :  { %5491 = vmatprep.subr.bf16.mxu0 %v8818_v36  ;;  %v8906_v32 = vcombine.high %v2372_v25, %v2376_v27  ;;  %v2364_v33 = vld [vmem:[#allocation3 + $0x3c8] sm:$0xff] }
 0x2f7   :  { %5533 = vmatpush1.bf16.msra.mxu1 %v8953_v2  ;;  %v2368_v34 = vld [vmem:[#allocation3 + $0x3e8] sm:$0xff]  ;;  %v8905_v2 = vcombine.low %v2372_v25, %v2376_v27 }
 0x2f8   :  { %5534 = vmatprep.subr.bf16.mxu1 %v8946_v3  ;;  %v2492_v1 = vld [vmem:[#allocation3 + $0x7c8] sm:$0xff]  ;;  %v8898_v36 = vcombine.high %v2364_v33, %v2368_v34 }
 0x2f9   :  { %5492 = vmatpush1.bf16.msra.mxu0 %v8817_v48  ;;  %v2496_v35 = vld [vmem:[#allocation3 + $0x7e8] sm:$0xff]  ;;  %v8897_v48 = vcombine.low %v2364_v33, %v2368_v34 }
 0x2fa   :  { %5493 = vmatprep.subr.bf16.mxu0 %v8810_v50  ;;  %v9026_v3 = vcombine.high %v2492_v1, %v2496_v35  ;;  %v2356_v37 = vld [vmem:[#allocation3 + $0x388] sm:$0xff] }
 0x2fb   :  { %5535 = vmatpush1.bf16.msra.mxu1 %v8945_v49  ;;  %v2360_v42 = vld [vmem:[#allocation3 + $0x3a8] sm:$0xff]  ;;  %v9025_v49 = vcombine.low %v2492_v1, %v2496_v35 }
 0x2fc   :  { %5536 = vmatprep.subr.bf16.mxu1 %v8938_v51  ;;  %v2484_v47 = vld [vmem:[#allocation3 + $0x788] sm:$0xff]  ;;  %v8890_v50 = vcombine.high %v2356_v37, %v2360_v42 }
 0x2fd   :  { %5494 = vmatpush1.bf16.msra.mxu0 %v8809_v56  ;;  %v2488_v39 = vld [vmem:[#allocation3 + $0x7a8] sm:$0xff]  ;;  %v8889_v56 = vcombine.low %v2356_v37, %v2360_v42 }
 0x2fe   :  { %5495 = vmatprep.subr.bf16.mxu0 %v8802_v57  ;;  %v9018_v51 = vcombine.high %v2484_v47, %v2488_v39  ;;  %v2348_v52 = vld [vmem:[#allocation3 + $0x348] sm:$0xff] }
 0x2ff   :  { %5537 = vmatpush1.bf16.msra.mxu1 %v8937_v29  ;;  %v2352_v54 = vld [vmem:[#allocation3 + $0x368] sm:$0xff]  ;;  %v9017_v29 = vcombine.low %v2484_v47, %v2488_v39 }
 0x300   :  { %5538 = vmatprep.subr.bf16.mxu1 %v8930_v58  ;;  %v2476_v44 = vld [vmem:[#allocation3 + $0x748] sm:$0xff]  ;;  %v8882_v57 = vcombine.high %v2348_v52, %v2352_v54 }
 0x301   :  { %5496 = vmatpush1.bf16.msra.mxu0 %v8801_v63  ;;  %v2480_v55 = vld [vmem:[#allocation3 + $0x768] sm:$0xff]  ;;  %v8881_v63 = vcombine.low %v2348_v52, %v2352_v54 }
 0x302   :  { %5497 = vmatprep.subr.bf16.mxu0 %v8794_v7  ;;  %v9010_v58 = vcombine.high %v2476_v44, %v2480_v55  ;;  %v2340_v59 = vld [vmem:[#allocation3 + $0x308] sm:$0xff] }
 0x303   :  { %5539 = vmatpush1.bf16.msra.mxu1 %v8929_v6  ;;  %v2344_v60 = vld [vmem:[#allocation3 + $0x328] sm:$0xff]  ;;  %v9009_v6 = vcombine.low %v2476_v44, %v2480_v55 }
 0x304   :  { %5540 = vmatprep.subr.bf16.mxu1 %v8922_v8  ;;  %v2468_v61 = vld [vmem:[#allocation3 + $0x708] sm:$0xff]  ;;  %v8874_v7 = vcombine.high %v2340_v59, %v2344_v60 }
 0x305   :  { %5498 = vmatpush1.bf16.msra.mxu0 %v8793_v15  ;;  %v2472_v62 = vld [vmem:[#allocation3 + $0x728] sm:$0xff]  ;;  %v8873_v15 = vcombine.low %v2340_v59, %v2344_v60 }
 0x306   :  { %5499 = vmatprep.subr.bf16.mxu0 %v8786_v21  ;;  %v9002_v8 = vcombine.high %v2468_v61, %v2472_v62  ;;  %v2332_v9 = vld [vmem:[#allocation3 + $0x2c8] sm:$0xff] }
 0x307   :  { %5541 = vmatpush1.bf16.msra.mxu1 %v8921_v17  ;;  %v2336_v12 = vld [vmem:[#allocation3 + $0x2e8] sm:$0xff]  ;;  %v9001_v17 = vcombine.low %v2468_v61, %v2472_v62 }
 0x308   :  { %5542 = vmatprep.subr.bf16.mxu1 %v8914_v22  ;;  %v2460_v13 = vld [vmem:[#allocation3 + $0x6c8] sm:$0xff]  ;;  %v8866_v21 = vcombine.high %v2332_v9, %v2336_v12 }
 0x309   :  { %5500 = vmatpush1.bf16.msra.mxu0 %v8785_v28  ;;  %v2464_v14 = vld [vmem:[#allocation3 + $0x6e8] sm:$0xff]  ;;  %v8865_v28 = vcombine.low %v2332_v9, %v2336_v12 }
 0x30a   :  { %5501 = vmatprep.subr.bf16.mxu0 %v8778_v31  ;;  %v8994_v22 = vcombine.high %v2460_v13, %v2464_v14  ;;  %v2324_v23 = vld [vmem:[#allocation3 + $0x288] sm:$0xff] }
 0x30b   :  { %5543 = vmatpush1.bf16.msra.mxu1 %v8913_v30  ;;  %v2328_v24 = vld [vmem:[#allocation3 + $0x2a8] sm:$0xff]  ;;  %v8993_v30 = vcombine.low %v2460_v13, %v2464_v14 }
 0x30c   :  { %5544 = vmatprep.subr.bf16.mxu1 %v8906_v32  ;;  %v2452_v25 = vld [vmem:[#allocation3 + $0x688] sm:$0xff]  ;;  %v8858_v31 = vcombine.high %v2324_v23, %v2328_v24 }
 0x30d   :  { %5502 = vmatpush1.bf16.msra.mxu0 %v8777_v0  ;;  %v2456_v27 = vld [vmem:[#allocation3 + $0x6a8] sm:$0xff]  ;;  %v8857_v0 = vcombine.low %v2324_v23, %v2328_v24 }
 0x30e   :  { %5503 = vmatprep.subr.bf16.mxu0 %v8898_v36  ;;  %v8986_v32 = vcombine.high %v2452_v25, %v2456_v27  ;;  %v2316_v33 = vld [vmem:[#allocation3 + $0x248] sm:$0xff] }
 0x30f   :  { %5545 = vmatpush1.bf16.msra.mxu1 %v8905_v2  ;;  %v2320_v34 = vld [vmem:[#allocation3 + $0x268] sm:$0xff]  ;;  %v8985_v2 = vcombine.low %v2452_v25, %v2456_v27 }
 0x310   :  { %5546 = vmatprep.subr.bf16.mxu1 %v9026_v3  ;;  %v2444_v1 = vld [vmem:[#allocation3 + $0x648] sm:$0xff]  ;;  %v8850_v36 = vcombine.high %v2316_v33, %v2320_v34 }
 0x311   :  { %5504 = vmatpush2.bf16.msra.mxu0 %v8897_v48  ;;  %v2448_v35 = vld [vmem:[#allocation3 + $0x668] sm:$0xff]  ;;  %v8849_v48 = vcombine.low %v2316_v33, %v2320_v34 }
 0x312   :  { %5505 = vmatprep.subr.bf16.mxu0 %v8890_v50  ;;  %v8978_v3 = vcombine.high %v2444_v1, %v2448_v35  ;;  %v2308_v37 = vld [vmem:[#allocation3 + $0x208] sm:$0xff] }
 0x313   :  { %5547 = vmatpush2.bf16.msra.mxu1 %v9025_v49  ;;  %v2312_v42 = vld [vmem:[#allocation3 + $0x228] sm:$0xff]  ;;  %v8977_v49 = vcombine.low %v2444_v1, %v2448_v35 }
 0x314   :  { %5548 = vmatprep.subr.bf16.mxu1 %v9018_v51  ;;  %v2436_v47 = vld [vmem:[#allocation3 + $0x608] sm:$0xff]  ;;  %v8842_v50 = vcombine.high %v2308_v37, %v2312_v42 }
 0x315   :  { %5506 = vmatpush2.bf16.msra.mxu0 %v8889_v56  ;;  %v2440_v39 = vld [vmem:[#allocation3 + $0x628] sm:$0xff]  ;;  %v8841_v56 = vcombine.low %v2308_v37, %v2312_v42 }
 0x316   :  { %5507 = vmatprep.subr.bf16.mxu0 %v8882_v57  ;;  %v8970_v51 = vcombine.high %v2436_v47, %v2440_v39  ;;  %v2556_v52 = vld [vmem:[#allocation3 + $0x9c8] sm:$0xff] }
 0x317   :  { %5549 = vmatpush2.bf16.msra.mxu1 %v9017_v29  ;;  %v2560_v54 = vld [vmem:[#allocation3 + $0x9e8] sm:$0xff]  ;;  %v8969_v29 = vcombine.low %v2436_v47, %v2440_v39 }
 0x318   :  { %5550 = vmatprep.subr.bf16.mxu1 %v9010_v58  ;;  %v2684_v44 = vld [vmem:[#allocation3 + $0xdc8] sm:$0xff]  ;;  %v9090_v57 = vcombine.high %v2556_v52, %v2560_v54 }
 0x319   :  { %5508 = vmatpush2.bf16.msra.mxu0 %v8881_v63  ;;  %v2688_v55 = vld [vmem:[#allocation3 + $0xde8] sm:$0xff]  ;;  %v9089_v63 = vcombine.low %v2556_v52, %v2560_v54 }
 0x31a   :  { %5509 = vmatprep.subr.bf16.mxu0 %v8874_v7  ;;  %v9218_v58 = vcombine.high %v2684_v44, %v2688_v55  ;;  %v2548_v59 = vld [vmem:[#allocation3 + $0x988] sm:$0xff] }
 0x31b   :  { %5551 = vmatpush2.bf16.msra.mxu1 %v9009_v6  ;;  %v2552_v60 = vld [vmem:[#allocation3 + $0x9a8] sm:$0xff]  ;;  %v9217_v6 = vcombine.low %v2684_v44, %v2688_v55 }
 0x31c   :  { %5552 = vmatprep.subr.bf16.mxu1 %v9002_v8  ;;  %v2676_v61 = vld [vmem:[#allocation3 + $0xd88] sm:$0xff]  ;;  %v9082_v7 = vcombine.high %v2548_v59, %v2552_v60 }
 0x31d   :  { %5510 = vmatpush2.bf16.msra.mxu0 %v8873_v15  ;;  %v2680_v62 = vld [vmem:[#allocation3 + $0xda8] sm:$0xff]  ;;  %v9081_v15 = vcombine.low %v2548_v59, %v2552_v60 }
 0x31e   :  { %5511 = vmatprep.subr.bf16.mxu0 %v8866_v21  ;;  %v9210_v8 = vcombine.high %v2676_v61, %v2680_v62  ;;  %v2540_v9 = vld [vmem:[#allocation3 + $0x948] sm:$0xff] }
 0x31f   :  { %5553 = vmatpush2.bf16.msra.mxu1 %v9001_v17  ;;  %v2544_v12 = vld [vmem:[#allocation3 + $0x968] sm:$0xff]  ;;  %v9209_v17 = vcombine.low %v2676_v61, %v2680_v62 }
 0x320   :  { %5554 = vmatprep.subr.bf16.mxu1 %v8994_v22  ;;  %v2668_v13 = vld [vmem:[#allocation3 + $0xd48] sm:$0xff]  ;;  %v9074_v21 = vcombine.high %v2540_v9, %v2544_v12 }
 0x321   :  { %5512 = vmatpush2.bf16.msra.mxu0 %v8865_v28  ;;  %v2672_v14 = vld [vmem:[#allocation3 + $0xd68] sm:$0xff]  ;;  %v9073_v28 = vcombine.low %v2540_v9, %v2544_v12 }
 0x322   :  { %5513 = vmatprep.subr.bf16.mxu0 %v8858_v31  ;;  %v9202_v22 = vcombine.high %v2668_v13, %v2672_v14  ;;  %v2532_v23 = vld [vmem:[#allocation3 + $0x908] sm:$0xff] }
 0x323   :  { %5555 = vmatpush2.bf16.msra.mxu1 %v8993_v30  ;;  %v2536_v24 = vld [vmem:[#allocation3 + $0x928] sm:$0xff]  ;;  %v9201_v30 = vcombine.low %v2668_v13, %v2672_v14 }
 0x324   :  { %5556 = vmatprep.subr.bf16.mxu1 %v8986_v32  ;;  %v2660_v25 = vld [vmem:[#allocation3 + $0xd08] sm:$0xff]  ;;  %v9066_v31 = vcombine.high %v2532_v23, %v2536_v24 }
 0x325   :  { %5514 = vmatpush2.bf16.msra.mxu0 %v8857_v0  ;;  %v2664_v27 = vld [vmem:[#allocation3 + $0xd28] sm:$0xff]  ;;  %v9065_v0 = vcombine.low %v2532_v23, %v2536_v24 }
 0x326   :  { %5515 = vmatprep.subr.bf16.mxu0 %v8850_v36  ;;  %v9194_v32 = vcombine.high %v2660_v25, %v2664_v27  ;;  %v2524_v33 = vld [vmem:[#allocation3 + $0x8c8] sm:$0xff] }
 0x327   :  { %5557 = vmatpush2.bf16.msra.mxu1 %v8985_v2  ;;  %v2528_v34 = vld [vmem:[#allocation3 + $0x8e8] sm:$0xff]  ;;  %v9193_v2 = vcombine.low %v2660_v25, %v2664_v27 }
 0x328   :  { %5558 = vmatprep.subr.bf16.mxu1 %v8978_v3  ;;  %v2652_v1 = vld [vmem:[#allocation3 + $0xcc8] sm:$0xff]  ;;  %v9058_v36 = vcombine.high %v2524_v33, %v2528_v34 }
 0x329   :  { %5516 = vmatpush2.bf16.msra.mxu0 %v8849_v48  ;;  %v2656_v35 = vld [vmem:[#allocation3 + $0xce8] sm:$0xff]  ;;  %v9057_v48 = vcombine.low %v2524_v33, %v2528_v34 }
 0x32a   :  { %5517 = vmatprep.subr.bf16.mxu0 %v8842_v50  ;;  %v9186_v3 = vcombine.high %v2652_v1, %v2656_v35  ;;  %v2516_v37 = vld [vmem:[#allocation3 + $0x888] sm:$0xff] }
 0x32b   :  { %5559 = vmatpush2.bf16.msra.mxu1 %v8977_v49  ;;  %v2520_v42 = vld [vmem:[#allocation3 + $0x8a8] sm:$0xff]  ;;  %v9185_v49 = vcombine.low %v2652_v1, %v2656_v35 }
 0x32c   :  { %5560 = vmatprep.subr.bf16.mxu1 %v8970_v51  ;;  %v2644_v47 = vld [vmem:[#allocation3 + $0xc88] sm:$0xff]  ;;  %v9050_v50 = vcombine.high %v2516_v37, %v2520_v42 }
 0x32d   :  { %5518 = vmatpush2.bf16.msra.mxu0 %v8841_v56  ;;  %v2648_v39 = vld [vmem:[#allocation3 + $0xca8] sm:$0xff]  ;;  %v9049_v56 = vcombine.low %v2516_v37, %v2520_v42 }
 0x32e   :  { %5573 = vmatprep.subr.bf16.mxu0 %v9090_v57  ;;  %v9178_v51 = vcombine.high %v2644_v47, %v2648_v39  ;;  %v2508_v52 = vld [vmem:[#allocation3 + $0x848] sm:$0xff] }
 0x32f   :  { %5561 = vmatpush2.bf16.msra.mxu1 %v8969_v29  ;;  %v2512_v54 = vld [vmem:[#allocation3 + $0x868] sm:$0xff]  ;;  %v9177_v29 = vcombine.low %v2644_v47, %v2648_v39 }
 0x330   :  { %5616 = vmatprep.subr.bf16.mxu1 %v9218_v58  ;;  %5520 = vmatmul.mubr.bf16.vlgmr.msra.gmra.mxu0 %v10557_v4  ;;  %v2636_v44 = vld [vmem:[#allocation3 + $0xc48] sm:$0xff]  ;;  %v9042_v57 = vcombine.high %v2508_v52, %v2512_v54 }
 0x331   :  { %5574 = vmatpush1.bf16.msra.mxu0 %v9089_v63  ;;  %5605 = vmatprep.mubr.bf16.mxu0 %v10595_v18  ;;  %v2640_v55 = vld [vmem:[#allocation3 + $0xc68] sm:$0xff]  ;;  %v9041_v63 = vcombine.low %v2508_v52, %v2512_v54 }
 0x332   :  { %5563 = vmatmul.mubr.bf16.vlgmr.msra.gmra.mxu1 %v10575_v41  ;;  %5575 = vmatprep.subr.bf16.mxu0 %v9082_v7  ;;  %v9170_v58 = vcombine.high %v2636_v44, %v2640_v55  ;;  %v2500_v59 = vld [vmem:[#allocation3 + $0x808] sm:$0xff] }
 0x333   :  { %5617 = vmatpush1.bf16.msra.mxu1 %v9217_v6  ;;  %5648 = vmatprep.mubr.bf16.mxu1 %v10613_v26  ;;  %v2504_v60 = vld [vmem:[#allocation3 + $0x828] sm:$0xff]  ;;  %v9169_v6 = vcombine.low %v2636_v44, %v2640_v55 }
 0x334   :  { %5618 = vmatprep.subr.bf16.mxu1 %v9210_v8  ;;  %v2628_v61 = vld [vmem:[#allocation3 + $0xc08] sm:$0xff]  ;;  %v9034_v7 = vcombine.high %v2500_v59, %v2504_v60 }
 0x335   :  { %5576 = vmatpush1.bf16.msra.mxu0 %v9081_v15  ;;  %v2632_v62 = vld [vmem:[#allocation3 + $0xc28] sm:$0xff]  ;;  %v9033_v15 = vcombine.low %v2500_v59, %v2504_v60 }
 0x336   :  { %5577 = vmatprep.subr.bf16.mxu0 %v9074_v21  ;;  %v9162_v8 = vcombine.high %v2628_v61, %v2632_v62  ;;  %v2620_v9 = vld [vmem:[#allocation3 + $0xbc8] sm:$0xff] }
 0x337   :  { %5619 = vmatpush1.bf16.msra.mxu1 %v9209_v17  ;;  %v2624_v12 = vld [vmem:[#allocation3 + $0xbe8] sm:$0xff]  ;;  %v9161_v17 = vcombine.low %v2628_v61, %v2632_v62 }
 0x338   :  { %5620 = vmatprep.subr.bf16.mxu1 %v9202_v22  ;;  %v2748_v13 = vld [vmem:[#allocation3 + $0xfc8] sm:$0xff]  ;;  %v9154_v21 = vcombine.high %v2620_v9, %v2624_v12 }
 0x339   :  { %5578 = vmatpush1.bf16.msra.mxu0 %v9073_v28  ;;  %v2752_v14 = vld [vmem:[#allocation3 + $0xfe8] sm:$0xff]  ;;  %v9153_v28 = vcombine.low %v2620_v9, %v2624_v12 }
 0x33a   :  { %5579 = vmatprep.subr.bf16.mxu0 %v9066_v31  ;;  %v9282_v22 = vcombine.high %v2748_v13, %v2752_v14  ;;  %v2612_v23 = vld [vmem:[#allocation3 + $0xb88] sm:$0xff] }
 0x33b   :  { %5621 = vmatpush1.bf16.msra.mxu1 %v9201_v30  ;;  %v2616_v24 = vld [vmem:[#allocation3 + $0xba8] sm:$0xff]  ;;  %v9281_v30 = vcombine.low %v2748_v13, %v2752_v14 }
 0x33c   :  { %5622 = vmatprep.subr.bf16.mxu1 %v9194_v32  ;;  %v2740_v25 = vld [vmem:[#allocation3 + $0xf88] sm:$0xff]  ;;  %v9146_v31 = vcombine.high %v2612_v23, %v2616_v24 }
 0x33d   :  { %5580 = vmatpush1.bf16.msra.mxu0 %v9065_v0  ;;  %v2744_v27 = vld [vmem:[#allocation3 + $0xfa8] sm:$0xff]  ;;  %v9145_v0 = vcombine.low %v2612_v23, %v2616_v24 }
 0x33e   :  { %5581 = vmatprep.subr.bf16.mxu0 %v9058_v36  ;;  %v9274_v32 = vcombine.high %v2740_v25, %v2744_v27  ;;  %v2604_v33 = vld [vmem:[#allocation3 + $0xb48] sm:$0xff] }
 0x33f   :  { %5623 = vmatpush1.bf16.msra.mxu1 %v9193_v2  ;;  %v2608_v34 = vld [vmem:[#allocation3 + $0xb68] sm:$0xff]  ;;  %v9273_v2 = vcombine.low %v2740_v25, %v2744_v27 }
 0x340   :  { %5624 = vmatprep.subr.bf16.mxu1 %v9186_v3  ;;  %v2732_v1 = vld [vmem:[#allocation3 + $0xf48] sm:$0xff]  ;;  %v9138_v36 = vcombine.high %v2604_v33, %v2608_v34 }
 0x341   :  { %5582 = vmatpush1.bf16.msra.mxu0 %v9057_v48  ;;  %v2736_v35 = vld [vmem:[#allocation3 + $0xf68] sm:$0xff]  ;;  %v9137_v48 = vcombine.low %v2604_v33, %v2608_v34  ;;  %v2301_v33 = vld [vmem:[#allocation3 + $0x1d0] sm:$0xff] }
 0x342   :  { %5583 = vmatprep.subr.bf16.mxu0 %v9050_v50  ;;  %v9266_v3 = vcombine.high %v2732_v1, %v2736_v35  ;;  %v2596_v37 = vld [vmem:[#allocation3 + $0xb08] sm:$0xff]  ;;  %v2305_v34 = vld [vmem:[#allocation3 + $0x1f0] sm:$0xff] }
 0x343   :  { %5625 = vmatpush1.bf16.msra.mxu1 %v9185_v49  ;;  %v2600_v42 = vld [vmem:[#allocation3 + $0xb28] sm:$0xff]  ;;  %v9265_v49 = vcombine.low %v2732_v1, %v2736_v35  ;;  %v2429_v1 = vld [vmem:[#allocation3 + $0x5d0] sm:$0xff] }
 0x344   :  { %5626 = vmatprep.subr.bf16.mxu1 %v9178_v51  ;;  %v2724_v47 = vld [vmem:[#allocation3 + $0xf08] sm:$0xff]  ;;  %v9130_v50 = vcombine.high %v2596_v37, %v2600_v42  ;;  %v2433_v35 = vld [vmem:[#allocation3 + $0x5f0] sm:$0xff] }
 0x345   :  { %5584 = vmatpush1.bf16.msra.mxu0 %v9049_v56  ;;  %v2728_v39 = vld [vmem:[#allocation3 + $0xf28] sm:$0xff]  ;;  %v9129_v56 = vcombine.low %v2596_v37, %v2600_v42  ;;  %v2293_v37 = vld [vmem:[#allocation3 + $0x190] sm:$0xff] }
 0x346   :  { %5585 = vmatprep.subr.bf16.mxu0 %v9042_v57  ;;  %v9258_v51 = vcombine.high %v2724_v47, %v2728_v39  ;;  %v2588_v52 = vld [vmem:[#allocation3 + $0xac8] sm:$0xff]  ;;  %v2297_v42 = vld [vmem:[#allocation3 + $0x1b0] sm:$0xff] }
 0x347   :  { %5627 = vmatpush1.bf16.msra.mxu1 %v9177_v29  ;;  %v2592_v54 = vld [vmem:[#allocation3 + $0xae8] sm:$0xff]  ;;  %v9257_v29 = vcombine.low %v2724_v47, %v2728_v39  ;;  %v2421_v47 = vld [vmem:[#allocation3 + $0x590] sm:$0xff] }
 0x348   :  { %5628 = vmatprep.subr.bf16.mxu1 %v9170_v58  ;;  %v2716_v44 = vld [vmem:[#allocation3 + $0xec8] sm:$0xff]  ;;  %v9122_v57 = vcombine.high %v2588_v52, %v2592_v54  ;;  %v2425_v39 = vld [vmem:[#allocation3 + $0x5b0] sm:$0xff] }
 0x349   :  { %5586 = vmatpush1.bf16.msra.mxu0 %v9041_v63  ;;  %v2720_v55 = vld [vmem:[#allocation3 + $0xee8] sm:$0xff]  ;;  %v9121_v63 = vcombine.low %v2588_v52, %v2592_v54  ;;  %v2285_v52 = vld [vmem:[#allocation3 + $0x150] sm:$0xff] }
 0x34a   :  { %5587 = vmatprep.subr.bf16.mxu0 %v9034_v7  ;;  %v9250_v58 = vcombine.high %v2716_v44, %v2720_v55  ;;  %v2580_v59 = vld [vmem:[#allocation3 + $0xa88] sm:$0xff]  ;;  %v2289_v54 = vld [vmem:[#allocation3 + $0x170] sm:$0xff] }
 0x34b   :  { %5629 = vmatpush1.bf16.msra.mxu1 %v9169_v6  ;;  %v2584_v60 = vld [vmem:[#allocation3 + $0xaa8] sm:$0xff]  ;;  %v9249_v6 = vcombine.low %v2716_v44, %v2720_v55  ;;  %v2413_v44 = vld [vmem:[#allocation3 + $0x550] sm:$0xff] }
 0x34c   :  { %5630 = vmatprep.subr.bf16.mxu1 %v9162_v8  ;;  %v2708_v61 = vld [vmem:[#allocation3 + $0xe88] sm:$0xff]  ;;  %v9114_v7 = vcombine.high %v2580_v59, %v2584_v60  ;;  %v2417_v55 = vld [vmem:[#allocation3 + $0x570] sm:$0xff] }
 0x34d   :  { %5588 = vmatpush1.bf16.msra.mxu0 %v9033_v15  ;;  %v2712_v62 = vld [vmem:[#allocation3 + $0xea8] sm:$0xff]  ;;  %v9113_v15 = vcombine.low %v2580_v59, %v2584_v60  ;;  %v2277_v59 = vld [vmem:[#allocation3 + $0x110] sm:$0xff] }
 0x34e   :  { %5589 = vmatprep.subr.bf16.mxu0 %v9154_v21  ;;  %v9242_v8 = vcombine.high %v2708_v61, %v2712_v62  ;;  %v2572_v9 = vld [vmem:[#allocation3 + $0xa48] sm:$0xff]  ;;  %v2281_v60 = vld [vmem:[#allocation3 + $0x130] sm:$0xff] }
 0x34f   :  { %5631 = vmatpush1.bf16.msra.mxu1 %v9161_v17  ;;  %v2576_v12 = vld [vmem:[#allocation3 + $0xa68] sm:$0xff]  ;;  %v9241_v17 = vcombine.low %v2708_v61, %v2712_v62  ;;  %v2405_v61 = vld [vmem:[#allocation3 + $0x510] sm:$0xff] }
 0x350   :  { %5632 = vmatprep.subr.bf16.mxu1 %v9282_v22  ;;  %v2700_v13 = vld [vmem:[#allocation3 + $0xe48] sm:$0xff]  ;;  %v9106_v21 = vcombine.high %v2572_v9, %v2576_v12  ;;  %v2409_v62 = vld [vmem:[#allocation3 + $0x530] sm:$0xff] }
 0x351   :  { %5590 = vmatpush2.bf16.msra.mxu0 %v9153_v28  ;;  %v2704_v14 = vld [vmem:[#allocation3 + $0xe68] sm:$0xff]  ;;  %v9105_v28 = vcombine.low %v2572_v9, %v2576_v12  ;;  %v2269_v9 = vld [vmem:[#allocation3 + $0xd0] sm:$0xff] }
 0x352   :  { %5591 = vmatprep.subr.bf16.mxu0 %v9146_v31  ;;  %v9234_v22 = vcombine.high %v2700_v13, %v2704_v14  ;;  %v2564_v23 = vld [vmem:[#allocation3 + $0xa08] sm:$0xff]  ;;  %v2273_v12 = vld [vmem:[#allocation3 + $0xf0] sm:$0xff] }
 0x353   :  { %5633 = vmatpush2.bf16.msra.mxu1 %v9281_v30  ;;  %v2568_v24 = vld [vmem:[#allocation3 + $0xa28] sm:$0xff]  ;;  %v9233_v30 = vcombine.low %v2700_v13, %v2704_v14  ;;  %v2397_v13 = vld [vmem:[#allocation3 + $0x4d0] sm:$0xff] }
 0x354   :  { %5634 = vmatprep.subr.bf16.mxu1 %v9274_v32  ;;  %v2692_v25 = vld [vmem:[#allocation3 + $0xe08] sm:$0xff]  ;;  %v9098_v31 = vcombine.high %v2564_v23, %v2568_v24  ;;  %v2401_v14 = vld [vmem:[#allocation3 + $0x4f0] sm:$0xff] }
 0x355   :  { %5592 = vmatpush2.bf16.msra.mxu0 %v9145_v0  ;;  %v2696_v27 = vld [vmem:[#allocation3 + $0xe28] sm:$0xff]  ;;  %v9097_v0 = vcombine.low %v2564_v23, %v2568_v24  ;;  %v2261_v23 = vld [vmem:[#allocation3 + $0x90] sm:$0xff] }
 0x356   :  { %5593 = vmatprep.subr.bf16.mxu0 %v9138_v36  ;;  %v9226_v32 = vcombine.high %v2692_v25, %v2696_v27  ;;  %v8836_v36 = vcombine.high %v2301_v33, %v2305_v34  ;;  %v2265_v24 = vld [vmem:[#allocation3 + $0xb0] sm:$0xff] }
 0x357   :  { %5635 = vmatpush2.bf16.msra.mxu1 %v9273_v2  ;;  %v9225_v2 = vcombine.low %v2692_v25, %v2696_v27  ;;  %v2389_v25 = vld [vmem:[#allocation3 + $0x490] sm:$0xff] }
 0x358   :  { %5636 = vmatprep.subr.bf16.mxu1 %v9266_v3  ;;  %v8964_v3 = vcombine.high %v2429_v1, %v2433_v35  ;;  %v2393_v27 = vld [vmem:[#allocation3 + $0x4b0] sm:$0xff] }
 0x359   :  { %5594 = vmatpush2.bf16.msra.mxu0 %v9137_v48  ;;  %v8835_v48 = vcombine.low %v2301_v33, %v2305_v34  ;;  %v2253_v33 = vld [vmem:[#allocation3 + $0x50] sm:$0xff] }
 0x35a   :  { %5595 = vmatprep.subr.bf16.mxu0 %v9130_v50  ;;  %v8828_v50 = vcombine.high %v2293_v37, %v2297_v42  ;;  %v2257_v34 = vld [vmem:[#allocation3 + $0x70] sm:$0xff] }
 0x35b   :  { %5637 = vmatpush2.bf16.msra.mxu1 %v9265_v49  ;;  %v8963_v49 = vcombine.low %v2429_v1, %v2433_v35  ;;  %v2381_v1 = vld [vmem:[#allocation3 + $0x450] sm:$0xff] }
 0x35c   :  { %5638 = vmatprep.subr.bf16.mxu1 %v9258_v51  ;;  %v8956_v51 = vcombine.high %v2421_v47, %v2425_v39  ;;  %v2385_v35 = vld [vmem:[#allocation3 + $0x470] sm:$0xff] }
 0x35d   :  { %5596 = vmatpush2.bf16.msra.mxu0 %v9129_v56  ;;  %v8827_v56 = vcombine.low %v2293_v37, %v2297_v42  ;;  %v2245_v37 = vld [vmem:[#allocation3 + $0x10] sm:$0xff] }
 0x35e   :  { %5597 = vmatprep.subr.bf16.mxu0 %v9122_v57  ;;  %v8820_v57 = vcombine.high %v2285_v52, %v2289_v54  ;;  %v2249_v42 = vld [vmem:[#allocation3 + $0x30] sm:$0xff] }
 0x35f   :  { %5639 = vmatpush2.bf16.msra.mxu1 %v9257_v29  ;;  %v8955_v29 = vcombine.low %v2421_v47, %v2425_v39  ;;  %v2373_v47 = vld [vmem:[#allocation3 + $0x410] sm:$0xff] }
 0x360   :  { %5640 = vmatprep.subr.bf16.mxu1 %v9250_v58  ;;  %v8948_v58 = vcombine.high %v2413_v44, %v2417_v55  ;;  %v2377_v39 = vld [vmem:[#allocation3 + $0x430] sm:$0xff] }
 0x361   :  { %5598 = vmatpush2.bf16.msra.mxu0 %v9121_v63  ;;  %v8819_v63 = vcombine.low %v2285_v52, %v2289_v54  ;;  %v2365_v52 = vld [vmem:[#allocation3 + $0x3d0] sm:$0xff] }
 0x362   :  { %5599 = vmatprep.subr.bf16.mxu0 %v9114_v7  ;;  %v8812_v7 = vcombine.high %v2277_v59, %v2281_v60  ;;  %v2369_v54 = vld [vmem:[#allocation3 + $0x3f0] sm:$0xff] }
 0x363   :  { %5641 = vmatpush2.bf16.msra.mxu1 %v9249_v6  ;;  %v8947_v6 = vcombine.low %v2413_v44, %v2417_v55  ;;  %v2493_v44 = vld [vmem:[#allocation3 + $0x7d0] sm:$0xff] }
 0x364   :  { %5642 = vmatprep.subr.bf16.mxu1 %v9242_v8  ;;  %v8940_v8 = vcombine.high %v2405_v61, %v2409_v62  ;;  %v2497_v55 = vld [vmem:[#allocation3 + $0x7f0] sm:$0xff] }
 0x365   :  { %5600 = vmatpush2.bf16.msra.mxu0 %v9113_v15  ;;  %v8811_v15 = vcombine.low %v2277_v59, %v2281_v60  ;;  %v2357_v59 = vld [vmem:[#allocation3 + $0x390] sm:$0xff] }
 0x366   :  { %5601 = vmatprep.subr.bf16.mxu0 %v9106_v21  ;;  %v8804_v21 = vcombine.high %v2269_v9, %v2273_v12  ;;  %v2361_v60 = vld [vmem:[#allocation3 + $0x3b0] sm:$0xff] }
 0x367   :  { %5643 = vmatpush2.bf16.msra.mxu1 %v9241_v17  ;;  %v8939_v17 = vcombine.low %v2405_v61, %v2409_v62  ;;  %v2485_v61 = vld [vmem:[#allocation3 + $0x790] sm:$0xff] }
 0x368   :  { %5644 = vmatprep.subr.bf16.mxu1 %v9234_v22  ;;  %v8932_v22 = vcombine.high %v2397_v13, %v2401_v14  ;;  %v2489_v62 = vld [vmem:[#allocation3 + $0x7b0] sm:$0xff] }
 0x369   :  { %5602 = vmatpush2.bf16.msra.mxu0 %v9105_v28  ;;  %v8803_v28 = vcombine.low %v2269_v9, %v2273_v12  ;;  %v2349_v9 = vld [vmem:[#allocation3 + $0x350] sm:$0xff] }
 0x36a   :  { %5603 = vmatprep.subr.bf16.mxu0 %v9098_v31  ;;  %v8796_v31 = vcombine.high %v2261_v23, %v2265_v24  ;;  %v2353_v12 = vld [vmem:[#allocation3 + $0x370] sm:$0xff] }
 0x36b   :  { %5645 = vmatpush2.bf16.msra.mxu1 %v9233_v30  ;;  %v8931_v30 = vcombine.low %v2397_v13, %v2401_v14  ;;  %v2477_v13 = vld [vmem:[#allocation3 + $0x750] sm:$0xff] }
 0x36c   :  { %5646 = vmatprep.subr.bf16.mxu1 %v9226_v32  ;;  %v8924_v32 = vcombine.high %v2389_v25, %v2393_v27  ;;  %v2481_v14 = vld [vmem:[#allocation3 + $0x770] sm:$0xff] }
 0x36d   :  { %5604 = vmatpush2.bf16.msra.mxu0 %v9097_v0  ;;  %v8795_v0 = vcombine.low %v2261_v23, %v2265_v24  ;;  %v2341_v23 = vld [vmem:[#allocation3 + $0x310] sm:$0xff] }
 0x36e   :  { %5659 = vmatprep.subr.bf16.mxu0 %v8836_v36  ;;  %v8788_v36 = vcombine.high %v2253_v33, %v2257_v34  ;;  %v2345_v24 = vld [vmem:[#allocation3 + $0x330] sm:$0xff] }
 0x36f   :  { %5647 = vmatpush2.bf16.msra.mxu1 %v9225_v2  ;;  %v8923_v2 = vcombine.low %v2389_v25, %v2393_v27  ;;  %v2469_v25 = vld [vmem:[#allocation3 + $0x710] sm:$0xff] }
 0x370   :  { %5702 = vmatprep.subr.bf16.mxu1 %v8964_v3  ;;  %5606 = vmatmul.mubr.bf16.vlgmr.msra.gmra.mxu0 %v10593_v16  ;;  %v8916_v3 = vcombine.high %v2381_v1, %v2385_v35  ;;  %v2473_v27 = vld [vmem:[#allocation3 + $0x730] sm:$0xff] }
 0x371   :  { %5660 = vmatpush1.bf16.msra.mxu0 %v8835_v48  ;;  %5691 = vmatprep.mubr.bf16.mxu0 %v10559_v5  ;;  %v8787_v48 = vcombine.low %v2253_v33, %v2257_v34  ;;  %v2333_v33 = vld [vmem:[#allocation3 + $0x2d0] sm:$0xff] }
 0x372   :  { %5649 = vmatmul.mubr.bf16.vlgmr.msra.gmra.mxu1 %v10611_v53  ;;  %5661 = vmatprep.subr.bf16.mxu0 %v8828_v50  ;;  %v8780_v50 = vcombine.high %v2245_v37, %v2249_v42  ;;  %v2337_v34 = vld [vmem:[#allocation3 + $0x2f0] sm:$0xff] }
 0x373   :  { %5703 = vmatpush1.bf16.msra.mxu1 %v8963_v49  ;;  %5734 = vmatprep.mubr.bf16.mxu1 %v10577_v43  ;;  %v8915_v49 = vcombine.low %v2381_v1, %v2385_v35  ;;  %v2461_v1 = vld [vmem:[#allocation3 + $0x6d0] sm:$0xff] }
 0x374   :  { %5704 = vmatprep.subr.bf16.mxu1 %v8956_v51  ;;  %v8908_v51 = vcombine.high %v2373_v47, %v2377_v39  ;;  %v2465_v35 = vld [vmem:[#allocation3 + $0x6f0] sm:$0xff] }
 0x375   :  { %5662 = vmatpush1.bf16.msra.mxu0 %v8827_v56  ;;  %v8779_v56 = vcombine.low %v2245_v37, %v2249_v42  ;;  %v2325_v37 = vld [vmem:[#allocation3 + $0x290] sm:$0xff] }
 0x376   :  { %5663 = vmatprep.subr.bf16.mxu0 %v8820_v57  ;;  %v8900_v57 = vcombine.high %v2365_v52, %v2369_v54  ;;  %v2329_v42 = vld [vmem:[#allocation3 + $0x2b0] sm:$0xff] }
 0x377   :  { %5705 = vmatpush1.bf16.msra.mxu1 %v8955_v29  ;;  %v8907_v29 = vcombine.low %v2373_v47, %v2377_v39  ;;  %v2453_v47 = vld [vmem:[#allocation3 + $0x690] sm:$0xff] }
 0x378   :  { %5706 = vmatprep.subr.bf16.mxu1 %v8948_v58  ;;  %v9028_v58 = vcombine.high %v2493_v44, %v2497_v55  ;;  %v2457_v39 = vld [vmem:[#allocation3 + $0x6b0] sm:$0xff] }
 0x379   :  { %5664 = vmatpush1.bf16.msra.mxu0 %v8819_v63  ;;  %v8899_v63 = vcombine.low %v2365_v52, %v2369_v54  ;;  %v2317_v52 = vld [vmem:[#allocation3 + $0x250] sm:$0xff] }
 0x37a   :  { %5665 = vmatprep.subr.bf16.mxu0 %v8812_v7  ;;  %v8892_v7 = vcombine.high %v2357_v59, %v2361_v60  ;;  %v2321_v54 = vld [vmem:[#allocation3 + $0x270] sm:$0xff] }
 0x37b   :  { %5707 = vmatpush1.bf16.msra.mxu1 %v8947_v6  ;;  %v9027_v6 = vcombine.low %v2493_v44, %v2497_v55  ;;  %v2445_v44 = vld [vmem:[#allocation3 + $0x650] sm:$0xff] }
 0x37c   :  { %5708 = vmatprep.subr.bf16.mxu1 %v8940_v8  ;;  %v9020_v8 = vcombine.high %v2485_v61, %v2489_v62  ;;  %v2449_v55 = vld [vmem:[#allocation3 + $0x670] sm:$0xff] }
 0x37d   :  { %5666 = vmatpush1.bf16.msra.mxu0 %v8811_v15  ;;  %v8891_v15 = vcombine.low %v2357_v59, %v2361_v60  ;;  %v5392_v59 = vpop.f32.mrf.mxu1  ;;  %v8980_v60 = vcombine.high %v2445_v44, %v2449_v55 }
 0x37e   :  { %5667 = vmatprep.subr.bf16.mxu0 %v8804_v21  ;;  %v8884_v21 = vcombine.high %v2349_v9, %v2353_v12 }
 0x37f   :  { %5709 = vmatpush1.bf16.msra.mxu1 %v8939_v17  ;;  %v9019_v17 = vcombine.low %v2485_v61, %v2489_v62  ;;  %v2309_v61 = vld [vmem:[#allocation3 + $0x210] sm:$0xff] }
 0x380   :  { %5710 = vmatprep.subr.bf16.mxu1 %v8932_v22  ;;  %v9012_v22 = vcombine.high %v2477_v13, %v2481_v14  ;;  %v2313_v62 = vld [vmem:[#allocation3 + $0x230] sm:$0xff] }
 0x381   :  { %5668 = vmatpush1.bf16.msra.mxu0 %v8803_v28  ;;  %v8883_v28 = vcombine.low %v2349_v9, %v2353_v12  ;;  %v8979_v9 = vcombine.low %v2445_v44, %v2449_v55  ;;  %v8844_v12 = vcombine.high %v2309_v61, %v2313_v62 }
 0x382   :  { %5669 = vmatprep.subr.bf16.mxu0 %v8796_v31  ;;  %v8876_v31 = vcombine.high %v2341_v23, %v2345_v24 }
 0x383   :  { %5711 = vmatpush1.bf16.msra.mxu1 %v8931_v30  ;;  %v9011_v30 = vcombine.low %v2477_v13, %v2481_v14  ;;  %v5394_v13 = vpop.f32.mrf.mxu1 }
 0x384   :  { %5712 = vmatprep.subr.bf16.mxu1 %v8924_v32  ;;  %v9004_v32 = vcombine.high %v2469_v25, %v2473_v27 }
 0x385   :  { %5670 = vmatpush1.bf16.msra.mxu0 %v8795_v0  ;;  %v8875_v0 = vcombine.low %v2341_v23, %v2345_v24  ;;  %v8843_v23 = vcombine.low %v2309_v61, %v2313_v62 }
 0x386   :  { %5671 = vmatprep.subr.bf16.mxu0 %v8788_v36  ;;  %v8868_v36 = vcombine.high %v2333_v33, %v2337_v34 }
 0x387   :  { %5713 = vmatpush1.bf16.msra.mxu1 %v8923_v2  ;;  %v9003_v2 = vcombine.low %v2469_v25, %v2473_v27 }
 0x388   :  { %5714 = vmatprep.subr.bf16.mxu1 %v8916_v3  ;;  %v8996_v3 = vcombine.high %v2461_v1, %v2465_v35 }
 0x389   :  { %5672 = vmatpush1.bf16.msra.mxu0 %v8787_v48  ;;  %v8867_v48 = vcombine.low %v2333_v33, %v2337_v34  ;;  %v2677_v33 = vld [vmem:[#allocation3 + $0xd90] sm:$0xff] }
 0x38a   :  { %5673 = vmatprep.subr.bf16.mxu0 %v8780_v50  ;;  %v8860_v50 = vcombine.high %v2325_v37, %v2329_v42  ;;  %v2681_v34 = vld [vmem:[#allocation3 + $0xdb0] sm:$0xff] }
 0x38b   :  { %5715 = vmatpush1.bf16.msra.mxu1 %v8915_v49  ;;  %v8995_v49 = vcombine.low %v2461_v1, %v2465_v35  ;;  %v10633_v1 = vld [vmem:[#allocation13] sm:$0xff] }
 0x38c   :  { %5716 = vmatprep.subr.bf16.mxu1 %v8908_v51  ;;  %v8988_v51 = vcombine.high %v2453_v47, %v2457_v39 }
 0x38d   :  { %5674 = vmatpush1.bf16.msra.mxu0 %v8779_v56  ;;  %v8859_v56 = vcombine.low %v2325_v37, %v2329_v42 }
 0x38e   :  { %5675 = vmatprep.subr.bf16.mxu0 %v8900_v57  ;;  %v8987_v57 = vcombine.low %v2453_v47, %v2457_v39  ;;  %v9212_v47 = vcombine.high %v2677_v33, %v2681_v34  ;;  %v2545_v39 = vld [vmem:[#allocation3 + $0x970] sm:$0xff] }
 0x38f   :  { %5717 = vmatpush1.bf16.msra.mxu1 %v8907_v29  ;;  %v5349_v29 = vpop.f32.mrf.mxu0 }
 0x390   :  { %5718 = vmatprep.subr.bf16.mxu1 %v9028_v58  ;;  %v8852_v58 = vcombine.high %v2317_v52, %v2321_v54  ;;  %v5393_v37 = vadd.f32 %v5392_v59, %v5349_v29  ;;  %v9211_v29 = vcombine.low %v2677_v33, %v2681_v34 }
 0x391   :  { %5676 = vmatpush2.bf16.msra.mxu0 %v8899_v63  ;;  %v2437_v63 = vld [vmem:[#allocation3 + $0x610] sm:$0xff] }
 0x392   :  { %5677 = vmatprep.subr.bf16.mxu0 %v8892_v7  ;;  %v8851_v7 = vcombine.low %v2317_v52, %v2321_v54 }
 0x393   :  { %5719 = vmatpush2.bf16.msra.mxu1 %v9027_v6  ;;  %v2441_v6 = vld [vmem:[#allocation3 + $0x630] sm:$0xff] }
 0x394   :  { %5720 = vmatprep.subr.bf16.mxu1 %v9020_v8  ;;  %v5351_v8 = vpop.f32.mrf.mxu0  ;;  %v8972_v14 = vcombine.high %v2437_v63, %v2441_v6  ;;  %v8971_v25 = vcombine.low %v2437_v63, %v2441_v6 }
 0x395   :  { %5678 = vmatpush2.bf16.msra.mxu0 %v8891_v15  ;;  %v2557_v15 = vld [vmem:[#allocation3 + $0x9d0] sm:$0xff]  ;;  %v5395_v54 = vadd.f32 %v5394_v13, %v5351_v8 }
 0x396   :  { %5679 = vmatprep.subr.bf16.mxu0 %v8884_v21  ;;  %v2685_v21 = vld [vmem:[#allocation3 + $0xdd0] sm:$0xff]  ;;  %v5353_v24 = vpop.f32.mrf.mxu0 }
 0x397   :  { %5721 = vmatpush2.bf16.msra.mxu1 %v9019_v17  ;;  %v2561_v17 = vld [vmem:[#allocation3 + $0x9f0] sm:$0xff] }
 0x398   :  { %5722 = vmatprep.subr.bf16.mxu1 %v9012_v22  ;;  %v2689_v22 = vld [vmem:[#allocation3 + $0xdf0] sm:$0xff]  ;;  %v9092_v27 = vcombine.high %v2557_v15, %v2561_v17  ;;  %v9091_v35 = vcombine.low %v2557_v15, %v2561_v17 }
 0x399   :  { %5680 = vmatpush2.bf16.msra.mxu0 %v8883_v28  ;;  %v5396_v28 = vpop.f32.mrf.mxu1  ;;  %v2537_v8 = vld [vmem:[#allocation3 + $0x930] sm:$0xff] }
 0x39a   :  { %5681 = vmatprep.subr.bf16.mxu0 %v8876_v31  ;;  %v2549_v31 = vld [vmem:[#allocation3 + $0x990] sm:$0xff]  ;;  %v5397_v61 = vadd.f32 %v5396_v28, %v5353_v24 }
 0x39b   :  { %5723 = vmatpush2.bf16.msra.mxu1 %v9011_v30  ;;  %v9220_v30 = vcombine.high %v2685_v21, %v2689_v22  ;;  %v5398_v42 = vpop.f32.mrf.mxu1  ;;  %v2665_v15 = vld [vmem:[#allocation3 + $0xd30] sm:$0xff] }
 0x39c   :  { %5724 = vmatprep.subr.bf16.mxu1 %v9004_v32  ;;  %v2553_v32 = vld [vmem:[#allocation3 + $0x9b0] sm:$0xff] }
 0x39d   :  { %5682 = vmatpush2.bf16.msra.mxu0 %v8875_v0  ;;  %v5355_v0 = vpop.f32.mrf.mxu0  ;;  %v9083_v52 = vcombine.low %v2549_v31, %v2553_v32 }
 0x39e   :  { %5683 = vmatprep.subr.bf16.mxu0 %v8868_v36  ;;  %v9084_v36 = vcombine.high %v2549_v31, %v2553_v32  ;;  %v5399_v17 = vadd.f32 %v5398_v42, %v5355_v0  ;;  %v2529_v0 = vld [vmem:[#allocation3 + $0x8f0] sm:$0xff] }
 0x39f   :  { %5725 = vmatpush2.bf16.msra.mxu1 %v9003_v2  ;;  %v9219_v2 = vcombine.low %v2685_v21, %v2689_v22 }
 0x3a0   :  { %5726 = vmatprep.subr.bf16.mxu1 %v8996_v3  ;;  %v10635_v3 = vld [vmem:[#allocation3 + $0x950] sm:$0xff] }
 0x3a1   :  { %5684 = vmatpush2.bf16.msra.mxu0 %v8867_v48  ;;  %v2669_v48 = vld [vmem:[#allocation3 + $0xd50] sm:$0xff]  ;;  %v9076_v59 = vcombine.high %v10635_v3, %v2545_v39  ;;  %v9075_v13 = vcombine.low %v10635_v3, %v2545_v39 }
 0x3a2   :  { %5685 = vmatprep.subr.bf16.mxu0 %v8860_v50  ;;  %v2657_v3 = vld [vmem:[#allocation3 + $0xcf0] sm:$0xff] }
 0x3a3   :  { %5727 = vmatpush2.bf16.msra.mxu1 %v8995_v49  ;;  %v2673_v49 = vld [vmem:[#allocation3 + $0xd70] sm:$0xff] }
 0x3a4   :  { %5728 = vmatprep.subr.bf16.mxu1 %v8988_v51  ;;  %v6008_v51 = vrot.slane %v10633_v1, %v10538_v38  ;;  %v9203_v28 = vcombine.low %v2669_v48, %v2673_v49 }
 0x3a5   :  { %5686 = vmatpush2.bf16.msra.mxu0 %v8859_v56  ;;  %v10640_v56 = vld [vmem:[#allocation15] sm:$0xff] }
 0x3a6   :  { %5687 = vmatprep.subr.bf16.mxu0 %v8852_v58  ;;  %v6012_v58 = vrot.slane %v10633_v1, %v10543_v40 }
 0x3a7   :  { %5729 = vmatpush2.bf16.msra.mxu1 %v8987_v57 }
 0x3a8   :  { %5730 = vmatprep.subr.bf16.mxu1 %v8980_v60  ;;  %v9204_v60 = vcombine.high %v2669_v48, %v2673_v49 }
 0x3a9   :  { %5688 = vmatpush2.bf16.msra.mxu0 %v8851_v7  ;;  %v2533_v7 = vld [vmem:[#allocation3 + $0x910] sm:$0xff] }
 0x3aa   :  { %5689 = vmatprep.subr.bf16.mxu0 %v8844_v12  ;;  %v9067_v39 = vcombine.low %v2533_v7, %v2537_v8 }
 0x3ab   :  { %5731 = vmatpush2.bf16.msra.mxu1 %v8979_v9  ;;  %v6066_v9 = vrot.slane %v10640_v56, %v10538_v38 }
 0x3ac   :  { %5732 = vmatprep.subr.bf16.mxu1 %v8972_v14  ;;  %v2661_v14 = vld [vmem:[#allocation3 + $0xd10] sm:$0xff] }
 0x3ad   :  { %5690 = vmatpush2.bf16.msra.mxu0 %v8843_v23  ;;  %v9196_v34 = vcombine.high %v2661_v14, %v2665_v15 }
 0x3ae   :  { %5745 = vmatprep.subr.bf16.mxu0 %v9092_v27 }
 0x3af   :  { %5733 = vmatpush2.bf16.msra.mxu1 %v8971_v25  ;;  %v6070_v25 = vrot.slane %v10640_v56, %v10543_v40 }
 0x3b0   :  { %5788 = vmatprep.subr.bf16.mxu1 %v9220_v30  ;;  %v5435_v50 = vpop.f32.mrf.mxu0  ;;  %5692 = vmatmul.mubr.bf16.vlgmr.msra.gmra.mxu0 %v10557_v4  ;;  %v9068_v30 = vcombine.high %v2533_v7, %v2537_v8 }
 0x3b1   :  { %v5436_v44 = vadd.f32 %v5435_v50, %v5393_v37  ;;  %5746 = vmatpush1.bf16.msra.mxu0 %v9091_v35  ;;  %5777 = vmatprep.mubr.bf16.mxu0 %v10595_v18  ;;  %v2525_v35 = vld [vmem:[#allocation3 + $0x8d0] sm:$0xff]  ;;  %v9195_v50 = vcombine.low %v2661_v14, %v2665_v15 }
 0x3b2   :  { %v5478_v55 = vpop.f32.mrf.mxu1  ;;  %5735 = vmatmul.mubr.bf16.vlgmr.msra.gmra.mxu1 %v10575_v41  ;;  %v5437_v57 = vpop.f32.mrf.mxu0  ;;  %5747 = vmatprep.subr.bf16.mxu0 %v9084_v36  ;;  %v2653_v36 = vld [vmem:[#allocation3 + $0xcd0] sm:$0xff]  ;;  %v9060_v48 = vcombine.high %v2525_v35, %v2529_v0 }
 0x3b3   :  { %5789 = vmatpush1.bf16.msra.mxu1 %v9219_v2  ;;  %v5479_v62 = vadd.f32 %v5478_v55, %v5436_v44  ;;  %v5438_v63 = vadd.f32 %v5437_v57, %v5395_v54  ;;  %5820 = vmatprep.mubr.bf16.mxu1 %v10613_v26  ;;  %v9188_v44 = vcombine.high %v2653_v36, %v2657_v3  ;;  %v2517_v55 = vld [vmem:[#allocation3 + $0x890] sm:$0xff] }
 0x3b4   :  { %v5480_v6 = vpop.f32.mrf.mxu1  ;;  %5790 = vmatprep.subr.bf16.mxu1 %v9212_v47  ;;  %v5439_v12 = vpop.f32.mrf.mxu0  ;;  %v2645_v57 = vld [vmem:[#allocation3 + $0xc90] sm:$0xff] }
 0x3b5   :  { %v6045_v21 = vmul.f32 %v6008_v51, %v5479_v62  ;;  %v5481_v22 = vadd.f32 %v5480_v6, %v5438_v63  ;;  %v5440_v23 = vadd.f32 %v5439_v12, %v5397_v61  ;;  %5748 = vmatpush1.bf16.msra.mxu0 %v9083_v52  ;;  %v9187_v63 = vcombine.low %v2653_v36, %v2657_v3  ;;  %v2509_v12 = vld [vmem:[#allocation3 + $0x850] sm:$0xff] }
 0x3b6   :  { %v5482_v24 = vpop.f32.mrf.mxu1  ;;  %v5441_v27 = vpop.f32.mrf.mxu0  ;;  %5749 = vmatprep.subr.bf16.mxu0 %v9076_v59  ;;  %v2649_v59 = vld [vmem:[#allocation3 + $0xcb0] sm:$0xff] }
 0x3b7   :  { %5791 = vmatpush1.bf16.msra.mxu1 %v9211_v29  ;;  %v6046_v31 = vmul.f32 %v6012_v58, %v5481_v22  ;;  %v5483_v32 = vadd.f32 %v5482_v24, %v5440_v23  ;;  %v5442_v33 = vadd.f32 %v5441_v27, %v5399_v17  ;;  %v6103_v37 = vadd.f32 %v6066_v9, %v6045_v21  ;;  %v2521_v29 = vld [vmem:[#allocation3 + $0x8b0] sm:$0xff] }
 0x3b8   :  { %5792 = vmatprep.subr.bf16.mxu1 %v9204_v60  ;;  %v5484_v2 = vpop.f32.mrf.mxu1  ;;  %v9052_v6 = vcombine.high %v2517_v55, %v2521_v29  ;;  %v2637_v14 = vld [vmem:[#allocation3 + $0xc50] sm:$0xff]  ;;  %v9051_v21 = vcombine.low %v2517_v55, %v2521_v29  ;;  %v9179_v22 = vcombine.low %v2645_v57, %v2649_v59 }
 0x3b9   :  { %v6053_v42 = vmul.f32 %v6008_v51, %v5483_v32  ;;  %v5485_v47 = vadd.f32 %v5484_v2, %v5442_v33  ;;  %5750 = vmatpush1.bf16.msra.mxu0 %v9075_v13  ;;  %v6104_v49 = vadd.f32 %v6070_v25, %v6046_v31  ;;  %v6119_v60 = vmax.f32 %v6103_v37, 0.0  ;;  %v2513_v13 = vld [vmem:[#allocation3 + $0x870] sm:$0xff] }
 0x3ba   :  { %5751 = vmatprep.subr.bf16.mxu0 %v9068_v30  ;;  %v9059_v51 = vcombine.low %v2525_v35, %v2529_v0  ;;  %v2641_v15 = vld [vmem:[#allocation3 + $0xc70] sm:$0xff]  ;;  %v9044_v23 = vcombine.high %v2509_v12, %v2513_v13  ;;  %v9043_v31 = vcombine.low %v2509_v12, %v2513_v13 }
 0x3bb   :  { %5793 = vmatpush1.bf16.msra.mxu1 %v9203_v28  ;;  %v6111_v52 = vadd.f32 %v6066_v9, %v6053_v42  ;;  %v6054_v54 = vmul.f32 %v6012_v58, %v5485_v47  ;;  %v6120_v7 = vmax.f32 %v6104_v49, 0.0  ;;  %v9180_v58 = vcombine.high %v2645_v57, %v2649_v59  ;;  %v2505_v27 = vld [vmem:[#allocation3 + $0x830] sm:$0xff] }
 0x3bc   :  { %5794 = vmatprep.subr.bf16.mxu1 %v9196_v34  ;;  %v9172_v24 = vcombine.high %v2637_v14, %v2641_v15  ;;  %v2629_v28 = vld [vmem:[#allocation3 + $0xc10] sm:$0xff]  ;;  %v9171_v32 = vcombine.low %v2637_v14, %v2641_v15 }
 0x3bd   :  { %v6127_v61 = vmax.f32 %v6111_v52, 0.0  ;;  %v6112_v62 = vadd.f32 %v6070_v25, %v6054_v54  ;;  %5752 = vmatpush1.bf16.msra.mxu0 %v9067_v39  ;;  %v2501_v25 = vld [vmem:[#allocation3 + $0x810] sm:$0xff] }
 0x3be   :  { %5753 = vmatprep.subr.bf16.mxu0 %v9060_v48  ;;  %v2633_v30 = vld [vmem:[#allocation3 + $0xc30] sm:$0xff]  ;;  %v9036_v33 = vcombine.high %v2501_v25, %v2505_v27  ;;  %v9035_v3 = vcombine.low %v2501_v25, %v2505_v27 }
 0x3bf   :  { %5795 = vmatpush1.bf16.msra.mxu1 %v9195_v50  ;;  %v10653_v8 = vpack.c.bf16 %v6127_v61, %v6119_v60  ;;  %v6128_v9 = vmax.f32 %v6112_v62, 0.0  ;;  %v9164_v34 = vcombine.high %v2629_v28, %v2633_v30  ;;  %v2621_v35 = vld [vmem:[#allocation3 + $0xbd0] sm:$0xff]  ;;  %v9163_v37 = vcombine.low %v2629_v28, %v2633_v30 }
 0x3c0   :  { %5796 = vmatprep.subr.bf16.mxu1 %v9188_v44  ;;  %v2625_v0 = vld [vmem:[#allocation3 + $0xbf0] sm:$0xff] }
 0x3c1   :  { %v10655_v17 = vpack.c.bf16 %v6128_v9, %v6120_v7  ;;  %5754 = vmatpush1.bf16.msra.mxu0 %v9059_v51  ;;  %v2749_v2 = vld [vmem:[#allocation3 + $0xfd0] sm:$0xff]  ;;  %v9156_v42 = vcombine.high %v2621_v35, %v2625_v0  ;;  %v9155_v52 = vcombine.low %v2621_v35, %v2625_v0 }
 0x3c2   :  { %5755 = vmatprep.subr.bf16.mxu0 %v9052_v6  ;;  %v2753_v36 = vld [vmem:[#allocation3 + $0xff0] sm:$0xff] }
 0x3c3   :  { %5797 = vmatpush1.bf16.msra.mxu1 %v9187_v63  ;;  %v9284_v47 = vcombine.high %v2749_v2, %v2753_v36  ;;  %v2613_v39 = vld [vmem:[#allocation3 + $0xb90] sm:$0xff]  ;;  %v9283_v54 = vcombine.low %v2749_v2, %v2753_v36 }
 0x3c4   :  { %5798 = vmatprep.subr.bf16.mxu1 %v9180_v58  ;;  %v2617_v50 = vld [vmem:[#allocation3 + $0xbb0] sm:$0xff] }
 0x3c5   :  { %5756 = vmatpush1.bf16.msra.mxu0 %v9051_v21  ;;  %v2741_v48 = vld [vmem:[#allocation3 + $0xf90] sm:$0xff]  ;;  %v9148_v44 = vcombine.high %v2613_v39, %v2617_v50  ;;  %v9147_v61 = vcombine.low %v2613_v39, %v2617_v50 }
 0x3c6   :  { %5757 = vmatprep.subr.bf16.mxu0 %v9044_v23  ;;  %v2745_v49 = vld [vmem:[#allocation3 + $0xfb0] sm:$0xff] }
 0x3c7   :  { %5799 = vmatpush1.bf16.msra.mxu1 %v9179_v22  ;;  %v9276_v55 = vcombine.high %v2741_v48, %v2745_v49  ;;  %v2605_v29 = vld [vmem:[#allocation3 + $0xb50] sm:$0xff]  ;;  %v9275_v62 = vcombine.low %v2741_v48, %v2745_v49 }
 0x3c8   :  { %5800 = vmatprep.subr.bf16.mxu1 %v9172_v24  ;;  %v2609_v57 = vld [vmem:[#allocation3 + $0xb70] sm:$0xff] }
 0x3c9   :  { %5758 = vmatpush1.bf16.msra.mxu0 %v9043_v31  ;;  %v2733_v59 = vld [vmem:[#allocation3 + $0xf50] sm:$0xff]  ;;  %v9140_v51 = vcombine.high %v2605_v29, %v2609_v57  ;;  %v9139_v12 = vcombine.low %v2605_v29, %v2609_v57 }
 0x3ca   :  { %5759 = vmatprep.subr.bf16.mxu0 %v9036_v33  ;;  %v2737_v60 = vld [vmem:[#allocation3 + $0xf70] sm:$0xff] }
 0x3cb   :  { %5801 = vmatpush1.bf16.msra.mxu1 %v9171_v32  ;;  %v9268_v63 = vcombine.high %v2733_v59, %v2737_v60  ;;  %v2597_v6 = vld [vmem:[#allocation3 + $0xb10] sm:$0xff]  ;;  %v9267_v13 = vcombine.low %v2733_v59, %v2737_v60 }
 0x3cc   :  { %5802 = vmatprep.subr.bf16.mxu1 %v9164_v34  ;;  %v2601_v7 = vld [vmem:[#allocation3 + $0xb30] sm:$0xff] }
 0x3cd   :  { %5760 = vmatpush1.bf16.msra.mxu0 %v9035_v3  ;;  %v2725_v9 = vld [vmem:[#allocation3 + $0xf10] sm:$0xff]  ;;  %v9132_v14 = vcombine.high %v2597_v6, %v2601_v7  ;;  %v9131_v25 = vcombine.low %v2597_v6, %v2601_v7 }
 0x3ce   :  { %5761 = vmatprep.subr.bf16.mxu0 %v9156_v42  ;;  %v2729_v58 = vld [vmem:[#allocation3 + $0xf30] sm:$0xff] }
 0x3cf   :  { %5803 = vmatpush1.bf16.msra.mxu1 %v9163_v37  ;;  %v9260_v15 = vcombine.high %v2725_v9, %v2729_v58  ;;  %v2589_v21 = vld [vmem:[#allocation3 + $0xad0] sm:$0xff]  ;;  %v9259_v27 = vcombine.low %v2725_v9, %v2729_v58 }
 0x3d0   :  { %5804 = vmatprep.subr.bf16.mxu1 %v9284_v47  ;;  %v2593_v22 = vld [vmem:[#allocation3 + $0xaf0] sm:$0xff] }
 0x3d1   :  { %5762 = vmatpush2.bf16.msra.mxu0 %v9155_v52  ;;  %v2717_v23 = vld [vmem:[#allocation3 + $0xed0] sm:$0xff]  ;;  %v9124_v28 = vcombine.high %v2589_v21, %v2593_v22  ;;  %v9123_v35 = vcombine.low %v2589_v21, %v2593_v22 }
 0x3d2   :  { %5763 = vmatprep.subr.bf16.mxu0 %v9148_v44  ;;  %v2721_v24 = vld [vmem:[#allocation3 + $0xef0] sm:$0xff] }
 0x3d3   :  { %5805 = vmatpush2.bf16.msra.mxu1 %v9283_v54  ;;  %v9252_v30 = vcombine.high %v2717_v23, %v2721_v24  ;;  %v2581_v31 = vld [vmem:[#allocation3 + $0xa90] sm:$0xff]  ;;  %v9251_v0 = vcombine.low %v2717_v23, %v2721_v24 }
 0x3d4   :  { %5806 = vmatprep.subr.bf16.mxu1 %v9276_v55  ;;  %v2585_v32 = vld [vmem:[#allocation3 + $0xab0] sm:$0xff] }
 0x3d5   :  { %5764 = vmatpush2.bf16.msra.mxu0 %v9147_v61  ;;  %v2709_v33 = vld [vmem:[#allocation3 + $0xe90] sm:$0xff]  ;;  %v9116_v2 = vcombine.high %v2581_v31, %v2585_v32  ;;  %v9115_v39 = vcombine.low %v2581_v31, %v2585_v32  ;;  %v2302_v61 = vld [vmem:[#allocation3 + $0x1d8] sm:$0xff] }
 0x3d6   :  { %5765 = vmatprep.subr.bf16.mxu0 %v9140_v51  ;;  %v2713_v34 = vld [vmem:[#allocation3 + $0xeb0] sm:$0xff]  ;;  %v2430_v51 = vld [vmem:[#allocation3 + $0x5d8] sm:$0xff] }
 0x3d7   :  { %5807 = vmatpush2.bf16.msra.mxu1 %v9275_v62  ;;  %v9244_v36 = vcombine.high %v2709_v33, %v2713_v34  ;;  %v2573_v3 = vld [vmem:[#allocation3 + $0xa50] sm:$0xff]  ;;  %v9243_v50 = vcombine.low %v2709_v33, %v2713_v34  ;;  %v2306_v62 = vld [vmem:[#allocation3 + $0x1f8] sm:$0xff] }
 0x3d8   :  { %5808 = vmatprep.subr.bf16.mxu1 %v9268_v63  ;;  %v2577_v37 = vld [vmem:[#allocation3 + $0xa70] sm:$0xff]  ;;  %v2434_v63 = vld [vmem:[#allocation3 + $0x5f8] sm:$0xff]  ;;  %v8838_v9 = vcombine.high %v2302_v61, %v2306_v62  ;;  %v8837_v21 = vcombine.low %v2302_v61, %v2306_v62 }
 0x3d9   :  { %5766 = vmatpush2.bf16.msra.mxu0 %v9139_v12  ;;  %v2701_v42 = vld [vmem:[#allocation3 + $0xe50] sm:$0xff]  ;;  %v9108_v48 = vcombine.high %v2573_v3, %v2577_v37  ;;  %v9107_v29 = vcombine.low %v2573_v3, %v2577_v37  ;;  %v8966_v58 = vcombine.high %v2430_v51, %v2434_v63  ;;  %v2294_v12 = vld [vmem:[#allocation3 + $0x198] sm:$0xff]  ;;  %v8965_v22 = vcombine.low %v2430_v51, %v2434_v63 }
 0x3da   :  { %5767 = vmatprep.subr.bf16.mxu0 %v9132_v14  ;;  %v2705_v47 = vld [vmem:[#allocation3 + $0xe70] sm:$0xff]  ;;  %v2422_v14 = vld [vmem:[#allocation3 + $0x598] sm:$0xff] }
 0x3db   :  { %5809 = vmatpush2.bf16.msra.mxu1 %v9267_v13  ;;  %v9236_v49 = vcombine.high %v2701_v42, %v2705_v47  ;;  %v2565_v52 = vld [vmem:[#allocation3 + $0xa10] sm:$0xff]  ;;  %v9235_v57 = vcombine.low %v2701_v42, %v2705_v47  ;;  %v2298_v13 = vld [vmem:[#allocation3 + $0x1b8] sm:$0xff] }
 0x3dc   :  { %5810 = vmatprep.subr.bf16.mxu1 %v9260_v15  ;;  %v2569_v54 = vld [vmem:[#allocation3 + $0xa30] sm:$0xff]  ;;  %v2426_v15 = vld [vmem:[#allocation3 + $0x5b8] sm:$0xff]  ;;  %v8830_v23 = vcombine.high %v2294_v12, %v2298_v13  ;;  %v8829_v31 = vcombine.low %v2294_v12, %v2298_v13 }
 0x3dd   :  { %5768 = vmatpush2.bf16.msra.mxu0 %v9131_v25  ;;  %v2693_v44 = vld [vmem:[#allocation3 + $0xe10] sm:$0xff]  ;;  %v9100_v59 = vcombine.high %v2565_v52, %v2569_v54  ;;  %v9099_v6 = vcombine.low %v2565_v52, %v2569_v54  ;;  %v8958_v24 = vcombine.high %v2422_v14, %v2426_v15  ;;  %v2286_v25 = vld [vmem:[#allocation3 + $0x158] sm:$0xff]  ;;  %v8957_v32 = vcombine.low %v2422_v14, %v2426_v15 }
 0x3de   :  { %5769 = vmatprep.subr.bf16.mxu0 %v9124_v28  ;;  %v2697_v55 = vld [vmem:[#allocation3 + $0xe30] sm:$0xff]  ;;  %v2414_v28 = vld [vmem:[#allocation3 + $0x558] sm:$0xff] }
 0x3df   :  { %5811 = vmatpush2.bf16.msra.mxu1 %v9259_v27  ;;  %v9228_v60 = vcombine.high %v2693_v44, %v2697_v55  ;;  %v9227_v7 = vcombine.low %v2693_v44, %v2697_v55  ;;  %v2290_v27 = vld [vmem:[#allocation3 + $0x178] sm:$0xff] }
 0x3e0   :  { %5812 = vmatprep.subr.bf16.mxu1 %v9252_v30  ;;  %v2418_v30 = vld [vmem:[#allocation3 + $0x578] sm:$0xff]  ;;  %v8822_v33 = vcombine.high %v2286_v25, %v2290_v27  ;;  %v8821_v3 = vcombine.low %v2286_v25, %v2290_v27 }
 0x3e1   :  { %5770 = vmatpush2.bf16.msra.mxu0 %v9123_v35  ;;  %v8950_v34 = vcombine.high %v2414_v28, %v2418_v30  ;;  %v2278_v35 = vld [vmem:[#allocation3 + $0x118] sm:$0xff]  ;;  %v8949_v37 = vcombine.low %v2414_v28, %v2418_v30 }
 0x3e2   :  { %5771 = vmatprep.subr.bf16.mxu0 %v9116_v2  ;;  %v2406_v2 = vld [vmem:[#allocation3 + $0x518] sm:$0xff] }
 0x3e3   :  { %5813 = vmatpush2.bf16.msra.mxu1 %v9251_v0  ;;  %v2282_v0 = vld [vmem:[#allocation3 + $0x138] sm:$0xff] }
 0x3e4   :  { %5814 = vmatprep.subr.bf16.mxu1 %v9244_v36  ;;  %v2410_v36 = vld [vmem:[#allocation3 + $0x538] sm:$0xff]  ;;  %v8814_v42 = vcombine.high %v2278_v35, %v2282_v0  ;;  %v8813_v52 = vcombine.low %v2278_v35, %v2282_v0 }
 0x3e5   :  { %5772 = vmatpush2.bf16.msra.mxu0 %v9115_v39  ;;  %v8942_v47 = vcombine.high %v2406_v2, %v2410_v36  ;;  %v2270_v39 = vld [vmem:[#allocation3 + $0xd8] sm:$0xff] }
 0x3e6   :  { %5773 = vmatprep.subr.bf16.mxu0 %v9108_v48  ;;  %v2398_v48 = vld [vmem:[#allocation3 + $0x4d8] sm:$0xff] }
 0x3e7   :  { %5815 = vmatpush2.bf16.msra.mxu1 %v9243_v50  ;;  %v2274_v50 = vld [vmem:[#allocation3 + $0xf8] sm:$0xff] }
 0x3e8   :  { %5816 = vmatprep.subr.bf16.mxu1 %v9236_v49  ;;  %v2402_v49 = vld [vmem:[#allocation3 + $0x4f8] sm:$0xff]  ;;  %v8806_v54 = vcombine.high %v2270_v39, %v2274_v50 }
 0x3e9   :  { %5774 = vmatpush2.bf16.msra.mxu0 %v9107_v29  ;;  %v2262_v44 = vld [vmem:[#allocation3 + $0x98] sm:$0xff] }
 0x3ea   :  { %5775 = vmatprep.subr.bf16.mxu0 %v9100_v59  ;;  %v2266_v55 = vld [vmem:[#allocation3 + $0xb8] sm:$0xff]  ;;  %v8805_v59 = vcombine.low %v2270_v39, %v2274_v50 }
 0x3eb   :  { %5817 = vmatpush2.bf16.msra.mxu1 %v9235_v57  ;;  %v2390_v29 = vld [vmem:[#allocation3 + $0x498] sm:$0xff]  ;;  %v8798_v61 = vcombine.high %v2262_v44, %v2266_v55 }
 0x3ec   :  { %5818 = vmatprep.subr.bf16.mxu1 %v9228_v60  ;;  %v2394_v57 = vld [vmem:[#allocation3 + $0x4b8] sm:$0xff]  ;;  %v8933_v60 = vcombine.low %v2398_v48, %v2402_v49 }
 0x3ed   :  { %5776 = vmatpush2.bf16.msra.mxu0 %v9099_v6  ;;  %v8926_v62 = vcombine.high %v2390_v29, %v2394_v57  ;;  %v2254_v51 = vld [vmem:[#allocation3 + $0x58] sm:$0xff] }
 0x3ee   :  { %5831 = vmatprep.subr.bf16.mxu0 %v8838_v9  ;;  %v2258_v63 = vld [vmem:[#allocation3 + $0x78] sm:$0xff]  ;;  %v8797_v9 = vcombine.low %v2262_v44, %v2266_v55 }
 0x3ef   :  { %5819 = vmatpush2.bf16.msra.mxu1 %v9227_v7  ;;  %v2382_v6 = vld [vmem:[#allocation3 + $0x458] sm:$0xff]  ;;  %v8790_v12 = vcombine.high %v2254_v51, %v2258_v63 }
 0x3f0   :  { %5874 = vmatprep.subr.bf16.mxu1 %v8966_v58  ;;  %5778 = vmatmul.mubr.bf16.vlgmr.msra.gmra.mxu0 %v10593_v16  ;;  %v2386_v7 = vld [vmem:[#allocation3 + $0x478] sm:$0xff]  ;;  %v8925_v58 = vcombine.low %v2390_v29, %v2394_v57 }
 0x3f1   :  { %5832 = vmatpush1.bf16.msra.mxu0 %v8837_v21  ;;  %5863 = vmatprep.mubr.bf16.mxu0 %v10559_v5  ;;  %v8941_v5 = vcombine.low %v2406_v2, %v2410_v36  ;;  %v8918_v13 = vcombine.high %v2382_v6, %v2386_v7  ;;  %v2246_v14 = vld [vmem:[#allocation3 + $0x18] sm:$0xff] }
 0x3f2   :  { %5821 = vmatmul.mubr.bf16.vlgmr.msra.gmra.mxu1 %v10611_v53  ;;  %5833 = vmatprep.subr.bf16.mxu0 %v8830_v23  ;;  %v2250_v15 = vld [vmem:[#allocation3 + $0x38] sm:$0xff]  ;;  %v8789_v23 = vcombine.low %v2254_v51, %v2258_v63 }
 0x3f3   :  { %5875 = vmatpush1.bf16.msra.mxu1 %v8965_v22  ;;  %5906 = vmatprep.mubr.bf16.mxu1 %v10577_v43  ;;  %v8934_v43 = vcombine.high %v2398_v48, %v2402_v49  ;;  %v2374_v21 = vld [vmem:[#allocation3 + $0x418] sm:$0xff]  ;;  %v8782_v25 = vcombine.high %v2246_v14, %v2250_v15 }
 0x3f4   :  { %5876 = vmatprep.subr.bf16.mxu1 %v8958_v24  ;;  %v2378_v22 = vld [vmem:[#allocation3 + $0x438] sm:$0xff]  ;;  %v8917_v24 = vcombine.low %v2382_v6, %v2386_v7 }
 0x3f5   :  { %5834 = vmatpush1.bf16.msra.mxu0 %v8829_v31  ;;  %v8910_v27 = vcombine.high %v2374_v21, %v2378_v22  ;;  %v2366_v28 = vld [vmem:[#allocation3 + $0x3d8] sm:$0xff] }
 0x3f6   :  { %5835 = vmatprep.subr.bf16.mxu0 %v8822_v33  ;;  %v2370_v30 = vld [vmem:[#allocation3 + $0x3f8] sm:$0xff]  ;;  %v8781_v33 = vcombine.low %v2246_v14, %v2250_v15 }
 0x3f7   :  { %5877 = vmatpush1.bf16.msra.mxu1 %v8957_v32  ;;  %v2494_v31 = vld [vmem:[#allocation3 + $0x7d8] sm:$0xff]  ;;  %v8902_v35 = vcombine.high %v2366_v28, %v2370_v30 }
 0x3f8   :  { %5878 = vmatprep.subr.bf16.mxu1 %v8950_v34  ;;  %v2498_v32 = vld [vmem:[#allocation3 + $0x7f8] sm:$0xff]  ;;  %v8909_v34 = vcombine.low %v2374_v21, %v2378_v22 }
 0x3f9   :  { %5836 = vmatpush1.bf16.msra.mxu0 %v8821_v3  ;;  %v9030_v0 = vcombine.high %v2494_v31, %v2498_v32  ;;  %v2358_v2 = vld [vmem:[#allocation3 + $0x398] sm:$0xff] }
 0x3fa   :  { %5837 = vmatprep.subr.bf16.mxu0 %v8814_v42  ;;  %v2362_v36 = vld [vmem:[#allocation3 + $0x3b8] sm:$0xff]  ;;  %v8901_v42 = vcombine.low %v2366_v28, %v2370_v30 }
 0x3fb   :  { %5879 = vmatpush1.bf16.msra.mxu1 %v8949_v37  ;;  %v2486_v3 = vld [vmem:[#allocation3 + $0x798] sm:$0xff]  ;;  %v8894_v39 = vcombine.high %v2358_v2, %v2362_v36 }
 0x3fc   :  { %5880 = vmatprep.subr.bf16.mxu1 %v8942_v47  ;;  %v2490_v37 = vld [vmem:[#allocation3 + $0x7b8] sm:$0xff]  ;;  %v9029_v47 = vcombine.low %v2494_v31, %v2498_v32 }
 0x3fd   :  { %5838 = vmatpush1.bf16.msra.mxu0 %v8813_v52  ;;  %v9022_v50 = vcombine.high %v2486_v3, %v2490_v37  ;;  %v2350_v48 = vld [vmem:[#allocation3 + $0x358] sm:$0xff] }
 0x3fe   :  { %5839 = vmatprep.subr.bf16.mxu0 %v8806_v54  ;;  %v2354_v49 = vld [vmem:[#allocation3 + $0x378] sm:$0xff]  ;;  %v8893_v54 = vcombine.low %v2358_v2, %v2362_v36 }
 0x3ff   :  { %5881 = vmatpush1.bf16.msra.mxu1 %v8941_v5  ;;  %v2478_v52 = vld [vmem:[#allocation3 + $0x758] sm:$0xff]  ;;  %v8886_v44 = vcombine.high %v2350_v48, %v2354_v49 }
 0x400   :  { %5882 = vmatprep.subr.bf16.mxu1 %v8934_v43  ;;  %v2482_v5 = vld [vmem:[#allocation3 + $0x778] sm:$0xff]  ;;  %v9021_v43 = vcombine.low %v2486_v3, %v2490_v37  ;;  %v5564_v3 = vpop.f32.mrf.mxu1 }
 0x401   :  { %5840 = vmatpush1.bf16.msra.mxu0 %v8805_v59  ;;  %v9014_v55 = vcombine.high %v2478_v52, %v2482_v5  ;;  %v2342_v29 = vld [vmem:[#allocation3 + $0x318] sm:$0xff] }
 0x402   :  { %5841 = vmatprep.subr.bf16.mxu0 %v8798_v61  ;;  %v2346_v57 = vld [vmem:[#allocation3 + $0x338] sm:$0xff]  ;;  %v8885_v61 = vcombine.low %v2350_v48, %v2354_v49 }
 0x403   :  { %5883 = vmatpush1.bf16.msra.mxu1 %v8933_v60  ;;  %v2470_v59 = vld [vmem:[#allocation3 + $0x718] sm:$0xff]  ;;  %v8878_v51 = vcombine.high %v2342_v29, %v2346_v57 }
 0x404   :  { %5884 = vmatprep.subr.bf16.mxu1 %v8926_v62  ;;  %v2474_v60 = vld [vmem:[#allocation3 + $0x738] sm:$0xff]  ;;  %v9013_v62 = vcombine.low %v2478_v52, %v2482_v5 }
 0x405   :  { %5842 = vmatpush1.bf16.msra.mxu0 %v8797_v9  ;;  %v9006_v63 = vcombine.high %v2470_v59, %v2474_v60  ;;  %v2334_v6 = vld [vmem:[#allocation3 + $0x2d8] sm:$0xff] }
 0x406   :  { %5843 = vmatprep.subr.bf16.mxu0 %v8790_v12  ;;  %v2338_v7 = vld [vmem:[#allocation3 + $0x2f8] sm:$0xff]  ;;  %v8877_v12 = vcombine.low %v2342_v29, %v2346_v57 }
 0x407   :  { %5885 = vmatpush1.bf16.msra.mxu1 %v8925_v58  ;;  %v2462_v9 = vld [vmem:[#allocation3 + $0x6d8] sm:$0xff]  ;;  %v8870_v14 = vcombine.high %v2334_v6, %v2338_v7 }
 0x408   :  { %5886 = vmatprep.subr.bf16.mxu1 %v8918_v13  ;;  %v2466_v58 = vld [vmem:[#allocation3 + $0x6f8] sm:$0xff]  ;;  %v9005_v13 = vcombine.low %v2470_v59, %v2474_v60 }
 0x409   :  { %5844 = vmatpush1.bf16.msra.mxu0 %v8789_v23  ;;  %v8998_v15 = vcombine.high %v2462_v9, %v2466_v58  ;;  %v2326_v21 = vld [vmem:[#allocation3 + $0x298] sm:$0xff] }
 0x40a   :  { %5845 = vmatprep.subr.bf16.mxu0 %v8782_v25  ;;  %v2330_v22 = vld [vmem:[#allocation3 + $0x2b8] sm:$0xff]  ;;  %v8869_v25 = vcombine.low %v2334_v6, %v2338_v7 }
 0x40b   :  { %5887 = vmatpush1.bf16.msra.mxu1 %v8917_v24  ;;  %v2454_v23 = vld [vmem:[#allocation3 + $0x698] sm:$0xff]  ;;  %v8862_v28 = vcombine.high %v2326_v21, %v2330_v22 }
 0x40c   :  { %5888 = vmatprep.subr.bf16.mxu1 %v8910_v27  ;;  %v2458_v24 = vld [vmem:[#allocation3 + $0x6b8] sm:$0xff]  ;;  %v8997_v27 = vcombine.low %v2462_v9, %v2466_v58 }
 0x40d   :  { %5846 = vmatpush1.bf16.msra.mxu0 %v8781_v33  ;;  %v8990_v30 = vcombine.high %v2454_v23, %v2458_v24  ;;  %v2318_v31 = vld [vmem:[#allocation3 + $0x258] sm:$0xff]  ;;  %v8989_v2 = vcombine.low %v2454_v23, %v2458_v24 }
 0x40e   :  { %5847 = vmatprep.subr.bf16.mxu0 %v8902_v35  ;;  %v2322_v32 = vld [vmem:[#allocation3 + $0x278] sm:$0xff]  ;;  %v8861_v35 = vcombine.low %v2326_v21, %v2330_v22 }
 0x40f   :  { %5889 = vmatpush1.bf16.msra.mxu1 %v8909_v34  ;;  %v2446_v33 = vld [vmem:[#allocation3 + $0x658] sm:$0xff]  ;;  %v8854_v36 = vcombine.high %v2318_v31, %v2322_v32  ;;  %v8853_v48 = vcombine.low %v2318_v31, %v2322_v32  ;;  %v6016_v31 = vrot.slane %v10633_v1, %v10562_v10 }
 0x410   :  { %5890 = vmatprep.subr.bf16.mxu1 %v9030_v0  ;;  %v2450_v34 = vld [vmem:[#allocation3 + $0x678] sm:$0xff]  ;;  %v5521_v0 = vpop.f32.mrf.mxu0 }
 0x411   :  { %5848 = vmatpush2.bf16.msra.mxu0 %v8901_v42  ;;  %v8982_v37 = vcombine.high %v2446_v33, %v2450_v34  ;;  %v2310_v42 = vld [vmem:[#allocation3 + $0x218] sm:$0xff]  ;;  %v8981_v52 = vcombine.low %v2446_v33, %v2450_v34  ;;  %v5565_v22 = vadd.f32 %v5564_v3, %v5521_v0 }
 0x412   :  { %5849 = vmatprep.subr.bf16.mxu0 %v8894_v39  ;;  %v2438_v39 = vld [vmem:[#allocation3 + $0x618] sm:$0xff]  ;;  %v5523_v49 = vpop.f32.mrf.mxu0 }
 0x413   :  { %5891 = vmatpush2.bf16.msra.mxu1 %v9029_v47  ;;  %v2314_v47 = vld [vmem:[#allocation3 + $0x238] sm:$0xff] }
 0x414   :  { %5892 = vmatprep.subr.bf16.mxu1 %v9022_v50  ;;  %v2442_v50 = vld [vmem:[#allocation3 + $0x638] sm:$0xff]  ;;  %v8846_v5 = vcombine.high %v2310_v42, %v2314_v47  ;;  %v8845_v59 = vcombine.low %v2310_v42, %v2314_v47  ;;  %v5525_v60 = vpop.f32.mrf.mxu0 }
 0x415   :  { %5850 = vmatpush2.bf16.msra.mxu0 %v8893_v54  ;;  %v5566_v54 = vpop.f32.mrf.mxu1  ;;  %v2686_v29 = vld [vmem:[#allocation3 + $0xdd8] sm:$0xff] }
 0x416   :  { %5851 = vmatprep.subr.bf16.mxu0 %v8886_v44  ;;  %v2558_v44 = vld [vmem:[#allocation3 + $0x9d8] sm:$0xff]  ;;  %v5567_v33 = vadd.f32 %v5566_v54, %v5523_v49 }
 0x417   :  { %5893 = vmatpush2.bf16.msra.mxu1 %v9021_v43  ;;  %v8974_v43 = vcombine.high %v2438_v39, %v2442_v50  ;;  %v2690_v57 = vld [vmem:[#allocation3 + $0xdf8] sm:$0xff] }
 0x418   :  { %5894 = vmatprep.subr.bf16.mxu1 %v9014_v55  ;;  %v2562_v55 = vld [vmem:[#allocation3 + $0x9f8] sm:$0xff] }
 0x419   :  { %5852 = vmatpush2.bf16.msra.mxu0 %v8885_v61  ;;  %v8973_v61 = vcombine.low %v2438_v39, %v2442_v50  ;;  %v2550_v6 = vld [vmem:[#allocation3 + $0x998] sm:$0xff] }
 0x41a   :  { %5853 = vmatprep.subr.bf16.mxu0 %v8878_v51  ;;  %v5568_v51 = vpop.f32.mrf.mxu1  ;;  %v2554_v7 = vld [vmem:[#allocation3 + $0x9b8] sm:$0xff] }
 0x41b   :  { %5895 = vmatpush2.bf16.msra.mxu1 %v9013_v62  ;;  %v9094_v62 = vcombine.high %v2558_v44, %v2562_v55  ;;  %v2678_v9 = vld [vmem:[#allocation3 + $0xd98] sm:$0xff]  ;;  %v9085_v32 = vcombine.low %v2550_v6, %v2554_v7  ;;  %v5569_v42 = vadd.f32 %v5568_v51, %v5525_v60 }
 0x41c   :  { %5896 = vmatprep.subr.bf16.mxu1 %v9006_v63  ;;  %v9222_v63 = vcombine.high %v2686_v29, %v2690_v57  ;;  %v2682_v58 = vld [vmem:[#allocation3 + $0xdb8] sm:$0xff]  ;;  %v5570_v23 = vpop.f32.mrf.mxu1 }
 0x41d   :  { %5854 = vmatpush2.bf16.msra.mxu0 %v8877_v12  ;;  %v9093_v12 = vcombine.low %v2558_v44, %v2562_v55  ;;  %v10661_v21 = vld [vmem:[#allocation3 + $0x958] sm:$0xff]  ;;  %v9214_v24 = vcombine.high %v2678_v9, %v2682_v58  ;;  %v9213_v0 = vcombine.low %v2678_v9, %v2682_v58 }
 0x41e   :  { %5855 = vmatprep.subr.bf16.mxu0 %v8870_v14  ;;  %v9221_v14 = vcombine.low %v2686_v29, %v2690_v57  ;;  %v2534_v50 = vld [vmem:[#allocation3 + $0x918] sm:$0xff]  ;;  %v6078_v57 = vrot.slane %v10640_v56, %v10565_v11 }
 0x41f   :  { %5897 = vmatpush2.bf16.msra.mxu1 %v9005_v13  ;;  %v5527_v13 = vpop.f32.mrf.mxu0  ;;  %v2654_v9 = vld [vmem:[#allocation3 + $0xcd8] sm:$0xff] }
 0x420   :  { %5898 = vmatprep.subr.bf16.mxu1 %v8998_v15  ;;  %v9086_v15 = vcombine.high %v2550_v6, %v2554_v7  ;;  %v5571_v54 = vadd.f32 %v5570_v23, %v5527_v13  ;;  %v2530_v6 = vld [vmem:[#allocation3 + $0x8f8] sm:$0xff] }
 0x421   :  { %5856 = vmatpush2.bf16.msra.mxu0 %v8869_v25  ;;  %v2546_v25 = vld [vmem:[#allocation3 + $0x978] sm:$0xff] }
 0x422   :  { %5857 = vmatprep.subr.bf16.mxu0 %v8862_v28  ;;  %v2674_v28 = vld [vmem:[#allocation3 + $0xd78] sm:$0xff]  ;;  %v9078_v3 = vcombine.high %v10661_v21, %v2546_v25 }
 0x423   :  { %5899 = vmatpush2.bf16.msra.mxu1 %v8997_v27  ;;  %v2670_v27 = vld [vmem:[#allocation3 + $0xd58] sm:$0xff] }
 0x424   :  { %5900 = vmatprep.subr.bf16.mxu1 %v8990_v30  ;;  %v2658_v58 = vld [vmem:[#allocation3 + $0xcf8] sm:$0xff] }
 0x425   :  { %5858 = vmatpush2.bf16.msra.mxu0 %v8861_v35 }
 0x426   :  { %5859 = vmatprep.subr.bf16.mxu0 %v8854_v36  ;;  %v6020_v36 = vrot.slane %v10633_v1, %v10565_v11  ;;  %v2662_v1 = vld [vmem:[#allocation3 + $0xd18] sm:$0xff] }
 0x427   :  { %5901 = vmatpush2.bf16.msra.mxu1 %v8989_v2 }
 0x428   :  { %5902 = vmatprep.subr.bf16.mxu1 %v8982_v37  ;;  %v9206_v37 = vcombine.high %v2670_v27, %v2674_v28 }
 0x429   :  { %5860 = vmatpush2.bf16.msra.mxu0 %v8853_v48  ;;  %v2538_v48 = vld [vmem:[#allocation3 + $0x938] sm:$0xff] }
 0x42a   :  { %5861 = vmatprep.subr.bf16.mxu0 %v8846_v5  ;;  %v2666_v5 = vld [vmem:[#allocation3 + $0xd38] sm:$0xff]  ;;  %v9070_v60 = vcombine.high %v2534_v50, %v2538_v48 }
 0x42b   :  { %5903 = vmatpush2.bf16.msra.mxu1 %v8981_v52  ;;  %v9077_v52 = vcombine.low %v10661_v21, %v2546_v25  ;;  %v9190_v25 = vcombine.high %v2654_v9, %v2658_v58 }
 0x42c   :  { %5904 = vmatprep.subr.bf16.mxu1 %v8974_v43 }
 0x42d   :  { %5862 = vmatpush2.bf16.msra.mxu0 %v8845_v59  ;;  %v9205_v59 = vcombine.low %v2670_v27, %v2674_v28  ;;  %v2518_v27 = vld [vmem:[#allocation3 + $0x898] sm:$0xff] }
 0x42e   :  { %5917 = vmatprep.subr.bf16.mxu0 %v9094_v62  ;;  %v2522_v28 = vld [vmem:[#allocation3 + $0x8b8] sm:$0xff] }
 0x42f   :  { %5905 = vmatpush2.bf16.msra.mxu1 %v8973_v61 }
 0x430   :  { %5960 = vmatprep.subr.bf16.mxu1 %v9222_v63  ;;  %v5607_v30 = vpop.f32.mrf.mxu0  ;;  %5864 = vmatmul.mubr.bf16.vlgmr.msra.gmra.mxu0 %v10557_v4  ;;  %v9198_v63 = vcombine.high %v2662_v1, %v2666_v5 }
 0x431   :  { %v5608_v34 = vadd.f32 %v5607_v30, %v5565_v22  ;;  %5918 = vmatpush1.bf16.msra.mxu0 %v9093_v12  ;;  %5949 = vmatprep.mubr.bf16.mxu0 %v10595_v18  ;;  %v2646_v30 = vld [vmem:[#allocation3 + $0xc98] sm:$0xff] }
 0x432   :  { %v5650_v35 = vpop.f32.mrf.mxu1  ;;  %5907 = vmatmul.mubr.bf16.vlgmr.msra.gmra.mxu1 %v10575_v41  ;;  %v5609_v2 = vpop.f32.mrf.mxu0  ;;  %5919 = vmatprep.subr.bf16.mxu0 %v9086_v15  ;;  %v6074_v41 = vrot.slane %v10640_v56, %v10562_v10  ;;  %v9069_v56 = vcombine.low %v2534_v50, %v2538_v48  ;;  %v9197_v15 = vcombine.low %v2662_v1, %v2666_v5  ;;  %v2642_v50 = vld [vmem:[#allocation3 + $0xc78] sm:$0xff] }
 0x433   :  { %5961 = vmatpush1.bf16.msra.mxu1 %v9221_v14  ;;  %v5651_v47 = vadd.f32 %v5650_v35, %v5608_v34  ;;  %v5610_v4 = vadd.f32 %v5609_v2, %v5567_v33  ;;  %5992 = vmatprep.mubr.bf16.mxu1 %v10613_v26  ;;  %v2526_v26 = vld [vmem:[#allocation3 + $0x8d8] sm:$0xff]  ;;  %v9054_v2 = vcombine.high %v2518_v27, %v2522_v28 }
 0x434   :  { %v5652_v39 = vpop.f32.mrf.mxu1  ;;  %5962 = vmatprep.subr.bf16.mxu1 %v9214_v24  ;;  %v5611_v49 = vpop.f32.mrf.mxu0  ;;  %v9062_v21 = vcombine.high %v2526_v26, %v2530_v6  ;;  %v2502_v5 = vld [vmem:[#allocation3 + $0x818] sm:$0xff] }
 0x435   :  { %v6047_v43 = vmul.f32 %v6016_v31, %v5651_v47  ;;  %v5653_v44 = vadd.f32 %v5652_v39, %v5610_v4  ;;  %v5612_v55 = vadd.f32 %v5611_v49, %v5569_v42  ;;  %5920 = vmatpush1.bf16.msra.mxu0 %v9085_v32  ;;  %v2650_v32 = vld [vmem:[#allocation3 + $0xcb8] sm:$0xff] }
 0x436   :  { %v5654_v29 = vpop.f32.mrf.mxu1  ;;  %v5613_v18 = vpop.f32.mrf.mxu0  ;;  %5921 = vmatprep.subr.bf16.mxu0 %v9078_v3  ;;  %v2510_v47 = vld [vmem:[#allocation3 + $0x858] sm:$0xff]  ;;  %v9181_v49 = vcombine.low %v2646_v30, %v2650_v32 }
 0x437   :  { %5963 = vmatpush1.bf16.msra.mxu1 %v9213_v0  ;;  %v6048_v61 = vmul.f32 %v6020_v36, %v5653_v44  ;;  %v5655_v62 = vadd.f32 %v5654_v29, %v5612_v55  ;;  %v5614_v51 = vadd.f32 %v5613_v18, %v5571_v54  ;;  %v6105_v12 = vadd.f32 %v6074_v41, %v6047_v43  ;;  %v2514_v4 = vld [vmem:[#allocation3 + $0x878] sm:$0xff] }
 0x438   :  { %5964 = vmatprep.subr.bf16.mxu1 %v9206_v37  ;;  %v5656_v7 = vpop.f32.mrf.mxu1  ;;  %v9189_v0 = vcombine.low %v2654_v9, %v2658_v58  ;;  %v2638_v39 = vld [vmem:[#allocation3 + $0xc58] sm:$0xff]  ;;  %v9045_v55 = vcombine.low %v2510_v47, %v2514_v4 }
 0x439   :  { %v6055_v13 = vmul.f32 %v6016_v31, %v5655_v62  ;;  %v5657_v14 = vadd.f32 %v5656_v7, %v5614_v51  ;;  %5922 = vmatpush1.bf16.msra.mxu0 %v9077_v52  ;;  %v6106_v22 = vadd.f32 %v6078_v57, %v6048_v61  ;;  %v6121_v33 = vmax.f32 %v6105_v12, 0.0  ;;  %v2506_v54 = vld [vmem:[#allocation3 + $0x838] sm:$0xff] }
 0x43a   :  { %5923 = vmatprep.subr.bf16.mxu0 %v9070_v60  ;;  %v9061_v31 = vcombine.low %v2526_v26, %v2530_v6  ;;  %v9046_v52 = vcombine.high %v2510_v47, %v2514_v4  ;;  %v9174_v1 = vcombine.high %v2638_v39, %v2642_v50  ;;  %v2630_v43 = vld [vmem:[#allocation3 + $0xc18] sm:$0xff]  ;;  %v9173_v29 = vcombine.low %v2638_v39, %v2642_v50 }
 0x43b   :  { %5965 = vmatpush1.bf16.msra.mxu1 %v9205_v59  ;;  %v6113_v23 = vadd.f32 %v6074_v41, %v6055_v13  ;;  %v6056_v24 = vmul.f32 %v6020_v36, %v5657_v14  ;;  %v6122_v3 = vmax.f32 %v6106_v22, 0.0  ;;  %v9182_v36 = vcombine.high %v2646_v30, %v2650_v32  ;;  %v2634_v44 = vld [vmem:[#allocation3 + $0xc38] sm:$0xff] }
 0x43c   :  { %5966 = vmatprep.subr.bf16.mxu1 %v9198_v63  ;;  %v9053_v41 = vcombine.low %v2518_v27, %v2522_v28  ;;  %v9166_v18 = vcombine.high %v2630_v43, %v2634_v44  ;;  %v2622_v59 = vld [vmem:[#allocation3 + $0xbd8] sm:$0xff]  ;;  %v9037_v51 = vcombine.low %v2502_v5, %v2506_v54  ;;  %v9165_v63 = vcombine.low %v2630_v43, %v2634_v44 }
 0x43d   :  { %v6129_v34 = vmax.f32 %v6113_v23, 0.0  ;;  %v6114_v35 = vadd.f32 %v6078_v57, %v6056_v24  ;;  %5924 = vmatpush1.bf16.msra.mxu0 %v9069_v56  ;;  %v9038_v57 = vcombine.high %v2502_v5, %v2506_v54  ;;  %v2626_v60 = vld [vmem:[#allocation3 + $0xbf8] sm:$0xff] }
 0x43e   :  { %5925 = vmatprep.subr.bf16.mxu0 %v9062_v21  ;;  %v2750_v61 = vld [vmem:[#allocation3 + $0xfd8] sm:$0xff]  ;;  %v9158_v26 = vcombine.high %v2622_v59, %v2626_v60  ;;  %v9157_v13 = vcombine.low %v2622_v59, %v2626_v60 }
 0x43f   :  { %5967 = vmatpush1.bf16.msra.mxu1 %v9197_v15  ;;  %v10677_v37 = vpack.c.bf16 %v6129_v34, %v6121_v33  ;;  %v6130_v42 = vmax.f32 %v6114_v35, 0.0  ;;  %v2754_v62 = vld [vmem:[#allocation3 + $0xff8] sm:$0xff] }
 0x440   :  { %5968 = vmatprep.subr.bf16.mxu1 %v9190_v25  ;;  %v9286_v6 = vcombine.high %v2750_v61, %v2754_v62  ;;  %v2614_v7 = vld [vmem:[#allocation3 + $0xb98] sm:$0xff]  ;;  %v9285_v14 = vcombine.low %v2750_v61, %v2754_v62 }
 0x441   :  { %v10679_v48 = vpack.c.bf16 %v6130_v42, %v6122_v3  ;;  %5926 = vmatpush1.bf16.msra.mxu0 %v9061_v31  ;;  %v2618_v9 = vld [vmem:[#allocation3 + $0xbb8] sm:$0xff] }
 0x442   :  { %5927 = vmatprep.subr.bf16.mxu0 %v9054_v2  ;;  %v2742_v58 = vld [vmem:[#allocation3 + $0xf98] sm:$0xff]  ;;  %v9150_v56 = vcombine.high %v2614_v7, %v2618_v9  ;;  %v9149_v25 = vcombine.low %v2614_v7, %v2618_v9 }
 0x443   :  { %5969 = vmatpush1.bf16.msra.mxu1 %v9189_v0  ;;  %v2746_v12 = vld [vmem:[#allocation3 + $0xfb8] sm:$0xff] }
 0x444   :  { %5970 = vmatprep.subr.bf16.mxu1 %v9182_v36  ;;  %v9278_v15 = vcombine.high %v2742_v58, %v2746_v12  ;;  %v2606_v21 = vld [vmem:[#allocation3 + $0xb58] sm:$0xff]  ;;  %v9277_v27 = vcombine.low %v2742_v58, %v2746_v12 }
 0x445   :  { %5928 = vmatpush1.bf16.msra.mxu0 %v9053_v41  ;;  %v2610_v22 = vld [vmem:[#allocation3 + $0xb78] sm:$0xff] }
 0x446   :  { %5929 = vmatprep.subr.bf16.mxu0 %v9046_v52  ;;  %v2734_v23 = vld [vmem:[#allocation3 + $0xf58] sm:$0xff]  ;;  %v9142_v28 = vcombine.high %v2606_v21, %v2610_v22  ;;  %v9141_v31 = vcombine.low %v2606_v21, %v2610_v22 }
 0x447   :  { %5971 = vmatpush1.bf16.msra.mxu1 %v9181_v49  ;;  %v2738_v24 = vld [vmem:[#allocation3 + $0xf78] sm:$0xff] }
 0x448   :  { %5972 = vmatprep.subr.bf16.mxu1 %v9174_v1  ;;  %v9270_v30 = vcombine.high %v2734_v23, %v2738_v24  ;;  %v2598_v32 = vld [vmem:[#allocation3 + $0xb18] sm:$0xff]  ;;  %v9269_v0 = vcombine.low %v2734_v23, %v2738_v24 }
 0x449   :  { %5930 = vmatpush1.bf16.msra.mxu0 %v9045_v55  ;;  %v2602_v33 = vld [vmem:[#allocation3 + $0xb38] sm:$0xff] }
 0x44a   :  { %5931 = vmatprep.subr.bf16.mxu0 %v9038_v57  ;;  %v2726_v34 = vld [vmem:[#allocation3 + $0xf18] sm:$0xff]  ;;  %v9134_v2 = vcombine.high %v2598_v32, %v2602_v33  ;;  %v9133_v39 = vcombine.low %v2598_v32, %v2602_v33 }
 0x44b   :  { %5973 = vmatpush1.bf16.msra.mxu1 %v9173_v29  ;;  %v2730_v35 = vld [vmem:[#allocation3 + $0xf38] sm:$0xff] }
 0x44c   :  { %5974 = vmatprep.subr.bf16.mxu1 %v9166_v18  ;;  %v9262_v3 = vcombine.high %v2726_v34, %v2730_v35  ;;  %v2590_v42 = vld [vmem:[#allocation3 + $0xad8] sm:$0xff]  ;;  %v9261_v50 = vcombine.low %v2726_v34, %v2730_v35 }
 0x44d   :  { %5932 = vmatpush1.bf16.msra.mxu0 %v9037_v51  ;;  %v2594_v36 = vld [vmem:[#allocation3 + $0xaf8] sm:$0xff] }
 0x44e   :  { %5933 = vmatprep.subr.bf16.mxu0 %v9158_v26  ;;  %v2718_v47 = vld [vmem:[#allocation3 + $0xed8] sm:$0xff]  ;;  %v9126_v41 = vcombine.high %v2590_v42, %v2594_v36  ;;  %v9125_v43 = vcombine.low %v2590_v42, %v2594_v36 }
 0x44f   :  { %5975 = vmatpush1.bf16.msra.mxu1 %v9165_v63  ;;  %v2722_v4 = vld [vmem:[#allocation3 + $0xef8] sm:$0xff] }
 0x450   :  { %5976 = vmatprep.subr.bf16.mxu1 %v9286_v6  ;;  %v9254_v49 = vcombine.high %v2718_v47, %v2722_v4  ;;  %v2582_v52 = vld [vmem:[#allocation3 + $0xa98] sm:$0xff]  ;;  %v9253_v44 = vcombine.low %v2718_v47, %v2722_v4 }
 0x451   :  { %5934 = vmatpush2.bf16.msra.mxu0 %v9157_v13  ;;  %v2586_v1 = vld [vmem:[#allocation3 + $0xab8] sm:$0xff] }
 0x452   :  { %5935 = vmatprep.subr.bf16.mxu0 %v9150_v56  ;;  %v2710_v5 = vld [vmem:[#allocation3 + $0xe98] sm:$0xff]  ;;  %v9118_v55 = vcombine.high %v2582_v52, %v2586_v1  ;;  %v9117_v61 = vcombine.low %v2582_v52, %v2586_v1 }
 0x453   :  { %5977 = vmatpush2.bf16.msra.mxu1 %v9285_v14  ;;  %v2714_v54 = vld [vmem:[#allocation3 + $0xeb8] sm:$0xff] }
 0x454   :  { %5978 = vmatprep.subr.bf16.mxu1 %v9278_v15  ;;  %v9246_v29 = vcombine.high %v2710_v5, %v2714_v54  ;;  %v2574_v57 = vld [vmem:[#allocation3 + $0xa58] sm:$0xff]  ;;  %v9245_v62 = vcombine.low %v2710_v5, %v2714_v54 }
 0x455   :  { %5936 = vmatpush2.bf16.msra.mxu0 %v9149_v25  ;;  %v2578_v18 = vld [vmem:[#allocation3 + $0xa78] sm:$0xff] }
 0x456   :  { %5937 = vmatprep.subr.bf16.mxu0 %v9142_v28  ;;  %v2702_v59 = vld [vmem:[#allocation3 + $0xe58] sm:$0xff]  ;;  %v9110_v51 = vcombine.high %v2574_v57, %v2578_v18  ;;  %v9109_v58 = vcombine.low %v2574_v57, %v2578_v18 }
 0x457   :  { %5979 = vmatpush2.bf16.msra.mxu1 %v9277_v27  ;;  %v2706_v60 = vld [vmem:[#allocation3 + $0xe78] sm:$0xff] }
 0x458   :  { %5980 = vmatprep.subr.bf16.mxu1 %v9270_v30  ;;  %v9238_v63 = vcombine.high %v2702_v59, %v2706_v60  ;;  %v2566_v26 = vld [vmem:[#allocation3 + $0xa18] sm:$0xff]  ;;  %v9237_v12 = vcombine.low %v2702_v59, %v2706_v60 }
 0x459   :  { %5938 = vmatpush2.bf16.msra.mxu0 %v9141_v31  ;;  %v2570_v6 = vld [vmem:[#allocation3 + $0xa38] sm:$0xff] }
 0x45a   :  { %5939 = vmatprep.subr.bf16.mxu0 %v9134_v2  ;;  %v2694_v7 = vld [vmem:[#allocation3 + $0xe18] sm:$0xff]  ;;  %v9102_v13 = vcombine.high %v2566_v26, %v2570_v6  ;;  %v9101_v56 = vcombine.low %v2566_v26, %v2570_v6 }
 0x45b   :  { %5981 = vmatpush2.bf16.msra.mxu1 %v9269_v0  ;;  %v2698_v9 = vld [vmem:[#allocation3 + $0xe38] sm:$0xff]  ;;  %v9652_v0 = vld [vmem:[#allocation13] sm:$0xff] }
 0x45c   :  { %5982 = vmatprep.subr.bf16.mxu1 %v9262_v3  ;;  %v9230_v14 = vcombine.high %v2694_v7, %v2698_v9  ;;  %v9229_v15 = vcombine.low %v2694_v7, %v2698_v9  ;;  %v6024_v2 = vrot.slane %v9652_v0, %v10580_v45  ;;  %v6028_v47 = vrot.slane %v9652_v0, %v10583_v46  ;;  %v9653_v4 = vld [vmem:[#allocation15] sm:$0xff] }
 0x45d   :  { %5940 = vmatpush2.bf16.msra.mxu0 %v9133_v39  ;;  %v6082_v39 = vrot.slane %v9653_v4, %v10580_v45 }
 0x45e   :  { %5941 = vmatprep.subr.bf16.mxu0 %v9126_v41 }
 0x45f   :  { %5983 = vmatpush2.bf16.msra.mxu1 %v9261_v50 }
 0x460   :  { %5984 = vmatprep.subr.bf16.mxu1 %v9254_v49 }
 0x461   :  { %5942 = vmatpush2.bf16.msra.mxu0 %v9125_v43 }
 0x462   :  { %5943 = vmatprep.subr.bf16.mxu0 %v9118_v55 }
 0x463   :  { %5985 = vmatpush2.bf16.msra.mxu1 %v9253_v44  ;;  %v6086_v44 = vrot.slane %v9653_v4, %v10583_v46 }
 0x464   :  { %5986 = vmatprep.subr.bf16.mxu1 %v9246_v29 }
 0x465   :  { %5944 = vmatpush2.bf16.msra.mxu0 %v9117_v61 }
 0x466   :  { %5945 = vmatprep.subr.bf16.mxu0 %v9110_v51 }
 0x467   :  { %5987 = vmatpush2.bf16.msra.mxu1 %v9245_v62 }
 0x468   :  { %5988 = vmatprep.subr.bf16.mxu1 %v9238_v63 }
 0x469   :  { %5946 = vmatpush2.bf16.msra.mxu0 %v9109_v58 }
 0x46a   :  { %5947 = vmatprep.subr.bf16.mxu0 %v9102_v13 }
 0x46b   :  { %5989 = vmatpush2.bf16.msra.mxu1 %v9237_v12 }
 0x46c   :  { %5990 = vmatprep.subr.bf16.mxu1 %v9230_v14 }
 0x46d   :  { %5948 = vmatpush2.bf16.msra.mxu0 %v9101_v56 }
 0x46f   :  { %5991 = vmatpush2.bf16.msra.mxu1 %v9229_v15 }
 0x470   :  { %5950 = vmatmul.mubr.bf16.vlgmr.msra.gmra.mxu0 %v10593_v16  ;;  %v5693_v21 = vpop.f32.mrf.mxu0 }
 0x472   :  { %5993 = vmatmul.mubr.bf16.vlgmr.msra.gmra.mxu1 %v10611_v53  ;;  %v5736_v22 = vpop.f32.mrf.mxu1  ;;  %v5695_v23 = vpop.f32.mrf.mxu0 }
 0x473   :  { %v5737_v30 = vadd.f32 %v5736_v22, %v5693_v21 }
 0x474   :  { %v5738_v24 = vpop.f32.mrf.mxu1  ;;  %v5697_v25 = vpop.f32.mrf.mxu0 }
 0x475   :  { %v5739_v34 = vadd.f32 %v5738_v24, %v5695_v23 }
 0x476   :  { %v5740_v27 = vpop.f32.mrf.mxu1  ;;  %v5699_v28 = vpop.f32.mrf.mxu0 }
 0x477   :  { %v5741_v16 = vadd.f32 %v5740_v27, %v5697_v25 }
 0x478   :  { %v5742_v32 = vpop.f32.mrf.mxu1 }
 0x479   :  { %v5743_v41 = vadd.f32 %v5742_v32, %v5699_v28 }
 0x4b0   :  { %v5779_v33 = vpop.f32.mrf.mxu0 }
 0x4b1   :  { %v5780_v35 = vadd.f32 %v5779_v33, %v5737_v30  ;;  %v6032_v30 = vrot.slane %v9652_v0, %v10598_v19 }
 0x4b2   :  { %v5822_v31 = vpop.f32.mrf.mxu1  ;;  %v5781_v3 = vpop.f32.mrf.mxu0 }
 0x4b3   :  { %v5823_v42 = vadd.f32 %v5822_v31, %v5780_v35  ;;  %v5782_v53 = vadd.f32 %v5781_v3, %v5739_v34  ;;  %v6090_v3 = vrot.slane %v9653_v4, %v10598_v19 }
 0x4b4   :  { %v5824_v36 = vpop.f32.mrf.mxu1  ;;  %v5783_v50 = vpop.f32.mrf.mxu0 }
 0x4b5   :  { %v6049_v49 = vmul.f32 %v6024_v2, %v5823_v42  ;;  %v5825_v52 = vadd.f32 %v5824_v36, %v5782_v53  ;;  %v5784_v1 = vadd.f32 %v5783_v50, %v5741_v16 }
 0x4b6   :  { %v5826_v5 = vpop.f32.mrf.mxu1  ;;  %v5785_v54 = vpop.f32.mrf.mxu0 }
 0x4b7   :  { %v6050_v43 = vmul.f32 %v6028_v47, %v5825_v52  ;;  %v5827_v55 = vadd.f32 %v5826_v5, %v5784_v1  ;;  %v5786_v29 = vadd.f32 %v5785_v54, %v5743_v41  ;;  %v6107_v18 = vadd.f32 %v6082_v39, %v6049_v49 }
 0x4b8   :  { %v5828_v57 = vpop.f32.mrf.mxu1  ;;  %v6094_v49 = vrot.slane %v9653_v4, %v10601_v20 }
 0x4b9   :  { %v6057_v59 = vmul.f32 %v6024_v2, %v5827_v55  ;;  %v5829_v60 = vadd.f32 %v5828_v57, %v5786_v29  ;;  %v6108_v61 = vadd.f32 %v6086_v44, %v6050_v43  ;;  %v6123_v45 = vmax.f32 %v6107_v18, 0.0 }
 0x4ba   :  { %v6036_v2 = vrot.slane %v9652_v0, %v10601_v20 }
 0x4bb   :  { %v6115_v62 = vadd.f32 %v6082_v39, %v6057_v59  ;;  %v6058_v51 = vmul.f32 %v6028_v47, %v5829_v60  ;;  %v6124_v6 = vmax.f32 %v6108_v61, 0.0 }
 0x4bd   :  { %v6131_v63 = vmax.f32 %v6115_v62, 0.0  ;;  %v6116_v26 = vadd.f32 %v6086_v44, %v6058_v51 }
 0x4bf   :  { %v10687_v7 = vpack.c.bf16 %v6131_v63, %v6123_v45  ;;  %v6132_v9 = vmax.f32 %v6116_v26, 0.0 }
 0x4c1   :  { %v10689_v58 = vpack.c.bf16 %v6132_v9, %v6124_v6 }
 0x4f0   :  { %v5865_v12 = vpop.f32.mrf.mxu0 }
 0x4f2   :  { %v5908_v46 = vpop.f32.mrf.mxu1  ;;  %v5867_v13 = vpop.f32.mrf.mxu0 }
 0x4f3   :  { %v5909_v22 = vadd.f32 %v5908_v46, %v5865_v12 }
 0x4f4   :  { %v5910_v14 = vpop.f32.mrf.mxu1  ;;  %v5869_v56 = vpop.f32.mrf.mxu0 }
 0x4f5   :  { %v5911_v25 = vadd.f32 %v5910_v14, %v5867_v13 }
 0x4f6   :  { %v5912_v15 = vpop.f32.mrf.mxu1  ;;  %v5871_v21 = vpop.f32.mrf.mxu0 }
 0x4f7   :  { %v5913_v33 = vadd.f32 %v5912_v15, %v5869_v56 }
 0x4f8   :  { %v5914_v23 = vpop.f32.mrf.mxu1 }
 0x4f9   :  { %v5915_v42 = vadd.f32 %v5914_v23, %v5871_v21 }
 0x530   :  { %v5951_v24 = vpop.f32.mrf.mxu0 }
 0x531   :  { %v5952_v27 = vadd.f32 %v5951_v24, %v5909_v22 }
 0x532   :  { %v5994_v28 = vpop.f32.mrf.mxu1  ;;  %v5953_v32 = vpop.f32.mrf.mxu0 }
 0x533   :  { %v5995_v34 = vadd.f32 %v5994_v28, %v5952_v27  ;;  %v5954_v35 = vadd.f32 %v5953_v32, %v5911_v25 }
 0x534   :  { %v5996_v31 = vpop.f32.mrf.mxu1  ;;  %v5955_v16 = vpop.f32.mrf.mxu0 }
 0x535   :  { %v6051_v53 = vmul.f32 %v6032_v30, %v5995_v34  ;;  %v5997_v36 = vadd.f32 %v5996_v31, %v5954_v35  ;;  %v5956_v47 = vadd.f32 %v5955_v16, %v5913_v33 }
 0x536   :  { %v5998_v39 = vpop.f32.mrf.mxu1  ;;  %v5957_v50 = vpop.f32.mrf.mxu0 }
 0x537   :  { %v6052_v41 = vmul.f32 %v6036_v2, %v5997_v36  ;;  %v5999_v52 = vadd.f32 %v5998_v39, %v5956_v47  ;;  %v5958_v1 = vadd.f32 %v5957_v50, %v5915_v42  ;;  %v6109_v54 = vadd.f32 %v6090_v3, %v6051_v53 }
 0x538   :  { %v6000_v5 = vpop.f32.mrf.mxu1 }
 0x539   :  { %v6059_v43 = vmul.f32 %v6032_v30, %v5999_v52  ;;  %v6001_v44 = vadd.f32 %v6000_v5, %v5958_v1  ;;  %v6110_v55 = vadd.f32 %v6094_v49, %v6052_v41  ;;  %v6125_v19 = vmax.f32 %v6109_v54, 0.0 }
 0x53b   :  { %v6117_v0 = vadd.f32 %v6090_v3, %v6059_v43  ;;  %v6060_v29 = vmul.f32 %v6036_v2, %v6001_v44  ;;  %v6126_v59 = vmax.f32 %v6110_v55, 0.0 }
 0x53d   :  { %v6133_v57 = vmax.f32 %v6117_v0, 0.0  ;;  %v6118_v18 = vadd.f32 %v6094_v49, %v6060_v29 }
 0x53f   :  { %v10695_v60 = vpack.c.bf16 %v6133_v57, %v6125_v19  ;;  %v6134_v61 = vmax.f32 %v6118_v18, 0.0 }
 0x541   :  { %v10697_v62 = vpack.c.bf16 %v6134_v61, %v6126_v59 }
 0x542   :  { %10364 = dma.done.wait [#allocation6 + $0x2], 32768 }
 0x543   :  { %10365 = vsyncadd [#allocation6 + $0x2], 4294934528  ;;  %7714 = vmatprep.mubr.bf16.mxu0 %v10655_v17  ;;  %7757 = vmatprep.mubr.bf16.mxu1 %v10679_v48  ;;  %v9654_v20 = vld [vmem:[#allocation4 + $0xe4] ss:$16 sps:$4 sm:$0xff]   ;;  %v9658_v51 = vld [vmem:[#allocation4 + $0xe0] ss:$16 sps:$4 sm:$0xff]  }
 0x544   :  { %v9656_v4 = vld [vmem:[#allocation4 + $0x2e4] ss:$16 sps:$4 sm:$0xff]   ;;  %7682 = vmatprep.subr.bf16.mxu0 %v9654_v20  ;;  %v9659_v45 = vld [vmem:[#allocation4 + $0x2e0] ss:$16 sps:$4 sm:$0xff]  }
 0x545   :  { %7725 = vmatprep.subr.bf16.mxu1 %v9656_v4  ;;  %v9660_v63 = vld [vmem:[#allocation4 + $0xc4] ss:$16 sps:$4 sm:$0xff]   ;;  %7683 = vmatpush1.bf16.msra.mxu0 %v9658_v51  ;;  %v9664_v6 = vld [vmem:[#allocation4 + $0xc0] ss:$16 sps:$4 sm:$0xff]  }
 0x546   :  { %7726 = vmatpush1.bf16.msra.mxu1 %v9659_v45  ;;  %v9662_v26 = vld [vmem:[#allocation4 + $0x2c4] ss:$16 sps:$4 sm:$0xff]   ;;  %7684 = vmatprep.subr.bf16.mxu0 %v9660_v63  ;;  %v9665_v9 = vld [vmem:[#allocation4 + $0x2c0] ss:$16 sps:$4 sm:$0xff]  }
 0x547   :  { %7727 = vmatprep.subr.bf16.mxu1 %v9662_v26  ;;  %v9666_v12 = vld [vmem:[#allocation4 + $0xa4] ss:$16 sps:$4 sm:$0xff]   ;;  %v9670_v13 = vld [vmem:[#allocation4 + $0xa0] ss:$16 sps:$4 sm:$0xff]  }
 0x548   :  { %v9668_v46 = vld [vmem:[#allocation4 + $0x2a4] ss:$16 sps:$4 sm:$0xff]   ;;  %v9671_v14 = vld [vmem:[#allocation4 + $0x2a0] ss:$16 sps:$4 sm:$0xff]  }
 0x549   :  { %7685 = vmatpush1.bf16.msra.mxu0 %v9664_v6  ;;  %v9672_v56 = vld [vmem:[#allocation4 + $0x84] ss:$16 sps:$4 sm:$0xff]   ;;  %v9676_v21 = vld [vmem:[#allocation4 + $0x80] ss:$16 sps:$4 sm:$0xff]  }
 0x54a   :  { %7728 = vmatpush1.bf16.msra.mxu1 %v9665_v9  ;;  %7686 = vmatprep.subr.bf16.mxu0 %v9666_v12  ;;  %v9674_v15 = vld [vmem:[#allocation4 + $0x284] ss:$16 sps:$4 sm:$0xff]   ;;  %v9677_v22 = vld [vmem:[#allocation4 + $0x280] ss:$16 sps:$4 sm:$0xff]  }
 0x54b   :  { %7729 = vmatprep.subr.bf16.mxu1 %v9668_v46  ;;  %v9678_v23 = vld [vmem:[#allocation4 + $0x64] ss:$16 sps:$4 sm:$0xff]   ;;  %v9682_v25 = vld [vmem:[#allocation4 + $0x60] ss:$16 sps:$4 sm:$0xff]  }
 0x54c   :  { %v9680_v24 = vld [vmem:[#allocation4 + $0x264] ss:$16 sps:$4 sm:$0xff]   ;;  %v9683_v27 = vld [vmem:[#allocation4 + $0x260] ss:$16 sps:$4 sm:$0xff]  }
 0x54d   :  { %7687 = vmatpush1.bf16.msra.mxu0 %v9670_v13  ;;  %v9684_v28 = vld [vmem:[#allocation4 + $0x44] ss:$16 sps:$4 sm:$0xff]   ;;  %v9688_v32 = vld [vmem:[#allocation4 + $0x40] ss:$16 sps:$4 sm:$0xff]  }
 0x54e   :  { %7730 = vmatpush1.bf16.msra.mxu1 %v9671_v14  ;;  %7688 = vmatprep.subr.bf16.mxu0 %v9672_v56  ;;  %v9686_v30 = vld [vmem:[#allocation4 + $0x244] ss:$16 sps:$4 sm:$0xff]   ;;  %v9689_v33 = vld [vmem:[#allocation4 + $0x240] ss:$16 sps:$4 sm:$0xff]  }
 0x54f   :  { %7731 = vmatprep.subr.bf16.mxu1 %v9674_v15  ;;  %v9690_v34 = vld [vmem:[#allocation4 + $0x24] ss:$16 sps:$4 sm:$0xff]   ;;  %v9694_v31 = vld [vmem:[#allocation4 + $0x20] ss:$16 sps:$4 sm:$0xff]  }
 0x550   :  { %v9692_v35 = vld [vmem:[#allocation4 + $0x224] ss:$16 sps:$4 sm:$0xff]   ;;  %v9695_v2 = vld [vmem:[#allocation4 + $0x220] ss:$16 sps:$4 sm:$0xff]  }
 0x551   :  { %7689 = vmatpush1.bf16.msra.mxu0 %v9676_v21  ;;  %v9696_v3 = vld [vmem:[#allocation4 + $0x4] ss:$16 sps:$4 sm:$0xff]   ;;  %v9700_v42 = vld [vmem:[#allocation4] ss:$16 sps:$4 sm:$0xff]  }
 0x552   :  { %7732 = vmatpush1.bf16.msra.mxu1 %v9677_v22  ;;  %7690 = vmatprep.subr.bf16.mxu0 %v9678_v23  ;;  %v9698_v16 = vld [vmem:[#allocation4 + $0x204] ss:$16 sps:$4 sm:$0xff]   ;;  %v9701_v53 = vld [vmem:[#allocation4 + $0x200] ss:$16 sps:$4 sm:$0xff]  }
 0x553   :  { %7733 = vmatprep.subr.bf16.mxu1 %v9680_v24  ;;  %v9702_v36 = vld [vmem:[#allocation4 + $0x1e4] ss:$16 sps:$4 sm:$0xff]   ;;  %v9706_v39 = vld [vmem:[#allocation4 + $0x1e0] ss:$16 sps:$4 sm:$0xff]  }
 0x554   :  { %v9704_v47 = vld [vmem:[#allocation4 + $0x3e4] ss:$16 sps:$4 sm:$0xff]   ;;  %v9707_v50 = vld [vmem:[#allocation4 + $0x3e0] ss:$16 sps:$4 sm:$0xff]  }
 0x555   :  { %7691 = vmatpush1.bf16.msra.mxu0 %v9682_v25  ;;  %v9708_v41 = vld [vmem:[#allocation4 + $0x1c4] ss:$16 sps:$4 sm:$0xff]   ;;  %v9712_v52 = vld [vmem:[#allocation4 + $0x1c0] ss:$16 sps:$4 sm:$0xff]  }
 0x556   :  { %7734 = vmatpush1.bf16.msra.mxu1 %v9683_v27  ;;  %7692 = vmatprep.subr.bf16.mxu0 %v9684_v28  ;;  %v9710_v49 = vld [vmem:[#allocation4 + $0x3c4] ss:$16 sps:$4 sm:$0xff]   ;;  %v9713_v1 = vld [vmem:[#allocation4 + $0x3c0] ss:$16 sps:$4 sm:$0xff]  }
 0x557   :  { %7735 = vmatprep.subr.bf16.mxu1 %v9686_v30  ;;  %v9714_v5 = vld [vmem:[#allocation4 + $0x1a4] ss:$16 sps:$4 sm:$0xff]   ;;  %v9718_v43 = vld [vmem:[#allocation4 + $0x1a0] ss:$16 sps:$4 sm:$0xff]  }
 0x558   :  { %v9716_v54 = vld [vmem:[#allocation4 + $0x3a4] ss:$16 sps:$4 sm:$0xff]   ;;  %v9719_v44 = vld [vmem:[#allocation4 + $0x3a0] ss:$16 sps:$4 sm:$0xff]  }
 0x559   :  { %7693 = vmatpush1.bf16.msra.mxu0 %v9688_v32  ;;  %v9720_v55 = vld [vmem:[#allocation4 + $0x184] ss:$16 sps:$4 sm:$0xff]   ;;  %v9724_v29 = vld [vmem:[#allocation4 + $0x180] ss:$16 sps:$4 sm:$0xff]  }
 0x55a   :  { %7736 = vmatpush1.bf16.msra.mxu1 %v9689_v33  ;;  %7694 = vmatprep.subr.bf16.mxu0 %v9690_v34  ;;  %v9722_v0 = vld [vmem:[#allocation4 + $0x384] ss:$16 sps:$4 sm:$0xff]   ;;  %v9725_v19 = vld [vmem:[#allocation4 + $0x380] ss:$16 sps:$4 sm:$0xff]  }
 0x55b   :  { %7737 = vmatprep.subr.bf16.mxu1 %v9692_v35  ;;  %v9726_v57 = vld [vmem:[#allocation4 + $0x164] ss:$16 sps:$4 sm:$0xff]   ;;  %v9730_v59 = vld [vmem:[#allocation4 + $0x160] ss:$16 sps:$4 sm:$0xff]  }
 0x55c   :  { %v9728_v18 = vld [vmem:[#allocation4 + $0x364] ss:$16 sps:$4 sm:$0xff]   ;;  %v9731_v61 = vld [vmem:[#allocation4 + $0x360] ss:$16 sps:$4 sm:$0xff]  }
 0x55d   :  { %7695 = vmatpush1.bf16.msra.mxu0 %v9694_v31  ;;  %v9732_v20 = vld [vmem:[#allocation4 + $0x144] ss:$16 sps:$4 sm:$0xff]   ;;  %v9736_v51 = vld [vmem:[#allocation4 + $0x140] ss:$16 sps:$4 sm:$0xff]  }
 0x55e   :  { %7738 = vmatpush1.bf16.msra.mxu1 %v9695_v2  ;;  %7696 = vmatprep.subr.bf16.mxu0 %v9696_v3  ;;  %v9734_v4 = vld [vmem:[#allocation4 + $0x344] ss:$16 sps:$4 sm:$0xff]   ;;  %v9737_v45 = vld [vmem:[#allocation4 + $0x340] ss:$16 sps:$4 sm:$0xff]  }
 0x55f   :  { %7739 = vmatprep.subr.bf16.mxu1 %v9698_v16  ;;  %v9738_v63 = vld [vmem:[#allocation4 + $0x124] ss:$16 sps:$4 sm:$0xff]   ;;  %v9742_v6 = vld [vmem:[#allocation4 + $0x120] ss:$16 sps:$4 sm:$0xff]  }
 0x560   :  { %v9740_v26 = vld [vmem:[#allocation4 + $0x324] ss:$16 sps:$4 sm:$0xff]   ;;  %v9743_v9 = vld [vmem:[#allocation4 + $0x320] ss:$16 sps:$4 sm:$0xff]  }
 0x561   :  { %7697 = vmatpush1.bf16.msra.mxu0 %v9700_v42  ;;  %v9744_v12 = vld [vmem:[#allocation4 + $0x104] ss:$16 sps:$4 sm:$0xff]   ;;  %v9748_v13 = vld [vmem:[#allocation4 + $0x100] ss:$16 sps:$4 sm:$0xff]  }
 0x562   :  { %7740 = vmatpush1.bf16.msra.mxu1 %v9701_v53  ;;  %7698 = vmatprep.subr.bf16.mxu0 %v9702_v36  ;;  %v9746_v46 = vld [vmem:[#allocation4 + $0x304] ss:$16 sps:$4 sm:$0xff]   ;;  %v9749_v14 = vld [vmem:[#allocation4 + $0x300] ss:$16 sps:$4 sm:$0xff]  }
 0x563   :  { %7741 = vmatprep.subr.bf16.mxu1 %v9704_v47  ;;  %v9752_v56 = vld [vmem:[#allocation4 + $0x4e4] ss:$16 sps:$4 sm:$0xff]   ;;  %v9750_v21 = vld [vmem:[#allocation4 + $0x4e0] ss:$16 sps:$4 sm:$0xff]  }
 0x564   :  { %v9755_v15 = vld [vmem:[#allocation4 + $0x6e4] ss:$16 sps:$4 sm:$0xff]   ;;  %v9753_v22 = vld [vmem:[#allocation4 + $0x6e0] ss:$16 sps:$4 sm:$0xff]  }
 0x565   :  { %7699 = vmatpush2.bf16.msra.mxu0 %v9706_v39  ;;  %v9758_v23 = vld [vmem:[#allocation4 + $0x4c4] ss:$16 sps:$4 sm:$0xff]   ;;  %v9756_v25 = vld [vmem:[#allocation4 + $0x4c0] ss:$16 sps:$4 sm:$0xff]  }
 0x566   :  { %7742 = vmatpush2.bf16.msra.mxu1 %v9707_v50  ;;  %7700 = vmatprep.subr.bf16.mxu0 %v9708_v41  ;;  %v9761_v24 = vld [vmem:[#allocation4 + $0x6c4] ss:$16 sps:$4 sm:$0xff]   ;;  %v9759_v27 = vld [vmem:[#allocation4 + $0x6c0] ss:$16 sps:$4 sm:$0xff]  }
 0x567   :  { %7743 = vmatprep.subr.bf16.mxu1 %v9710_v49  ;;  %v9764_v28 = vld [vmem:[#allocation4 + $0x4a4] ss:$16 sps:$4 sm:$0xff]   ;;  %v9762_v32 = vld [vmem:[#allocation4 + $0x4a0] ss:$16 sps:$4 sm:$0xff]  }
 0x568   :  { %v9767_v30 = vld [vmem:[#allocation4 + $0x6a4] ss:$16 sps:$4 sm:$0xff]   ;;  %v9765_v33 = vld [vmem:[#allocation4 + $0x6a0] ss:$16 sps:$4 sm:$0xff]  }
 0x569   :  { %7701 = vmatpush2.bf16.msra.mxu0 %v9712_v52  ;;  %v9770_v34 = vld [vmem:[#allocation4 + $0x484] ss:$16 sps:$4 sm:$0xff]   ;;  %v9768_v31 = vld [vmem:[#allocation4 + $0x480] ss:$16 sps:$4 sm:$0xff]  }
 0x56a   :  { %7744 = vmatpush2.bf16.msra.mxu1 %v9713_v1  ;;  %7702 = vmatprep.subr.bf16.mxu0 %v9714_v5  ;;  %v9773_v35 = vld [vmem:[#allocation4 + $0x684] ss:$16 sps:$4 sm:$0xff]   ;;  %v9771_v2 = vld [vmem:[#allocation4 + $0x680] ss:$16 sps:$4 sm:$0xff]  }
 0x56b   :  { %7745 = vmatprep.subr.bf16.mxu1 %v9716_v54  ;;  %v9776_v3 = vld [vmem:[#allocation4 + $0x464] ss:$16 sps:$4 sm:$0xff]   ;;  %v9774_v42 = vld [vmem:[#allocation4 + $0x460] ss:$16 sps:$4 sm:$0xff]  }
 0x56c   :  { %v9779_v16 = vld [vmem:[#allocation4 + $0x664] ss:$16 sps:$4 sm:$0xff]   ;;  %v9777_v53 = vld [vmem:[#allocation4 + $0x660] ss:$16 sps:$4 sm:$0xff]  }
 0x56d   :  { %7703 = vmatpush2.bf16.msra.mxu0 %v9718_v43  ;;  %v9782_v36 = vld [vmem:[#allocation4 + $0x444] ss:$16 sps:$4 sm:$0xff]   ;;  %v9780_v39 = vld [vmem:[#allocation4 + $0x440] ss:$16 sps:$4 sm:$0xff]  }
 0x56e   :  { %7746 = vmatpush2.bf16.msra.mxu1 %v9719_v44  ;;  %7704 = vmatprep.subr.bf16.mxu0 %v9720_v55  ;;  %v9785_v47 = vld [vmem:[#allocation4 + $0x644] ss:$16 sps:$4 sm:$0xff]   ;;  %v9783_v50 = vld [vmem:[#allocation4 + $0x640] ss:$16 sps:$4 sm:$0xff]  }
 0x56f   :  { %7747 = vmatprep.subr.bf16.mxu1 %v9722_v0  ;;  %v9788_v41 = vld [vmem:[#allocation4 + $0x424] ss:$16 sps:$4 sm:$0xff]   ;;  %v9786_v52 = vld [vmem:[#allocation4 + $0x420] ss:$16 sps:$4 sm:$0xff]  }
 0x570   :  { %v9791_v49 = vld [vmem:[#allocation4 + $0x624] ss:$16 sps:$4 sm:$0xff]   ;;  %v9789_v1 = vld [vmem:[#allocation4 + $0x620] ss:$16 sps:$4 sm:$0xff]  }
 0x571   :  { %7705 = vmatpush2.bf16.msra.mxu0 %v9724_v29  ;;  %v9794_v5 = vld [vmem:[#allocation4 + $0x404] ss:$16 sps:$4 sm:$0xff]   ;;  %v9792_v43 = vld [vmem:[#allocation4 + $0x400] ss:$16 sps:$4 sm:$0xff]  }
 0x572   :  { %7748 = vmatpush2.bf16.msra.mxu1 %v9725_v19  ;;  %7706 = vmatprep.subr.bf16.mxu0 %v9726_v57  ;;  %v9797_v54 = vld [vmem:[#allocation4 + $0x604] ss:$16 sps:$4 sm:$0xff]   ;;  %v9795_v44 = vld [vmem:[#allocation4 + $0x600] ss:$16 sps:$4 sm:$0xff]  }
 0x573   :  { %7749 = vmatprep.subr.bf16.mxu1 %v9728_v18  ;;  %v9800_v55 = vld [vmem:[#allocation4 + $0x5e4] ss:$16 sps:$4 sm:$0xff]   ;;  %v9798_v29 = vld [vmem:[#allocation4 + $0x5e0] ss:$16 sps:$4 sm:$0xff]  }
 0x574   :  { %v9803_v0 = vld [vmem:[#allocation4 + $0x7e4] ss:$16 sps:$4 sm:$0xff]   ;;  %v9801_v19 = vld [vmem:[#allocation4 + $0x7e0] ss:$16 sps:$4 sm:$0xff]  }
 0x575   :  { %7707 = vmatpush2.bf16.msra.mxu0 %v9730_v59  ;;  %v9806_v57 = vld [vmem:[#allocation4 + $0x5c4] ss:$16 sps:$4 sm:$0xff]   ;;  %v9804_v59 = vld [vmem:[#allocation4 + $0x5c0] ss:$16 sps:$4 sm:$0xff]  }
 0x576   :  { %7750 = vmatpush2.bf16.msra.mxu1 %v9731_v61  ;;  %7708 = vmatprep.subr.bf16.mxu0 %v9732_v20  ;;  %v9809_v18 = vld [vmem:[#allocation4 + $0x7c4] ss:$16 sps:$4 sm:$0xff]   ;;  %v9807_v61 = vld [vmem:[#allocation4 + $0x7c0] ss:$16 sps:$4 sm:$0xff]  }
 0x577   :  { %7751 = vmatprep.subr.bf16.mxu1 %v9734_v4  ;;  %v9812_v20 = vld [vmem:[#allocation4 + $0x5a4] ss:$16 sps:$4 sm:$0xff]  }
 0x578   :  { %v9815_v4 = vld [vmem:[#allocation4 + $0x7a4] ss:$16 sps:$4 sm:$0xff]  }
 0x579   :  { %7709 = vmatpush2.bf16.msra.mxu0 %v9736_v51  ;;  %v9810_v51 = vld [vmem:[#allocation4 + $0x5a0] ss:$16 sps:$4 sm:$0xff]  }
 0x57a   :  { %7752 = vmatpush2.bf16.msra.mxu1 %v9737_v45  ;;  %7710 = vmatprep.subr.bf16.mxu0 %v9738_v63  ;;  %v9813_v45 = vld [vmem:[#allocation4 + $0x7a0] ss:$16 sps:$4 sm:$0xff]   ;;  %v9818_v63 = vld [vmem:[#allocation4 + $0x584] ss:$16 sps:$4 sm:$0xff]  }
 0x57b   :  { %7753 = vmatprep.subr.bf16.mxu1 %v9740_v26  ;;  %v9821_v26 = vld [vmem:[#allocation4 + $0x784] ss:$16 sps:$4 sm:$0xff]  }
 0x57d   :  { %7711 = vmatpush2.bf16.msra.mxu0 %v9742_v6  ;;  %v9816_v6 = vld [vmem:[#allocation4 + $0x580] ss:$16 sps:$4 sm:$0xff]  }
 0x57e   :  { %7754 = vmatpush2.bf16.msra.mxu1 %v9743_v9  ;;  %7712 = vmatprep.subr.bf16.mxu0 %v9744_v12  ;;  %v9819_v9 = vld [vmem:[#allocation4 + $0x780] ss:$16 sps:$4 sm:$0xff]   ;;  %v9824_v12 = vld [vmem:[#allocation4 + $0x564] ss:$16 sps:$4 sm:$0xff]  }
 0x57f   :  { %7755 = vmatprep.subr.bf16.mxu1 %v9746_v46  ;;  %v9827_v46 = vld [vmem:[#allocation4 + $0x764] ss:$16 sps:$4 sm:$0xff]  }
 0x581   :  { %7713 = vmatpush2.bf16.msra.mxu0 %v9748_v13  ;;  %v9822_v13 = vld [vmem:[#allocation4 + $0x560] ss:$16 sps:$4 sm:$0xff]  }
 0x582   :  { %7756 = vmatpush2.bf16.msra.mxu1 %v9749_v14  ;;  %7768 = vmatprep.subr.bf16.mxu0 %v9752_v56  ;;  %v9825_v14 = vld [vmem:[#allocation4 + $0x760] ss:$16 sps:$4 sm:$0xff]   ;;  %v9830_v56 = vld [vmem:[#allocation4 + $0x544] ss:$16 sps:$4 sm:$0xff]  }
 0x583   :  { %7811 = vmatprep.subr.bf16.mxu1 %v9755_v15  ;;  %v9833_v15 = vld [vmem:[#allocation4 + $0x744] ss:$16 sps:$4 sm:$0xff]  }
 0x584   :  { %7715 = vmatmul.mubr.bf16.vlgmr.msra.gmra.mxu0 %v10653_v8 }
 0x585   :  { %7758 = vmatmul.mubr.bf16.vlgmr.msra.gmra.mxu1 %v10677_v37  ;;  %7769 = vmatpush1.bf16.msra.mxu0 %v9750_v21  ;;  %v9828_v21 = vld [vmem:[#allocation4 + $0x540] ss:$16 sps:$4 sm:$0xff]  }
 0x586   :  { %7812 = vmatpush1.bf16.msra.mxu1 %v9753_v22  ;;  %7770 = vmatprep.subr.bf16.mxu0 %v9758_v23  ;;  %v9831_v22 = vld [vmem:[#allocation4 + $0x740] ss:$16 sps:$4 sm:$0xff]   ;;  %v9836_v23 = vld [vmem:[#allocation4 + $0x524] ss:$16 sps:$4 sm:$0xff]  }
 0x587   :  { %7813 = vmatprep.subr.bf16.mxu1 %v9761_v24  ;;  %7800 = vmatprep.mubr.bf16.mxu0 %v10689_v58  ;;  %v9839_v24 = vld [vmem:[#allocation4 + $0x724] ss:$16 sps:$4 sm:$0xff]  }
 0x588   :  { %7843 = vmatprep.mubr.bf16.mxu1 %v10697_v62 }
 0x589   :  { %7771 = vmatpush1.bf16.msra.mxu0 %v9756_v25  ;;  %v9834_v25 = vld [vmem:[#allocation4 + $0x520] ss:$16 sps:$4 sm:$0xff]  }
 0x58a   :  { %7814 = vmatpush1.bf16.msra.mxu1 %v9759_v27  ;;  %7772 = vmatprep.subr.bf16.mxu0 %v9764_v28  ;;  %v9837_v27 = vld [vmem:[#allocation4 + $0x720] ss:$16 sps:$4 sm:$0xff]   ;;  %v9842_v28 = vld [vmem:[#allocation4 + $0x504] ss:$16 sps:$4 sm:$0xff]  }
 0x58b   :  { %7815 = vmatprep.subr.bf16.mxu1 %v9767_v30  ;;  %v9845_v30 = vld [vmem:[#allocation4 + $0x704] ss:$16 sps:$4 sm:$0xff]  }
 0x58d   :  { %7773 = vmatpush1.bf16.msra.mxu0 %v9762_v32  ;;  %v9840_v32 = vld [vmem:[#allocation4 + $0x500] ss:$16 sps:$4 sm:$0xff]  }
 0x58e   :  { %7816 = vmatpush1.bf16.msra.mxu1 %v9765_v33  ;;  %7774 = vmatprep.subr.bf16.mxu0 %v9770_v34  ;;  %v9843_v33 = vld [vmem:[#allocation4 + $0x700] ss:$16 sps:$4 sm:$0xff]   ;;  %v9848_v34 = vld [vmem:[#allocation4 + $0xec] ss:$16 sps:$4 sm:$0xff]  }
 0x58f   :  { %7817 = vmatprep.subr.bf16.mxu1 %v9773_v35  ;;  %v9851_v35 = vld [vmem:[#allocation4 + $0x2ec] ss:$16 sps:$4 sm:$0xff]  }
 0x591   :  { %7775 = vmatpush1.bf16.msra.mxu0 %v9768_v31  ;;  %v9846_v31 = vld [vmem:[#allocation4 + $0xe8] ss:$16 sps:$4 sm:$0xff]  }
 0x592   :  { %7818 = vmatpush1.bf16.msra.mxu1 %v9771_v2  ;;  %7776 = vmatprep.subr.bf16.mxu0 %v9776_v3  ;;  %v9849_v2 = vld [vmem:[#allocation4 + $0x2e8] ss:$16 sps:$4 sm:$0xff]   ;;  %v9854_v3 = vld [vmem:[#allocation4 + $0xcc] ss:$16 sps:$4 sm:$0xff]  }
 0x593   :  { %7819 = vmatprep.subr.bf16.mxu1 %v9779_v16  ;;  %v9857_v16 = vld [vmem:[#allocation4 + $0x2cc] ss:$16 sps:$4 sm:$0xff]  }
 0x595   :  { %7777 = vmatpush1.bf16.msra.mxu0 %v9774_v42  ;;  %v9852_v42 = vld [vmem:[#allocation4 + $0xc8] ss:$16 sps:$4 sm:$0xff]  }
 0x596   :  { %7820 = vmatpush1.bf16.msra.mxu1 %v9777_v53  ;;  %7778 = vmatprep.subr.bf16.mxu0 %v9782_v36  ;;  %v9855_v53 = vld [vmem:[#allocation4 + $0x2c8] ss:$16 sps:$4 sm:$0xff]   ;;  %v9860_v36 = vld [vmem:[#allocation4 + $0xac] ss:$16 sps:$4 sm:$0xff]  }
 0x597   :  { %7821 = vmatprep.subr.bf16.mxu1 %v9785_v47  ;;  %v9863_v47 = vld [vmem:[#allocation4 + $0x2ac] ss:$16 sps:$4 sm:$0xff]  }
 0x599   :  { %7779 = vmatpush1.bf16.msra.mxu0 %v9780_v39  ;;  %v9858_v39 = vld [vmem:[#allocation4 + $0xa8] ss:$16 sps:$4 sm:$0xff]  }
 0x59a   :  { %7822 = vmatpush1.bf16.msra.mxu1 %v9783_v50  ;;  %7780 = vmatprep.subr.bf16.mxu0 %v9788_v41  ;;  %v9861_v50 = vld [vmem:[#allocation4 + $0x2a8] ss:$16 sps:$4 sm:$0xff]   ;;  %v9866_v41 = vld [vmem:[#allocation4 + $0x8c] ss:$16 sps:$4 sm:$0xff]  }
 0x59b   :  { %7823 = vmatprep.subr.bf16.mxu1 %v9791_v49  ;;  %v9869_v49 = vld [vmem:[#allocation4 + $0x28c] ss:$16 sps:$4 sm:$0xff]  }
 0x59d   :  { %7781 = vmatpush1.bf16.msra.mxu0 %v9786_v52  ;;  %v9864_v52 = vld [vmem:[#allocation4 + $0x88] ss:$16 sps:$4 sm:$0xff]  }
 0x59e   :  { %7824 = vmatpush1.bf16.msra.mxu1 %v9789_v1  ;;  %7782 = vmatprep.subr.bf16.mxu0 %v9794_v5  ;;  %v9867_v1 = vld [vmem:[#allocation4 + $0x288] ss:$16 sps:$4 sm:$0xff]   ;;  %v9872_v5 = vld [vmem:[#allocation4 + $0x6c] ss:$16 sps:$4 sm:$0xff]  }
 0x59f   :  { %7825 = vmatprep.subr.bf16.mxu1 %v9797_v54  ;;  %v9875_v54 = vld [vmem:[#allocation4 + $0x26c] ss:$16 sps:$4 sm:$0xff]  }
 0x5a1   :  { %7783 = vmatpush1.bf16.msra.mxu0 %v9792_v43  ;;  %v9870_v43 = vld [vmem:[#allocation4 + $0x68] ss:$16 sps:$4 sm:$0xff]  }
 0x5a2   :  { %7826 = vmatpush1.bf16.msra.mxu1 %v9795_v44  ;;  %7784 = vmatprep.subr.bf16.mxu0 %v9800_v55  ;;  %v9881_v44 = vld [vmem:[#allocation4 + $0x24c] ss:$16 sps:$4 sm:$0xff]   ;;  %v9876_v55 = vld [vmem:[#allocation4 + $0x48] ss:$16 sps:$4 sm:$0xff]  }
 0x5a3   :  { %7827 = vmatprep.subr.bf16.mxu1 %v9803_v0  ;;  %v9879_v0 = vld [vmem:[#allocation4 + $0x248] ss:$16 sps:$4 sm:$0xff]  }
 0x5a5   :  { %7785 = vmatpush2.bf16.msra.mxu0 %v9798_v29  ;;  %v9884_v29 = vld [vmem:[#allocation4 + $0x2c] ss:$16 sps:$4 sm:$0xff]  }
 0x5a6   :  { %7828 = vmatpush2.bf16.msra.mxu1 %v9801_v19  ;;  %7786 = vmatprep.subr.bf16.mxu0 %v9806_v57  ;;  %v9887_v19 = vld [vmem:[#allocation4 + $0x22c] ss:$16 sps:$4 sm:$0xff]   ;;  %v9882_v57 = vld [vmem:[#allocation4 + $0x28] ss:$16 sps:$4 sm:$0xff]  }
 0x5a7   :  { %7829 = vmatprep.subr.bf16.mxu1 %v9809_v18  ;;  %v9885_v18 = vld [vmem:[#allocation4 + $0x228] ss:$16 sps:$4 sm:$0xff]  }
 0x5a9   :  { %7787 = vmatpush2.bf16.msra.mxu0 %v9804_v59  ;;  %v9890_v59 = vld [vmem:[#allocation4 + $0xc] ss:$16 sps:$4 sm:$0xff]  }
 0x5aa   :  { %7830 = vmatpush2.bf16.msra.mxu1 %v9807_v61  ;;  %7788 = vmatprep.subr.bf16.mxu0 %v9812_v20  ;;  %v9893_v61 = vld [vmem:[#allocation4 + $0x20c] ss:$16 sps:$4 sm:$0xff]   ;;  %v9888_v20 = vld [vmem:[#allocation4 + $0x8] ss:$16 sps:$4 sm:$0xff]  }
 0x5ab   :  { %7831 = vmatprep.subr.bf16.mxu1 %v9815_v4  ;;  %v9891_v4 = vld [vmem:[#allocation4 + $0x208] ss:$16 sps:$4 sm:$0xff]  }
 0x5ad   :  { %7789 = vmatpush2.bf16.msra.mxu0 %v9810_v51  ;;  %v9896_v51 = vld [vmem:[#allocation4 + $0x1ec] ss:$16 sps:$4 sm:$0xff]  }
 0x5ae   :  { %7832 = vmatpush2.bf16.msra.mxu1 %v9813_v45  ;;  %7790 = vmatprep.subr.bf16.mxu0 %v9818_v63  ;;  %v9899_v45 = vld [vmem:[#allocation4 + $0x3ec] ss:$16 sps:$4 sm:$0xff]   ;;  %v9894_v63 = vld [vmem:[#allocation4 + $0x1e8] ss:$16 sps:$4 sm:$0xff]  }
 0x5af   :  { %7833 = vmatprep.subr.bf16.mxu1 %v9821_v26  ;;  %v9897_v26 = vld [vmem:[#allocation4 + $0x3e8] ss:$16 sps:$4 sm:$0xff]  }
 0x5b1   :  { %7791 = vmatpush2.bf16.msra.mxu0 %v9816_v6  ;;  %v9902_v6 = vld [vmem:[#allocation4 + $0x1cc] ss:$16 sps:$4 sm:$0xff]  }
 0x5b2   :  { %7834 = vmatpush2.bf16.msra.mxu1 %v9819_v9  ;;  %7792 = vmatprep.subr.bf16.mxu0 %v9824_v12  ;;  %v9905_v9 = vld [vmem:[#allocation4 + $0x3cc] ss:$16 sps:$4 sm:$0xff]   ;;  %v9900_v12 = vld [vmem:[#allocation4 + $0x1c8] ss:$16 sps:$4 sm:$0xff]  }
 0x5b3   :  { %7835 = vmatprep.subr.bf16.mxu1 %v9827_v46  ;;  %v9903_v46 = vld [vmem:[#allocation4 + $0x3c8] ss:$16 sps:$4 sm:$0xff]  }
 0x5b5   :  { %7793 = vmatpush2.bf16.msra.mxu0 %v9822_v13  ;;  %v9908_v13 = vld [vmem:[#allocation4 + $0x1ac] ss:$16 sps:$4 sm:$0xff]  }
 0x5b6   :  { %7836 = vmatpush2.bf16.msra.mxu1 %v9825_v14  ;;  %7794 = vmatprep.subr.bf16.mxu0 %v9830_v56  ;;  %v9911_v14 = vld [vmem:[#allocation4 + $0x3ac] ss:$16 sps:$4 sm:$0xff]   ;;  %v9906_v56 = vld [vmem:[#allocation4 + $0x1a8] ss:$16 sps:$4 sm:$0xff]  }
 0x5b7   :  { %7837 = vmatprep.subr.bf16.mxu1 %v9833_v15  ;;  %v9909_v15 = vld [vmem:[#allocation4 + $0x3a8] ss:$16 sps:$4 sm:$0xff]  }
 0x5b9   :  { %7795 = vmatpush2.bf16.msra.mxu0 %v9828_v21  ;;  %v9914_v21 = vld [vmem:[#allocation4 + $0x18c] ss:$16 sps:$4 sm:$0xff]  }
 0x5ba   :  { %7838 = vmatpush2.bf16.msra.mxu1 %v9831_v22  ;;  %7796 = vmatprep.subr.bf16.mxu0 %v9836_v23  ;;  %v9917_v22 = vld [vmem:[#allocation4 + $0x38c] ss:$16 sps:$4 sm:$0xff]   ;;  %v9912_v23 = vld [vmem:[#allocation4 + $0x188] ss:$16 sps:$4 sm:$0xff]  }
 0x5bb   :  { %7839 = vmatprep.subr.bf16.mxu1 %v9839_v24  ;;  %v9915_v24 = vld [vmem:[#allocation4 + $0x388] ss:$16 sps:$4 sm:$0xff]  }
 0x5bd   :  { %7797 = vmatpush2.bf16.msra.mxu0 %v9834_v25  ;;  %v9920_v25 = vld [vmem:[#allocation4 + $0x16c] ss:$16 sps:$4 sm:$0xff]  }
 0x5be   :  { %7840 = vmatpush2.bf16.msra.mxu1 %v9837_v27  ;;  %7798 = vmatprep.subr.bf16.mxu0 %v9842_v28  ;;  %v9923_v27 = vld [vmem:[#allocation4 + $0x36c] ss:$16 sps:$4 sm:$0xff]   ;;  %v9918_v28 = vld [vmem:[#allocation4 + $0x168] ss:$16 sps:$4 sm:$0xff]  }
 0x5bf   :  { %7841 = vmatprep.subr.bf16.mxu1 %v9845_v30  ;;  %v9921_v30 = vld [vmem:[#allocation4 + $0x368] ss:$16 sps:$4 sm:$0xff]  }
 0x5c1   :  { %7799 = vmatpush2.bf16.msra.mxu0 %v9840_v32  ;;  %v9926_v32 = vld [vmem:[#allocation4 + $0x14c] ss:$16 sps:$4 sm:$0xff]  }
 0x5c2   :  { %7842 = vmatpush2.bf16.msra.mxu1 %v9843_v33  ;;  %7854 = vmatprep.subr.bf16.mxu0 %v9848_v34  ;;  %v9929_v33 = vld [vmem:[#allocation4 + $0x34c] ss:$16 sps:$4 sm:$0xff]   ;;  %v9924_v34 = vld [vmem:[#allocation4 + $0x148] ss:$16 sps:$4 sm:$0xff]  }
 0x5c3   :  { %7897 = vmatprep.subr.bf16.mxu1 %v9851_v35  ;;  %v9927_v35 = vld [vmem:[#allocation4 + $0x348] ss:$16 sps:$4 sm:$0xff]  }
 0x5c4   :  { %7801 = vmatmul.mubr.bf16.vlgmr.msra.gmra.mxu0 %v10687_v7 }
 0x5c5   :  { %7844 = vmatmul.mubr.bf16.vlgmr.msra.gmra.mxu1 %v10695_v60  ;;  %7855 = vmatpush1.bf16.msra.mxu0 %v9846_v31  ;;  %v9932_v31 = vld [vmem:[#allocation4 + $0x12c] ss:$16 sps:$4 sm:$0xff]  }
 0x5c6   :  { %7898 = vmatpush1.bf16.msra.mxu1 %v9849_v2  ;;  %7856 = vmatprep.subr.bf16.mxu0 %v9854_v3  ;;  %v9935_v2 = vld [vmem:[#allocation4 + $0x32c] ss:$16 sps:$4 sm:$0xff]   ;;  %v9930_v3 = vld [vmem:[#allocation4 + $0x128] ss:$16 sps:$4 sm:$0xff]  }
 0x5c7   :  { %7899 = vmatprep.subr.bf16.mxu1 %v9857_v16  ;;  %7886 = vmatprep.mubr.bf16.mxu0 %v10655_v17  ;;  %v9873_v17 = vld [vmem:[#allocation4 + $0x268] ss:$16 sps:$4 sm:$0xff]  }
 0x5c8   :  { %7929 = vmatprep.mubr.bf16.mxu1 %v10679_v48  ;;  %v9878_v48 = vld [vmem:[#allocation4 + $0x4c] ss:$16 sps:$4 sm:$0xff]   ;;  %v9933_v16 = vld [vmem:[#allocation4 + $0x328] ss:$16 sps:$4 sm:$0xff]  }
 0x5c9   :  { %7857 = vmatpush1.bf16.msra.mxu0 %v9852_v42  ;;  %v9938_v42 = vld [vmem:[#allocation4 + $0x10c] ss:$16 sps:$4 sm:$0xff]  }
 0x5ca   :  { %7900 = vmatpush1.bf16.msra.mxu1 %v9855_v53  ;;  %7858 = vmatprep.subr.bf16.mxu0 %v9860_v36  ;;  %v9941_v53 = vld [vmem:[#allocation4 + $0x30c] ss:$16 sps:$4 sm:$0xff]   ;;  %v9936_v36 = vld [vmem:[#allocation4 + $0x108] ss:$16 sps:$4 sm:$0xff]  }
 0x5cb   :  { %7901 = vmatprep.subr.bf16.mxu1 %v9863_v47  ;;  %v9939_v47 = vld [vmem:[#allocation4 + $0x308] ss:$16 sps:$4 sm:$0xff]  }
 0x5cd   :  { %7859 = vmatpush1.bf16.msra.mxu0 %v9858_v39  ;;  %v9944_v39 = vld [vmem:[#allocation4 + $0x4ec] ss:$16 sps:$4 sm:$0xff]  }
 0x5ce   :  { %7902 = vmatpush1.bf16.msra.mxu1 %v9861_v50  ;;  %7860 = vmatprep.subr.bf16.mxu0 %v9866_v41  ;;  %v9947_v50 = vld [vmem:[#allocation4 + $0x6ec] ss:$16 sps:$4 sm:$0xff]   ;;  %v9942_v41 = vld [vmem:[#allocation4 + $0x4e8] ss:$16 sps:$4 sm:$0xff]  }
 0x5cf   :  { %7903 = vmatprep.subr.bf16.mxu1 %v9869_v49  ;;  %v9945_v49 = vld [vmem:[#allocation4 + $0x6e8] ss:$16 sps:$4 sm:$0xff]  }
 0x5d1   :  { %7861 = vmatpush1.bf16.msra.mxu0 %v9864_v52  ;;  %v9950_v52 = vld [vmem:[#allocation4 + $0x4cc] ss:$16 sps:$4 sm:$0xff]  }
 0x5d2   :  { %7904 = vmatpush1.bf16.msra.mxu1 %v9867_v1  ;;  %7862 = vmatprep.subr.bf16.mxu0 %v9872_v5  ;;  %v9953_v1 = vld [vmem:[#allocation4 + $0x6cc] ss:$16 sps:$4 sm:$0xff]   ;;  %v9948_v5 = vld [vmem:[#allocation4 + $0x4c8] ss:$16 sps:$4 sm:$0xff]  }
 0x5d3   :  { %7905 = vmatprep.subr.bf16.mxu1 %v9875_v54  ;;  %v9951_v54 = vld [vmem:[#allocation4 + $0x6c8] ss:$16 sps:$4 sm:$0xff]  }
 0x5d5   :  { %7863 = vmatpush1.bf16.msra.mxu0 %v9870_v43  ;;  %v9956_v43 = vld [vmem:[#allocation4 + $0x4ac] ss:$16 sps:$4 sm:$0xff]  }
 0x5d6   :  { %7906 = vmatpush1.bf16.msra.mxu1 %v9873_v17  ;;  %7864 = vmatprep.subr.bf16.mxu0 %v9878_v48  ;;  %v9959_v17 = vld [vmem:[#allocation4 + $0x6ac] ss:$16 sps:$4 sm:$0xff]   ;;  %v9954_v48 = vld [vmem:[#allocation4 + $0x4a8] ss:$16 sps:$4 sm:$0xff]  }
 0x5d7   :  { %7907 = vmatprep.subr.bf16.mxu1 %v9881_v44  ;;  %v9957_v44 = vld [vmem:[#allocation4 + $0x6a8] ss:$16 sps:$4 sm:$0xff]  }
 0x5d9   :  { %7865 = vmatpush1.bf16.msra.mxu0 %v9876_v55  ;;  %v9960_v55 = vld [vmem:[#allocation4 + $0x488] ss:$16 sps:$4 sm:$0xff]  }
 0x5da   :  { %7908 = vmatpush1.bf16.msra.mxu1 %v9879_v0  ;;  %7866 = vmatprep.subr.bf16.mxu0 %v9884_v29  ;;  %v9963_v0 = vld [vmem:[#allocation4 + $0x688] ss:$16 sps:$4 sm:$0xff]   ;;  %v9968_v29 = vld [vmem:[#allocation4 + $0x46c] ss:$16 sps:$4 sm:$0xff]  }
 0x5db   :  { %7909 = vmatprep.subr.bf16.mxu1 %v9887_v19  ;;  %v9971_v19 = vld [vmem:[#allocation4 + $0x66c] ss:$16 sps:$4 sm:$0xff]  }
 0x5dd   :  { %7867 = vmatpush1.bf16.msra.mxu0 %v9882_v57  ;;  %v9974_v57 = vld [vmem:[#allocation4 + $0x44c] ss:$16 sps:$4 sm:$0xff]  }
 0x5de   :  { %7910 = vmatpush1.bf16.msra.mxu1 %v9885_v18  ;;  %7868 = vmatprep.subr.bf16.mxu0 %v9890_v59  ;;  %v9977_v18 = vld [vmem:[#allocation4 + $0x64c] ss:$16 sps:$4 sm:$0xff]   ;;  %v9972_v59 = vld [vmem:[#allocation4 + $0x448] ss:$16 sps:$4 sm:$0xff]  }
 0x5df   :  { %7911 = vmatprep.subr.bf16.mxu1 %v9893_v61  ;;  %v9975_v61 = vld [vmem:[#allocation4 + $0x648] ss:$16 sps:$4 sm:$0xff]  }
 0x5e1   :  { %7869 = vmatpush1.bf16.msra.mxu0 %v9888_v20  ;;  %v9980_v20 = vld [vmem:[#allocation4 + $0x42c] ss:$16 sps:$4 sm:$0xff]  }
 0x5e2   :  { %7912 = vmatpush1.bf16.msra.mxu1 %v9891_v4  ;;  %7870 = vmatprep.subr.bf16.mxu0 %v9896_v51  ;;  %v9983_v4 = vld [vmem:[#allocation4 + $0x62c] ss:$16 sps:$4 sm:$0xff]   ;;  %v9978_v51 = vld [vmem:[#allocation4 + $0x428] ss:$16 sps:$4 sm:$0xff]  }
 0x5e3   :  { %7913 = vmatprep.subr.bf16.mxu1 %v9899_v45  ;;  %v9981_v45 = vld [vmem:[#allocation4 + $0x628] ss:$16 sps:$4 sm:$0xff]  }
 0x5e5   :  { %7871 = vmatpush2.bf16.msra.mxu0 %v9894_v63  ;;  %v9986_v63 = vld [vmem:[#allocation4 + $0x40c] ss:$16 sps:$4 sm:$0xff]  }
 0x5e6   :  { %7914 = vmatpush2.bf16.msra.mxu1 %v9897_v26  ;;  %7872 = vmatprep.subr.bf16.mxu0 %v9902_v6  ;;  %v9989_v26 = vld [vmem:[#allocation4 + $0x60c] ss:$16 sps:$4 sm:$0xff]   ;;  %v9984_v6 = vld [vmem:[#allocation4 + $0x408] ss:$16 sps:$4 sm:$0xff]  }
 0x5e7   :  { %7915 = vmatprep.subr.bf16.mxu1 %v9905_v9  ;;  %v9987_v9 = vld [vmem:[#allocation4 + $0x608] ss:$16 sps:$4 sm:$0xff]  }
 0x5e9   :  { %7873 = vmatpush2.bf16.msra.mxu0 %v9900_v12  ;;  %v9992_v12 = vld [vmem:[#allocation4 + $0x5ec] ss:$16 sps:$4 sm:$0xff]  }
 0x5ea   :  { %7916 = vmatpush2.bf16.msra.mxu1 %v9903_v46  ;;  %7874 = vmatprep.subr.bf16.mxu0 %v9908_v13  ;;  %v9995_v46 = vld [vmem:[#allocation4 + $0x7ec] ss:$16 sps:$4 sm:$0xff]   ;;  %v9990_v13 = vld [vmem:[#allocation4 + $0x5e8] ss:$16 sps:$4 sm:$0xff]  }
 0x5eb   :  { %7917 = vmatprep.subr.bf16.mxu1 %v9911_v14  ;;  %v9993_v14 = vld [vmem:[#allocation4 + $0x7e8] ss:$16 sps:$4 sm:$0xff]  }
 0x5ed   :  { %7875 = vmatpush2.bf16.msra.mxu0 %v9906_v56  ;;  %v9998_v56 = vld [vmem:[#allocation4 + $0x5cc] ss:$16 sps:$4 sm:$0xff]  }
 0x5ee   :  { %7918 = vmatpush2.bf16.msra.mxu1 %v9909_v15  ;;  %7876 = vmatprep.subr.bf16.mxu0 %v9914_v21  ;;  %v10001_v15 = vld [vmem:[#allocation4 + $0x7cc] ss:$16 sps:$4 sm:$0xff]   ;;  %v9996_v21 = vld [vmem:[#allocation4 + $0x5c8] ss:$16 sps:$4 sm:$0xff]  }
 0x5ef   :  { %7919 = vmatprep.subr.bf16.mxu1 %v9917_v22  ;;  %v9999_v22 = vld [vmem:[#allocation4 + $0x7c8] ss:$16 sps:$4 sm:$0xff]  }
 0x5f1   :  { %7877 = vmatpush2.bf16.msra.mxu0 %v9912_v23  ;;  %v10004_v23 = vld [vmem:[#allocation4 + $0x5ac] ss:$16 sps:$4 sm:$0xff]  }
 0x5f2   :  { %7920 = vmatpush2.bf16.msra.mxu1 %v9915_v24  ;;  %7878 = vmatprep.subr.bf16.mxu0 %v9920_v25  ;;  %v10007_v24 = vld [vmem:[#allocation4 + $0x7ac] ss:$16 sps:$4 sm:$0xff]   ;;  %v10002_v25 = vld [vmem:[#allocation4 + $0x5a8] ss:$16 sps:$4 sm:$0xff]  }
 0x5f3   :  { %7921 = vmatprep.subr.bf16.mxu1 %v9923_v27  ;;  %v10005_v27 = vld [vmem:[#allocation4 + $0x7a8] ss:$16 sps:$4 sm:$0xff]  }
 0x5f5   :  { %7879 = vmatpush2.bf16.msra.mxu0 %v9918_v28  ;;  %v10010_v28 = vld [vmem:[#allocation4 + $0x58c] ss:$16 sps:$4 sm:$0xff]  }
 0x5f6   :  { %7922 = vmatpush2.bf16.msra.mxu1 %v9921_v30  ;;  %7880 = vmatprep.subr.bf16.mxu0 %v9926_v32  ;;  %v10013_v30 = vld [vmem:[#allocation4 + $0x78c] ss:$16 sps:$4 sm:$0xff]   ;;  %v10008_v32 = vld [vmem:[#allocation4 + $0x588] ss:$16 sps:$4 sm:$0xff]  }
 0x5f7   :  { %7923 = vmatprep.subr.bf16.mxu1 %v9929_v33  ;;  %v10011_v33 = vld [vmem:[#allocation4 + $0x788] ss:$16 sps:$4 sm:$0xff]  }
 0x5f9   :  { %7881 = vmatpush2.bf16.msra.mxu0 %v9924_v34  ;;  %v10016_v34 = vld [vmem:[#allocation4 + $0x56c] ss:$16 sps:$4 sm:$0xff]  }
 0x5fa   :  { %7924 = vmatpush2.bf16.msra.mxu1 %v9927_v35  ;;  %7882 = vmatprep.subr.bf16.mxu0 %v9932_v31  ;;  %v10019_v35 = vld [vmem:[#allocation4 + $0x76c] ss:$16 sps:$4 sm:$0xff]   ;;  %v10014_v31 = vld [vmem:[#allocation4 + $0x568] ss:$16 sps:$4 sm:$0xff]  }
 0x5fb   :  { %7925 = vmatprep.subr.bf16.mxu1 %v9935_v2  ;;  %v10017_v2 = vld [vmem:[#allocation4 + $0x768] ss:$16 sps:$4 sm:$0xff]  }
 0x5fd   :  { %7883 = vmatpush2.bf16.msra.mxu0 %v9930_v3  ;;  %v10022_v3 = vld [vmem:[#allocation4 + $0x54c] ss:$16 sps:$4 sm:$0xff]  }
 0x5fe   :  { %7926 = vmatpush2.bf16.msra.mxu1 %v9933_v16  ;;  %7884 = vmatprep.subr.bf16.mxu0 %v9938_v42  ;;  %v10025_v16 = vld [vmem:[#allocation4 + $0x74c] ss:$16 sps:$4 sm:$0xff]   ;;  %v10020_v42 = vld [vmem:[#allocation4 + $0x548] ss:$16 sps:$4 sm:$0xff]  }
 0x5ff   :  { %7927 = vmatprep.subr.bf16.mxu1 %v9941_v53  ;;  %v10023_v53 = vld [vmem:[#allocation4 + $0x748] ss:$16 sps:$4 sm:$0xff]  }
 0x601   :  { %7885 = vmatpush2.bf16.msra.mxu0 %v9936_v36  ;;  %v10028_v36 = vld [vmem:[#allocation4 + $0x52c] ss:$16 sps:$4 sm:$0xff]  }
 0x602   :  { %7928 = vmatpush2.bf16.msra.mxu1 %v9939_v47  ;;  %7940 = vmatprep.subr.bf16.mxu0 %v9944_v39  ;;  %v10031_v47 = vld [vmem:[#allocation4 + $0x72c] ss:$16 sps:$4 sm:$0xff]   ;;  %v10026_v39 = vld [vmem:[#allocation4 + $0x528] ss:$16 sps:$4 sm:$0xff]  }
 0x603   :  { %7983 = vmatprep.subr.bf16.mxu1 %v9947_v50  ;;  %v10029_v50 = vld [vmem:[#allocation4 + $0x728] ss:$16 sps:$4 sm:$0xff]  }
 0x604   :  { %7887 = vmatmul.mubr.bf16.vlgmr.msra.gmra.mxu0 %v10653_v8  ;;  %v9962_v8 = vld [vmem:[#allocation4 + $0x48c] ss:$16 sps:$4 sm:$0xff]  }
 0x605   :  { %7930 = vmatmul.mubr.bf16.vlgmr.msra.gmra.mxu1 %v10677_v37  ;;  %7941 = vmatpush1.bf16.msra.mxu0 %v9942_v41  ;;  %v9965_v37 = vld [vmem:[#allocation4 + $0x68c] ss:$16 sps:$4 sm:$0xff]  }
 0x606   :  { %7984 = vmatpush1.bf16.msra.mxu1 %v9945_v49  ;;  %7942 = vmatprep.subr.bf16.mxu0 %v9950_v52  ;;  %v10034_v41 = vld [vmem:[#allocation4 + $0x50c] ss:$16 sps:$4 sm:$0xff]   ;;  %v10032_v52 = vld [vmem:[#allocation4 + $0x508] ss:$16 sps:$4 sm:$0xff]  }
 0x607   :  { %7985 = vmatprep.subr.bf16.mxu1 %v9953_v1  ;;  %7972 = vmatprep.mubr.bf16.mxu0 %v10689_v58  ;;  %v9966_v58 = vld [vmem:[#allocation4 + $0x468] ss:$16 sps:$4 sm:$0xff]   ;;  %v10037_v49 = vld [vmem:[#allocation4 + $0x70c] ss:$16 sps:$4 sm:$0xff]  }
 0x608   :  { %8015 = vmatprep.mubr.bf16.mxu1 %v10697_v62  ;;  %v9969_v62 = vld [vmem:[#allocation4 + $0x668] ss:$16 sps:$4 sm:$0xff]  }
 0x609   :  { %7943 = vmatpush1.bf16.msra.mxu0 %v9948_v5  ;;  %v10035_v1 = vld [vmem:[#allocation4 + $0x708] ss:$16 sps:$4 sm:$0xff]  }
 0x60a   :  { %7986 = vmatpush1.bf16.msra.mxu1 %v9951_v54  ;;  %7944 = vmatprep.subr.bf16.mxu0 %v9956_v43 }
 0x60b   :  { %7987 = vmatprep.subr.bf16.mxu1 %v9959_v17 }
 0x60d   :  { %7945 = vmatpush1.bf16.msra.mxu0 %v9954_v48 }
 0x60e   :  { %7988 = vmatpush1.bf16.msra.mxu1 %v9957_v44  ;;  %7946 = vmatprep.subr.bf16.mxu0 %v9962_v8 }
 0x60f   :  { %7989 = vmatprep.subr.bf16.mxu1 %v9965_v37 }
 0x611   :  { %7947 = vmatpush1.bf16.msra.mxu0 %v9960_v55  ;;  %v8026_v55 = vld [vmem:[#allocation16] sm:$0xf] }
 0x612   :  { %7990 = vmatpush1.bf16.msra.mxu1 %v9963_v0  ;;  %7948 = vmatprep.subr.bf16.mxu0 %v9968_v29 }
 0x613   :  { %7991 = vmatprep.subr.bf16.mxu1 %v9971_v19 }
 0x615   :  { %7949 = vmatpush1.bf16.msra.mxu0 %v9966_v58 }
 0x616   :  { %7992 = vmatpush1.bf16.msra.mxu1 %v9969_v62  ;;  %7950 = vmatprep.subr.bf16.mxu0 %v9974_v57  ;;  %v8031_v57 = vrot.slane %v8026_v55, %v10538_v38 }
 0x617   :  { %7993 = vmatprep.subr.bf16.mxu1 %v9977_v18  ;;  %v8056_v18 = vld [vmem:[#allocation18] sm:$0xf] }
 0x619   :  { %7951 = vmatpush1.bf16.msra.mxu0 %v9972_v59 }
 0x61a   :  { %7994 = vmatpush1.bf16.msra.mxu1 %v9975_v61  ;;  %7952 = vmatprep.subr.bf16.mxu0 %v9980_v20 }
 0x61b   :  { %7995 = vmatprep.subr.bf16.mxu1 %v9983_v4  ;;  %v8035_v4 = vrot.slane %v8026_v55, %v10543_v40 }
 0x61d   :  { %7953 = vmatpush1.bf16.msra.mxu0 %v9978_v51  ;;  %v8061_v51 = vrot.slane %v8056_v18, %v10538_v38 }
 0x61e   :  { %7996 = vmatpush1.bf16.msra.mxu1 %v9981_v45  ;;  %7954 = vmatprep.subr.bf16.mxu0 %v9986_v63 }
 0x61f   :  { %7997 = vmatprep.subr.bf16.mxu1 %v9989_v26 }
 0x621   :  { %7955 = vmatpush1.bf16.msra.mxu0 %v9984_v6 }
 0x622   :  { %7998 = vmatpush1.bf16.msra.mxu1 %v9987_v9  ;;  %7956 = vmatprep.subr.bf16.mxu0 %v9992_v12 }
 0x623   :  { %7999 = vmatprep.subr.bf16.mxu1 %v9995_v46 }
 0x625   :  { %7957 = vmatpush2.bf16.msra.mxu0 %v9990_v13 }
 0x626   :  { %8000 = vmatpush2.bf16.msra.mxu1 %v9993_v14  ;;  %7958 = vmatprep.subr.bf16.mxu0 %v9998_v56  ;;  %v8065_v14 = vrot.slane %v8056_v18, %v10543_v40 }
 0x627   :  { %8001 = vmatprep.subr.bf16.mxu1 %v10001_v15 }
 0x629   :  { %7959 = vmatpush2.bf16.msra.mxu0 %v9996_v21 }
 0x62a   :  { %8002 = vmatpush2.bf16.msra.mxu1 %v9999_v22  ;;  %7960 = vmatprep.subr.bf16.mxu0 %v10004_v23 }
 0x62b   :  { %8003 = vmatprep.subr.bf16.mxu1 %v10007_v24 }
 0x62d   :  { %7961 = vmatpush2.bf16.msra.mxu0 %v10002_v25 }
 0x62e   :  { %8004 = vmatpush2.bf16.msra.mxu1 %v10005_v27  ;;  %7962 = vmatprep.subr.bf16.mxu0 %v10010_v28 }
 0x62f   :  { %8005 = vmatprep.subr.bf16.mxu1 %v10013_v30 }
 0x631   :  { %7963 = vmatpush2.bf16.msra.mxu0 %v10008_v32 }
 0x632   :  { %8006 = vmatpush2.bf16.msra.mxu1 %v10011_v33  ;;  %7964 = vmatprep.subr.bf16.mxu0 %v10016_v34 }
 0x633   :  { %8007 = vmatprep.subr.bf16.mxu1 %v10019_v35 }
 0x635   :  { %7965 = vmatpush2.bf16.msra.mxu0 %v10014_v31 }
 0x636   :  { %8008 = vmatpush2.bf16.msra.mxu1 %v10017_v2  ;;  %7966 = vmatprep.subr.bf16.mxu0 %v10022_v3 }
 0x637   :  { %8009 = vmatprep.subr.bf16.mxu1 %v10025_v16 }
 0x639   :  { %7967 = vmatpush2.bf16.msra.mxu0 %v10020_v42 }
 0x63a   :  { %8010 = vmatpush2.bf16.msra.mxu1 %v10023_v53  ;;  %7968 = vmatprep.subr.bf16.mxu0 %v10028_v36 }
 0x63b   :  { %8011 = vmatprep.subr.bf16.mxu1 %v10031_v47 }
 0x63d   :  { %7969 = vmatpush2.bf16.msra.mxu0 %v10026_v39 }
 0x63e   :  { %8012 = vmatpush2.bf16.msra.mxu1 %v10029_v50  ;;  %7970 = vmatprep.subr.bf16.mxu0 %v10034_v41 }
 0x63f   :  { %8013 = vmatprep.subr.bf16.mxu1 %v10037_v49 }
 0x641   :  { %7971 = vmatpush2.bf16.msra.mxu0 %v10032_v52 }
 0x642   :  { %8014 = vmatpush2.bf16.msra.mxu1 %v10035_v1  ;;  %v8039_v1 = vrot.slane %v8026_v55, %v10562_v10 }
 0x644   :  { %7973 = vmatmul.mubr.bf16.vlgmr.msra.gmra.mxu0 %v10687_v7  ;;  %v7716_v5 = vpop.f32.mrf.mxu0 }
 0x645   :  { %8016 = vmatmul.mubr.bf16.vlgmr.msra.gmra.mxu1 %v10695_v60  ;;  %v7759_v54 = vpop.f32.mrf.mxu1 }
 0x646   :  { %v7718_v43 = vpop.f32.mrf.mxu0  ;;  %v7760_v0 = vadd.f32 %v7759_v54, %v7716_v5 }
 0x647   :  { %v7761_v17 = vpop.f32.mrf.mxu1 }
 0x648   :  { %v7720_v48 = vpop.f32.mrf.mxu0  ;;  %v7762_v58 = vadd.f32 %v7761_v17, %v7718_v43 }
 0x649   :  { %v7763_v44 = vpop.f32.mrf.mxu1 }
 0x64a   :  { %v7722_v8 = vpop.f32.mrf.mxu0  ;;  %v7764_v60 = vadd.f32 %v7763_v44, %v7720_v48  ;;  %v8043_v44 = vrot.slane %v8026_v55, %v10565_v11 }
 0x64b   :  { %v7765_v37 = vpop.f32.mrf.mxu1 }
 0x64c   :  { %v7766_v26 = vadd.f32 %v7765_v37, %v7722_v8  ;;  %v8069_v8 = vrot.slane %v8056_v18, %v10562_v10 }
 0x684   :  { %v7802_v29 = vpop.f32.mrf.mxu0 }
 0x685   :  { %v7845_v19 = vpop.f32.mrf.mxu1  ;;  %v7803_v62 = vadd.f32 %v7802_v29, %v7760_v0 }
 0x686   :  { %v7804_v7 = vpop.f32.mrf.mxu0 }
 0x687   :  { %v7847_v59 = vpop.f32.mrf.mxu1  ;;  %v7846_v61 = vadd.f32 %v7845_v19, %v7803_v62  ;;  %v7805_v20 = vadd.f32 %v7804_v7, %v7762_v58 }
 0x688   :  { %v7806_v45 = vpop.f32.mrf.mxu0 }
 0x689   :  { %v7849_v63 = vpop.f32.mrf.mxu1  ;;  %v8048_v6 = vmul.f32 %v8031_v57, %v7846_v61  ;;  %v7848_v9 = vadd.f32 %v7847_v59, %v7805_v20  ;;  %v7807_v12 = vadd.f32 %v7806_v45, %v7764_v60  ;;  %v8073_v59 = vrot.slane %v8056_v18, %v10565_v11 }
 0x68a   :  { %v7808_v46 = vpop.f32.mrf.mxu0 }
 0x68b   :  { %v8049_v13 = vmul.f32 %v8035_v4, %v7848_v9  ;;  %v7850_v56 = vadd.f32 %v7849_v63, %v7807_v12  ;;  %v7809_v15 = vadd.f32 %v7808_v46, %v7766_v26  ;;  %v7851_v21 = vpop.f32.mrf.mxu1  ;;  %v8078_v22 = vadd.f32 %v8061_v51, %v8048_v6 }
 0x68d   :  { %v8052_v23 = vmul.f32 %v8031_v57, %v7850_v56  ;;  %v7852_v24 = vadd.f32 %v7851_v21, %v7809_v15  ;;  %v8079_v25 = vadd.f32 %v8065_v14, %v8049_v13  ;;  %v8086_v38 = vmax.f32 %v8078_v22, 0.0 }
 0x68f   :  { %v8082_v27 = vadd.f32 %v8061_v51, %v8052_v23  ;;  %v8053_v28 = vmul.f32 %v8035_v4, %v7852_v24  ;;  %v8087_v33 = vmax.f32 %v8079_v25, 0.0 }
 0x691   :  { %v8090_v30 = vmax.f32 %v8082_v27, 0.0  ;;  %v8083_v32 = vadd.f32 %v8065_v14, %v8053_v28 }
 0x693   :  { %v10719_v34 = vpack.c.bf16 %v8090_v30, %v8086_v38  ;;  %v8091_v35 = vmax.f32 %v8083_v32, 0.0 }
 0x695   :  { %v8095_v31 = vpack.c.bf16 %v8091_v35, %v8087_v33 }
 0x6c4   :  { %v7888_v2 = vpop.f32.mrf.mxu0 }
 0x6c5   :  { %v7931_v3 = vpop.f32.mrf.mxu1 }
 0x6c6   :  { %v7890_v40 = vpop.f32.mrf.mxu0  ;;  %v7932_v39 = vadd.f32 %v7931_v3, %v7888_v2 }
 0x6c7   :  { %v7933_v16 = vpop.f32.mrf.mxu1 }
 0x6c8   :  { %v7892_v42 = vpop.f32.mrf.mxu0  ;;  %v7934_v49 = vadd.f32 %v7933_v16, %v7890_v40 }
 0x6c9   :  { %v7935_v53 = vpop.f32.mrf.mxu1 }
 0x6ca   :  { %v7894_v36 = vpop.f32.mrf.mxu0  ;;  %v7936_v43 = vadd.f32 %v7935_v53, %v7892_v42 }
 0x6cb   :  { %v7937_v47 = vpop.f32.mrf.mxu1 }
 0x6cc   :  { %v7938_v29 = vadd.f32 %v7937_v47, %v7894_v36 }
 0x704   :  { %v7974_v50 = vpop.f32.mrf.mxu0 }
 0x705   :  { %v8017_v41 = vpop.f32.mrf.mxu1  ;;  %v7975_v52 = vadd.f32 %v7974_v50, %v7932_v39 }
 0x706   :  { %v7976_v5 = vpop.f32.mrf.mxu0 }
 0x707   :  { %v8019_v54 = vpop.f32.mrf.mxu1  ;;  %v8018_v17 = vadd.f32 %v8017_v41, %v7975_v52  ;;  %v7977_v48 = vadd.f32 %v7976_v5, %v7934_v49 }
 0x708   :  { %v7978_v37 = vpop.f32.mrf.mxu0 }
 0x709   :  { %v8021_v0 = vpop.f32.mrf.mxu1  ;;  %v8050_v19 = vmul.f32 %v8039_v1, %v8018_v17  ;;  %v8020_v58 = vadd.f32 %v8019_v54, %v7977_v48  ;;  %v7979_v62 = vadd.f32 %v7978_v37, %v7936_v43 }
 0x70a   :  { %v7980_v57 = vpop.f32.mrf.mxu0 }
 0x70b   :  { %v8051_v7 = vmul.f32 %v8043_v44, %v8020_v58  ;;  %v8022_v60 = vadd.f32 %v8021_v0, %v7979_v62  ;;  %v7981_v61 = vadd.f32 %v7980_v57, %v7938_v29  ;;  %v8023_v20 = vpop.f32.mrf.mxu1  ;;  %v8080_v4 = vadd.f32 %v8069_v8, %v8050_v19 }
 0x70d   :  { %v8054_v51 = vmul.f32 %v8039_v1, %v8022_v60  ;;  %v8024_v45 = vadd.f32 %v8023_v20, %v7981_v61  ;;  %v8081_v63 = vadd.f32 %v8073_v59, %v8051_v7  ;;  %v8088_v10 = vmax.f32 %v8080_v4, 0.0 }
 0x70f   :  { %v8084_v55 = vadd.f32 %v8069_v8, %v8054_v51  ;;  %v8055_v26 = vmul.f32 %v8043_v44, %v8024_v45  ;;  %v8089_v12 = vmax.f32 %v8081_v63, 0.0 }
 0x711   :  { %v8092_v6 = vmax.f32 %v8084_v55, 0.0  ;;  %v8085_v9 = vadd.f32 %v8073_v59, %v8055_v26 }
 0x713   :  { %v10725_v46 = vpack.c.bf16 %v8092_v6, %v8088_v10  ;;  %v8093_v13 = vmax.f32 %v8085_v9, 0.0 }
 0x715   :  { %v8097_v14 = vpack.c.bf16 %v8093_v13, %v8089_v12 }
 0x716   :  { %10366 = dma.done.wait [#allocation6 + $0x3], 4096 }
 0x717   :  { %10367 = vsyncadd [#allocation6 + $0x3], 4294963200  ;;  %8389 = vmatprep.mubr.bf16.mxu0 %v8095_v31  ;;  %8430 = vmatprep.mubr.bf16.mxu1 %v8097_v14  ;;  %v10038_v11 = vld [vmem:[#allocation5 + $0x78] sm:$0xff]   ;;  %v10042_v21 = vld [vmem:[#allocation5 + $0x70] sm:$0xff]   ;;  %s10385_s7 = smov [#allocation22]  }
 0x718   :  { %v10039_v18 = vld [vmem:[#allocation5 + $0xf8] sm:$0xff]   ;;  %9590 = vmatprep.subr.bf16.mxu0 %v10038_v11  ;;  %v10043_v22 = vld [vmem:[#allocation5 + $0xf0] sm:$0xff]   ;;  %v10046_v25 = vld [vmem:[#allocation5 + $0x68] sm:$0xff]   ;;  %s8472_s10 = sshll.u32 %s10385_s7, 4  ;;  %s8473_s10 = int_to_ptr.vmem [resolvable:$true] %s8472_s10 }
 0x719   :  { %v10040_v56 = vld [vmem:[#allocation5 + $0x38] sm:$0xff]   ;;  %9612 = vmatprep.subr.bf16.mxu1 %v10039_v18  ;;  %v10044_v23 = vld [vmem:[#allocation5 + $0x30] sm:$0xff]   ;;  %v10047_v27 = vld [vmem:[#allocation5 + $0xe8] sm:$0xff]   ;;  %s10330_s25 = scalar_lea.vmem %s8473_s10, 128  ;;  %p10335_p10 = scmp.lt.s32.totalorder %s8473_s10, %s8473_s10 }
 0x71a   :  { %v10041_v15 = vld [vmem:[#allocation5 + $0xb8] sm:$0xff]   ;;  %9591 = vmatpush3.bf16.msra.mxu0 %v10040_v56  ;;  %v10045_v24 = vld [vmem:[#allocation5 + $0xb0] sm:$0xff]   ;;  %v10048_v28 = vld [vmem:[#allocation5 + $0x28] sm:$0xff]   ;;  %p10331_p9 = scmp.ne.s32.totalorder %s8473_s10, %s10330_s25  ;;  %p10336_p11 = scmp.lt.s32.totalorder %s10330_s25, %s10330_s25 }
 0x71b   :  { %9613 = vmatpush3.bf16.msra.mxu1 %v10041_v15  ;;  %9592 = vmatprep.subr.bf16.mxu0 %v10042_v21  ;;  %v10049_v38 = vld [vmem:[#allocation5 + $0xa8] sm:$0xff]   ;;  %v10050_v30 = vld [vmem:[#allocation5 + $0x60] sm:$0xff]   ;;  %v10054_v31 = vld [vmem:[#allocation5 + $0x58] sm:$0xff]  }
 0x71c   :  { %9614 = vmatprep.subr.bf16.mxu1 %v10043_v22  ;;  %v10051_v32 = vld [vmem:[#allocation5 + $0xe0] sm:$0xff]   ;;  %v10055_v2 = vld [vmem:[#allocation5 + $0xd8] sm:$0xff]   ;;  %v10058_v16 = vld [vmem:[#allocation5 + $0x50] sm:$0xff]   ;;  %p10337_p12 = por %p10336_p11, %p10335_p10 }
 0x71d   :  { %v10052_v33 = vld [vmem:[#allocation5 + $0x20] sm:$0xff]   ;;  %v10056_v3 = vld [vmem:[#allocation5 + $0x18] sm:$0xff]   ;;  %v10059_v42 = vld [vmem:[#allocation5 + $0xd0] sm:$0xff]  }
 0x71e   :  { %9593 = vmatpush3.bf16.msra.mxu0 %v10044_v23  ;;  %v10053_v35 = vld [vmem:[#allocation5 + $0xa0] sm:$0xff]   ;;  %v10057_v40 = vld [vmem:[#allocation5 + $0x98] sm:$0xff]   ;;  %v10060_v53 = vld [vmem:[#allocation5 + $0x10] sm:$0xff]   ;;  %p10338_p13 = pnand %p10337_p12, %p10331_p9 }
 0x71f   :  { %9615 = vmatpush3.bf16.msra.mxu1 %v10045_v24  ;;  %9594 = vmatprep.subr.bf16.mxu0 %v10046_v25  ;;  %v10061_v36 = vld [vmem:[#allocation5 + $0x90] sm:$0xff]   ;;  %v10062_v47 = vld [vmem:[#allocation5 + $0x48] sm:$0xff]   ;;  %v10066_v49 = vld [vmem:[#allocation5 + $0x40] sm:$0xff]  }
 0x720   :  { %9616 = vmatprep.subr.bf16.mxu1 %v10047_v27  ;;  %v10063_v39 = vld [vmem:[#allocation5 + $0xc8] sm:$0xff]   ;;  %v10067_v52 = vld [vmem:[#allocation5 + $0xc0] sm:$0xff]  }
 0x721   :  { %v10064_v50 = vld [vmem:[#allocation5 + $0x8] sm:$0xff]   ;;  %v10068_v1 = vld [vmem:[#allocation5] sm:$0xff]  }
 0x722   :  { %9595 = vmatpush3.bf16.msra.mxu0 %v10048_v28  ;;  %v10065_v41 = vld [vmem:[#allocation5 + $0x88] sm:$0xff]   ;;  %v10069_v5 = vld [vmem:[#allocation5 + $0x80] sm:$0xff]  }
 0x723   :  { %9617 = vmatpush3.bf16.msra.mxu1 %v10049_v38  ;;  %9596 = vmatprep.subr.bf16.mxu0 %v10050_v30  ;;  %v9575_v58 = vld [vmem:[#allocation19] ss:$0 sm:$0xff]  ;;  %v9576_v61 = vld [vmem:[#allocation21] ss:$0 sm:$0xff] }
 0x724   :  { %9618 = vmatprep.subr.bf16.mxu1 %v10051_v32 }
 0x726   :  { %9597 = vmatpush3.bf16.msra.mxu0 %v10052_v33 }
 0x727   :  { %9619 = vmatpush3.bf16.msra.mxu1 %v10053_v35  ;;  %9598 = vmatprep.subr.bf16.mxu0 %v10054_v31 }
 0x728   :  { %9620 = vmatprep.subr.bf16.mxu1 %v10055_v2 }
 0x72a   :  { %9599 = vmatpush3.bf16.msra.mxu0 %v10056_v3 }
 0x72b   :  { %9621 = vmatpush3.bf16.msra.mxu1 %v10057_v40  ;;  %9600 = vmatprep.subr.bf16.mxu0 %v10058_v16 }
 0x72c   :  { %9622 = vmatprep.subr.bf16.mxu1 %v10059_v42 }
 0x72e   :  { %9601 = vmatpush3.bf16.msra.mxu0 %v10060_v53 }
 0x72f   :  { %9623 = vmatpush3.bf16.msra.mxu1 %v10061_v36  ;;  %9602 = vmatprep.subr.bf16.mxu0 %v10062_v47 }
 0x730   :  { %9624 = vmatprep.subr.bf16.mxu1 %v10063_v39 }
 0x732   :  { %9603 = vmatpush3.bf16.msra.mxu0 %v10064_v50 }
 0x733   :  { %9625 = vmatpush3.bf16.msra.mxu1 %v10065_v41  ;;  %9604 = vmatprep.subr.bf16.mxu0 %v10066_v49 }
 0x734   :  { %9626 = vmatprep.subr.bf16.mxu1 %v10067_v52 }
 0x736   :  { %9605 = vmatpush3.bf16.msra.mxu0 %v10068_v1 }
 0x737   :  { %9627 = vmatpush3.bf16.msra.mxu1 %v10069_v5 }
 0x739   :  { %8390 = vmatmul.mubr.bf16.vlgmr.msra.gmra.mxu0 %v10719_v34 }
 0x73a   :  { %8431 = vmatmul.mubr.bf16.vlgmr.msra.gmra.mxu1 %v10725_v46 }
 0x7f9   :  { %v9606_v54 = vpop.f32.mrf.mxu0 }
 0x7fa   :  { %v9628_v43 = vpop.f32.mrf.mxu1 }
 0x7fb   :  { %v9607_v17 = vpop.f32.mrf.mxu0 }
 0x7fc   :  { %v9608_v48 = vadd.f32 %v9607_v17, %v9606_v54  ;;  %v9629_v44 = vpop.f32.mrf.mxu1 }
 0x7fd   :  { %v9630_v8 = vadd.f32 %v9629_v44, %v9628_v43  ;;  %v9609_v37 = vpop.f32.mrf.mxu0 }
 0x7fe   :  { %v9631_v0 = vpop.f32.mrf.mxu1 }
 0x7ff   :  { %v8433_v29 = vadd.f32 %v9630_v8, %v9608_v48  ;;  %v9610_v19 = vpop.f32.mrf.mxu0 }
 0x800   :  { %v9611_v62 = vadd.f32 %v9610_v19, %v9609_v37  ;;  %v9632_v57 = vpop.f32.mrf.mxu1 }
 0x801   :  { %v9633_v7 = vadd.f32 %v9632_v57, %v9631_v0  ;;  %v8446_v59 = vmul.f32 %v9575_v58, %v8433_v29 }
 0x803   :  { %v8436_v60 = vadd.f32 %v9633_v7, %v9611_v62  ;;  %v8455_v20 = vadd.f32 %v9576_v61, %v8446_v59 }
 0x805   :  { %v8447_v34 = vmul.f32 %v9575_v58, %v8436_v60 }
 0x807   :  { %v8456_v4 = vadd.f32 %v9576_v61, %v8447_v34 }
 0x809   :  { %v9588_v51 = vpack.c.bf16 %v8456_v4, %v8455_v20 }
 0x80b   :  { %9589 = vst [vmem:[#allocation22] sm:$0xff] %v9588_v51  }
 0x80c   :  { %10341 = shalt.err (!%p10338_p13)
}
 0x80d   :  { %s10386_s26 = smov 64   ;;  %s10387_s3 = smov 4  }
 0x80e   :  { %8478 = dma.vmem_to_hbm [thread:$0]  %s8473_s10, 128, %s10745_s13, [#allocation9], %s10386_s26, %s10386_s26, %s10387_s3  }
 0x80f   :  { %10368 = dma.done.wait [#allocation9], 128  }
 0x810   :  { %10369 = vsyncadd [#allocation9], 4294967168 }
 0x811   :  { %8482 = vsyncpa [#allocation8], 1 }
 0x812   :  { %8483 = vsyncpa [#allocation11], 1 }
 0x813   :  { %8484 = vsyncpa [#allocation14], 1 }
 0x814   :  { %8485 = vsyncpa [#allocation17], 1 }
 0x815   :  { %8486 = vsyncpa [#allocation20], 1 }
 0x816   :  { %8487 = vsyncpa [#allocation9], 1 }
 0x817   :  { %8488 = vsyncmov [#allocation6] }
 0x81a   :  { %s8489_s6 = vpop.sfrf %8488 }
 0x81b   :  { %p9579_p0 = scmp.ne.s32.totalorder %s8489_s6, 0 }
 0x81d   :  { %8493 = shalt.err (%p9579_p0)  }
 0x81e   :  { %8495 = vsyncmov [#allocation6 + $0x1] }
 0x821   :  { %s8496_s29 = vpop.sfrf %8495 }
 0x822   :  { %p9580_p1 = scmp.ne.s32.totalorder %s8496_s29, 0 }
 0x824   :  { %8500 = shalt.err (%p9580_p1)  }
 0x825   :  { %8502 = vsyncmov [#allocation6 + $0x2] }
 0x828   :  { %s8503_s8 = vpop.sfrf %8502 }
 0x829   :  { %p9581_p2 = scmp.ne.s32.totalorder %s8503_s8, 0 }
 0x82b   :  { %8507 = shalt.err (%p9581_p2)  }
 0x82c   :  { %8509 = vsyncmov [#allocation6 + $0x3] }
 0x82f   :  { %s8510_s13 = vpop.sfrf %8509 }
 0x830   :  { %p9582_p3 = scmp.ne.s32.totalorder %s8510_s13, 0 }
 0x832   :  { %8514 = shalt.err (%p9582_p3)  }

</bundles_post_ra>
